<compile_context>
chip_gen: v6e
topology: v6e:2x2x1
jax: 0.10.0
libtpu: 0.0.40
codegen_flags: <defaults>
</compile_context>

<pallas_src>
import functools
import math

import jax
import jax.numpy as jnp
from jax.experimental import pallas as pl
from jax.experimental.pallas import tpu as pltpu


# ----------------------------- fused ViT kernel -----------------------------

def _vit_encoder_kernel(patches_ref, patch_w_ref, add_bias_ref, attn_bias_ref,
                        cls_sel_ref,
                        ln1_g_ref, ln1_b_ref, wqkv_ref, bqkv_ref, wo_ref, bo_ref,
                        ln2_g_ref, ln2_b_ref, w1_ref, b1_ref, w2_ref, b2_ref,
                        lnf_g_ref, lnf_b_ref,
                        out_ref,
                        *, num_layers, heads, head_dim, eps):
    """Single-step fused ViT encoder. Tokens on sublanes (M = BT*S rows),
    features on lanes. All scalar constants are Python floats (literals)."""
    D = heads * head_dim
    scale = 1.0 / math.sqrt(head_dim)          # Python float -> literal
    gelu_c = math.sqrt(2.0 / math.pi)

    def layer_norm(x, g, b):
        mu = jnp.mean(x, axis=-1, keepdims=True)
        xc = x - mu
        var = jnp.mean(xc * xc, axis=-1, keepdims=True)
        return xc * jax.lax.rsqrt(var + eps) * g + b

    attn_bias = attn_bias_ref[...]             # [M, M] block-diagonal 0 / -1e30

    # Patch embedding + token assembly. CLS rows arrive as zero patch rows;
    # add_bias carries (cls + pos[0]) for CLS rows and (pos[i] + patch_b)
    # for patch rows, so one matmul + one add builds the full token tensor.
    h = (jnp.dot(patches_ref[...], patch_w_ref[...],
                 preferred_element_type=jnp.float32) + add_bias_ref[...])

    for l in range(num_layers):                # static unroll (L small)
        # ---- attention block (pre-LN, fused QKV projection) ----
        hn = layer_norm(h, ln1_g_ref[l], ln1_b_ref[l])
        qkv = (jnp.dot(hn, wqkv_ref[l], preferred_element_type=jnp.float32)
               + bqkv_ref[l])                  # [M, 3D]
        wo_l = wo_ref[l]                       # [D, D]
        attn_out = bo_ref[l]                   # [1, D] (broadcasts over M rows)
        for hd in range(heads):                # static unroll
            c0 = hd * head_dim
            q = qkv[:, c0:c0 + head_dim]
            k = qkv[:, D + c0:D + c0 + head_dim]
            v = qkv[:, 2 * D + c0:2 * D + c0 + head_dim]
            # q @ k^T over all images at once; cross-image scores are masked
            # out by the block-diagonal attention bias.
            s = jax.lax.dot_general(q, k, (((1,), (1,)), ((), ())),
                                    preferred_element_type=jnp.float32)
            s = s * scale + attn_bias
            m = jnp.max(s, axis=-1, keepdims=True)
            p = jnp.exp(s - m)
            p = p * pl.reciprocal(jnp.sum(p, axis=-1, keepdims=True),
                                  approx=True)
            ctx_h = jnp.dot(p, v, preferred_element_type=jnp.float32)  # [M, Dh]
            # merge_heads(ctx) @ Wo  ==  sum_h ctx_h @ Wo[h*Dh:(h+1)*Dh, :]
            attn_out = attn_out + jnp.dot(
                ctx_h, wo_l[c0:c0 + head_dim, :],
                preferred_element_type=jnp.float32)
        h = h + attn_out

        # ---- MLP block (pre-LN, fused tanh-GELU) ----
        # TODO(synk): tanh-approx GELU; HF ViT default is exact erf GELU.
        hn = layer_norm(h, ln2_g_ref[l], ln2_b_ref[l])
        mid = (jnp.dot(hn, w1_ref[l], preferred_element_type=jnp.float32)
               + b1_ref[l])
        mid = 0.5 * mid * (1.0 + jnp.tanh(gelu_c * (mid + 0.044715 * mid * mid * mid)))
        h = h + (jnp.dot(mid, w2_ref[l], preferred_element_type=jnp.float32)
                 + b2_ref[l])

    # final LN, then pick each image's CLS row via a one-hot selection matmul
    # (MXU-friendly; avoids strided sublane gathers in the kernel).
    hf = layer_norm(h, lnf_g_ref[...], lnf_b_ref[...])
    out_ref[...] = jnp.dot(cls_sel_ref[...], hf,
                           preferred_element_type=jnp.float32)


def _full_spec(shape):
    if len(shape) == 2:
        return pl.BlockSpec(shape, lambda i: (0, 0))
    return pl.BlockSpec(shape, lambda i: (0, 0, 0))


def vit_forward(weights, pixel_values, *, patch, heads, layers, eps=1e-12):
    """pixel_values: [BT, C, H, W] (NCHW) -> CLS features [BT, hidden]."""
    BT, C, Himg, Wimg = pixel_values.shape
    P = patch
    D = weights["patch_w"].shape[1]
    Dh = D // heads
    Np = (Himg // P) * (Wimg // P)
    S = Np + 1
    M = BT * S
    CPP = C * P * P

    # --- layout glue (pure XLA): conv k=s=P == patch-flatten + matmul ---
    x = pixel_values.reshape(BT, C, Himg // P, P, Wimg // P, P)
    x = x.transpose(0, 2, 4, 1, 3, 5).reshape(BT, Np, CPP)
    # prepend a zero "patch" per image for the CLS token
    patches = jnp.concatenate(
        [jnp.zeros((BT, 1, CPP), x.dtype), x], axis=1).reshape(M, CPP)

    add_bias = jnp.tile(weights["add_bias"], (BT, 1))            # [M, D]

    # block-diagonal attention bias: tokens attend only within their own image
    # (constant-folded by XLA under jit; tiny: M*M*4 bytes).
    tok_img = jnp.arange(M) // S
    attn_bias = jnp.where(tok_img[:, None] == tok_img[None, :],
                          0.0, -1e30).astype(jnp.float32)        # [M, M]

    # one-hot selector of each image's CLS row (row b*S)
    cls_sel = jax.nn.one_hot(jnp.arange(BT) * S, M, dtype=jnp.float32)  # [BT, M]

    operands = [patches, weights["patch_w"], add_bias, attn_bias, cls_sel,
                weights["ln1_g"], weights["ln1_b"],
                weights["wqkv"], weights["bqkv"],
                weights["wo"], weights["bo"],
                weights["ln2_g"], weights["ln2_b"],
                weights["w1"], weights["b1"],
                weights["w2"], weights["b2"],
                weights["lnf_g"], weights["lnf_b"]]

    kernel = functools.partial(_vit_encoder_kernel, num_layers=layers,
                               heads=heads, head_dim=Dh, eps=eps)

    # Everything (activations + all weights) is a few hundred KiB -> a single
    # grid step with whole-array VMEM blocks is the right tiling here.
    # TODO(synk): for real ViT sizes, tile M / layers with a grid and re-budget
    # against 64 MiB VMEM on v7x (and shard a parallel axis across its 2 TCs).
    return pl.pallas_call(
        kernel,
        out_shape=jax.ShapeDtypeStruct((BT, D), jnp.float32),
        grid=(1,),
        in_specs=[_full_spec(a.shape) for a in operands],
        out_specs=pl.BlockSpec((BT, D), lambda i: (0, 0)),
        compiler_params=pltpu.CompilerParams(
            dimension_semantics=("arbitrary",)),
    )(*operands)


# --------------------------- synthetic ViT params ---------------------------

def init_params(key, *, channels=3, patch=4, image=16, hidden=32,
                heads=2, layers=2, mlp=64):
    num_patches = (image // patch) ** 2
    keys = iter(jax.random.split(key, 8 + layers * 16))

    def w(shape, std=0.02):
        return (std * jax.random.normal(next(keys), shape)).astype(jnp.float32)

    def zeros(shape):
        return jnp.zeros(shape, jnp.float32)

    def ones(shape):
        return jnp.ones(shape, jnp.float32)

    params = {
        "patch": patch, "hidden": hidden, "heads": heads,
        "patch_w": w((channels * patch * patch, hidden)),
        "patch_b": zeros((hidden,)),
        "cls": w((1, 1, hidden)),
        "pos": w((1, num_patches + 1, hidden)),
        "lnf_g": ones((hidden,)), "lnf_b": zeros((hidden,)),
        "layers": [],
    }
    for _ in range(layers):
        params["layers"].append({
            "ln1_g": ones((hidden,)), "ln1_b": zeros((hidden,)),
            "wq": w((hidden, hidden)), "bq": zeros((hidden,)),
            "wk": w((hidden, hidden)), "bk": zeros((hidden,)),
            "wv": w((hidden, hidden)), "bv": zeros((hidden,)),
            "wo": w((hidden, hidden)), "bo": zeros((hidden,)),
            "ln2_g": ones((hidden,)), "ln2_b": zeros((hidden,)),
            "w1": w((hidden, mlp)), "b1": zeros((mlp,)),
            "w2": w((mlp, hidden)), "b2": zeros((hidden,)),
        })
    return params


def prepare_params(params):
    """Fold cls/pos/patch_b into one additive token bias, fuse QKV weights,
    and stack per-layer tensors so the kernel indexes a leading layer axis."""
    D = params["hidden"]
    L = len(params["layers"])

    pos = params["pos"][0]                                       # [S, D]
    add_bias = pos.at[1:, :].add(params["patch_b"][None, :])
    add_bias = add_bias.at[0:1, :].add(params["cls"][0])         # [S, D]

    def stack(fn):
        return jnp.stack([fn(lp) for lp in params["layers"]], axis=0)

    weights = {
        "patch_w": params["patch_w"],
        "add_bias": add_bias,
        "ln1_g": stack(lambda lp: lp["ln1_g"].reshape(1, D)),
        "ln1_b": stack(lambda lp: lp["ln1_b"].reshape(1, D)),
        "wqkv": stack(lambda lp: jnp.concatenate(
            [lp["wq"], lp["wk"], lp["wv"]], axis=1)),            # [L, D, 3D]
        "bqkv": stack(lambda lp: jnp.concatenate(
            [lp["bq"], lp["bk"], lp["bv"]]).reshape(1, 3 * D)),  # [L, 1, 3D]
        "wo": stack(lambda lp: lp["wo"]),
        "bo": stack(lambda lp: lp["bo"].reshape(1, D)),
        "ln2_g": stack(lambda lp: lp["ln2_g"].reshape(1, D)),
        "ln2_b": stack(lambda lp: lp["ln2_b"].reshape(1, D)),
        "w1": stack(lambda lp: lp["w1"]),
        "b1": stack(lambda lp: lp["b1"].reshape(1, -1)),
        "w2": stack(lambda lp: lp["w2"]),
        "b2": stack(lambda lp: lp["b2"].reshape(1, D)),
        "lnf_g": params["lnf_g"].reshape(1, D),
        "lnf_b": params["lnf_b"].reshape(1, D),
    }
    config = {"patch": params["patch"], "heads": params["heads"], "layers": L}
    return weights, config


# ------------------------------ wrapper module ------------------------------

class AutoModelWrapperPallas:
    """Pallas/JAX equivalent of the PyTorch AutoModelWrapper (inference only)."""

    def __init__(self, params):
        self.weights, cfg = prepare_params(params)
        self._fwd = jax.jit(functools.partial(
            vit_forward, patch=cfg["patch"], heads=cfg["heads"],
            layers=cfg["layers"]))

    def forward(self, inputs):
        tensor_list = inputs["pixel_values"]
        # TODO(synk): assumes all list entries share a shape (true for HF image
        # processors); they are stacked so one fused kernel call covers all.
        stacked = jnp.stack(tensor_list, axis=0)          # [T, B, C, H, W]
        T, B = stacked.shape[0], stacked.shape[1]
        flat = stacked.reshape((T * B,) + stacked.shape[2:])
        feats = self._fwd(self.weights, flat)             # [T*B, hidden]
        return feats.reshape(T, B, -1)                    # [T, B, hidden]

    __call__ = forward


# ----------------------------------- main -----------------------------------

if __name__ == "__main__":
    # list of 2 image batches, each [B=2, C=3, H=16, W=16] (NCHW, like PyTorch)
    key = jax.random.PRNGKey(0)
    k_in0, k_in1 = jax.random.split(key)
    pixel_list = [
        jax.random.normal(k_in0, (2, 3, 16, 16), dtype=jnp.float32),
        jax.random.normal(k_in1, (2, 3, 16, 16), dtype=jnp.float32),
    ]
    inputs = {"pixel_values": pixel_list}

    params = init_params(jax.random.PRNGKey(42))
    model = AutoModelWrapperPallas(params)

    features = model(inputs)
    features = jax.block_until_ready(features)
    assert features.shape == (2, 2, 32), features.shape
    assert bool(jnp.all(jnp.isfinite(features)))
    print("KERNEL_OK")
</pallas_src>

<mosaic_0001>
module attributes {stable_mosaic.version = 11 : i64} {
  func.func @_vit_encoder_kernel(%arg0: i32, %arg1: memref<68x48xf32, #tpu.memory_space<vmem>>, %arg2: memref<48x32xf32, #tpu.memory_space<vmem>>, %arg3: memref<68x32xf32, #tpu.memory_space<vmem>>, %arg4: memref<68x68xf32, #tpu.memory_space<vmem>>, %arg5: memref<4x68xf32, #tpu.memory_space<vmem>>, %arg6: memref<2x1x32xf32, #tpu.memory_space<vmem>>, %arg7: memref<2x1x32xf32, #tpu.memory_space<vmem>>, %arg8: memref<2x32x96xf32, #tpu.memory_space<vmem>>, %arg9: memref<2x1x96xf32, #tpu.memory_space<vmem>>, %arg10: memref<2x32x32xf32, #tpu.memory_space<vmem>>, %arg11: memref<2x1x32xf32, #tpu.memory_space<vmem>>, %arg12: memref<2x1x32xf32, #tpu.memory_space<vmem>>, %arg13: memref<2x1x32xf32, #tpu.memory_space<vmem>>, %arg14: memref<2x32x64xf32, #tpu.memory_space<vmem>>, %arg15: memref<2x1x64xf32, #tpu.memory_space<vmem>>, %arg16: memref<2x64x32xf32, #tpu.memory_space<vmem>>, %arg17: memref<2x1x32xf32, #tpu.memory_space<vmem>>, %arg18: memref<1x32xf32, #tpu.memory_space<vmem>>, %arg19: memref<1x32xf32, #tpu.memory_space<vmem>>, %arg20: memref<4x32xf32, #tpu.memory_space<vmem>>) attributes {dimension_semantics = [#tpu.dimension_semantics<arbitrary>], iteration_bounds = array<i64: 1>, scalar_prefetch = 0 : i64, scratch_operands = 0 : i64, tpu.core_type = #tpu.core_type<tc>, window_params = [{pipeline_mode = #tpu.pipeline_mode<synchronous>, transform_indices = @transform_0, window_bounds = array<i64: 68, 48>}, {pipeline_mode = #tpu.pipeline_mode<synchronous>, transform_indices = @transform_1, window_bounds = array<i64: 48, 32>}, {pipeline_mode = #tpu.pipeline_mode<synchronous>, transform_indices = @transform_2, window_bounds = array<i64: 68, 32>}, {pipeline_mode = #tpu.pipeline_mode<synchronous>, transform_indices = @transform_3, window_bounds = array<i64: 68, 68>}, {pipeline_mode = #tpu.pipeline_mode<synchronous>, transform_indices = @transform_4, window_bounds = array<i64: 4, 68>}, {pipeline_mode = #tpu.pipeline_mode<synchronous>, transform_indices = @transform_5, window_bounds = array<i64: 2, 1, 32>}, {pipeline_mode = #tpu.pipeline_mode<synchronous>, transform_indices = @transform_6, window_bounds = array<i64: 2, 1, 32>}, {pipeline_mode = #tpu.pipeline_mode<synchronous>, transform_indices = @transform_7, window_bounds = array<i64: 2, 32, 96>}, {pipeline_mode = #tpu.pipeline_mode<synchronous>, transform_indices = @transform_8, window_bounds = array<i64: 2, 1, 96>}, {pipeline_mode = #tpu.pipeline_mode<synchronous>, transform_indices = @transform_9, window_bounds = array<i64: 2, 32, 32>}, {pipeline_mode = #tpu.pipeline_mode<synchronous>, transform_indices = @transform_10, window_bounds = array<i64: 2, 1, 32>}, {pipeline_mode = #tpu.pipeline_mode<synchronous>, transform_indices = @transform_11, window_bounds = array<i64: 2, 1, 32>}, {pipeline_mode = #tpu.pipeline_mode<synchronous>, transform_indices = @transform_12, window_bounds = array<i64: 2, 1, 32>}, {pipeline_mode = #tpu.pipeline_mode<synchronous>, transform_indices = @transform_13, window_bounds = array<i64: 2, 32, 64>}, {pipeline_mode = #tpu.pipeline_mode<synchronous>, transform_indices = @transform_14, window_bounds = array<i64: 2, 1, 64>}, {pipeline_mode = #tpu.pipeline_mode<synchronous>, transform_indices = @transform_15, window_bounds = array<i64: 2, 64, 32>}, {pipeline_mode = #tpu.pipeline_mode<synchronous>, transform_indices = @transform_16, window_bounds = array<i64: 2, 1, 32>}, {pipeline_mode = #tpu.pipeline_mode<synchronous>, transform_indices = @transform_17, window_bounds = array<i64: 1, 32>}, {pipeline_mode = #tpu.pipeline_mode<synchronous>, transform_indices = @transform_18, window_bounds = array<i64: 1, 32>}, {pipeline_mode = #tpu.pipeline_mode<synchronous>, transform_indices = @transform_19, window_bounds = array<i64: 4, 32>}]} {
    %c0 = arith.constant 0 : index
    %c0_0 = arith.constant 0 : index
    %0 = vector.load %arg4[%c0, %c0_0] : memref<68x68xf32, #tpu.memory_space<vmem>>, vector<68x68xf32>
    %c0_1 = arith.constant 0 : index
    %c0_2 = arith.constant 0 : index
    %1 = vector.load %arg1[%c0_1, %c0_2] : memref<68x48xf32, #tpu.memory_space<vmem>>, vector<68x48xf32>
    %c0_3 = arith.constant 0 : index
    %c0_4 = arith.constant 0 : index
    %2 = vector.load %arg2[%c0_3, %c0_4] : memref<48x32xf32, #tpu.memory_space<vmem>>, vector<48x32xf32>
    %cst = arith.constant dense<0.000000e+00> : vector<68x32xf32>
    %3 = tpu.matmul %1, %2, %cst {dimension_numbers = #tpu.dot_dimension_numbers<[1], [0], [0], [1], [0, 0, 1, 1], [], []>} : vector<68x48xf32>, vector<48x32xf32>, vector<68x32xf32> -> vector<68x32xf32>
    %c0_5 = arith.constant 0 : index
    %c0_6 = arith.constant 0 : index
    %4 = vector.load %arg3[%c0_5, %c0_6] : memref<68x32xf32, #tpu.memory_space<vmem>>, vector<68x32xf32>
    %5 = arith.addf %3, %4 : vector<68x32xf32>
    %c0_7 = arith.constant 0 : index
    %c0_8 = arith.constant 0 : index
    %c0_9 = arith.constant 0 : index
    %6 = vector.load %arg6[%c0_7, %c0_8, %c0_9] : memref<2x1x32xf32, #tpu.memory_space<vmem>>, vector<1x1x32xf32>
    %7 = vector.shape_cast %6 : vector<1x1x32xf32> to vector<1x32xf32>
    %c0_10 = arith.constant 0 : index
    %c0_11 = arith.constant 0 : index
    %c0_12 = arith.constant 0 : index
    %8 = vector.load %arg7[%c0_10, %c0_11, %c0_12] : memref<2x1x32xf32, #tpu.memory_space<vmem>>, vector<1x1x32xf32>
    %9 = vector.shape_cast %8 : vector<1x1x32xf32> to vector<1x32xf32>
    %cst_13 = arith.constant dense<0.000000e+00> : vector<68xf32>
    %10 = vector.multi_reduction <add>, %5, %cst_13 [1] : vector<68x32xf32> to vector<68xf32>
    %11 = vector.shape_cast %10 : vector<68xf32> to vector<68x1xf32>
    %cst_14 = arith.constant 3.200000e+01 : f32
    %12 = vector.broadcast %cst_14 : f32 to vector<68x1xf32>
    %13 = arith.divf %11, %12 : vector<68x1xf32>
    %14 = vector.broadcast %13 : vector<68x1xf32> to vector<68x32xf32>
    %15 = arith.subf %5, %14 : vector<68x32xf32>
    %16 = arith.mulf %15, %15 : vector<68x32xf32>
    %cst_15 = arith.constant dense<0.000000e+00> : vector<68xf32>
    %17 = vector.multi_reduction <add>, %16, %cst_15 [1] : vector<68x32xf32> to vector<68xf32>
    %18 = vector.shape_cast %17 : vector<68xf32> to vector<68x1xf32>
    %cst_16 = arith.constant 3.200000e+01 : f32
    %19 = vector.broadcast %cst_16 : f32 to vector<68x1xf32>
    %20 = arith.divf %18, %19 : vector<68x1xf32>
    %cst_17 = arith.constant 9.99999996E-13 : f32
    %21 = vector.broadcast %cst_17 : f32 to vector<68x1xf32>
    %22 = arith.addf %20, %21 : vector<68x1xf32>
    %23 = math.rsqrt %22 : vector<68x1xf32>
    %24 = vector.broadcast %23 : vector<68x1xf32> to vector<68x32xf32>
    %25 = arith.mulf %15, %24 : vector<68x32xf32>
    %26 = vector.broadcast %7 : vector<1x32xf32> to vector<68x32xf32>
    %27 = arith.mulf %25, %26 : vector<68x32xf32>
    %28 = vector.broadcast %9 : vector<1x32xf32> to vector<68x32xf32>
    %29 = arith.addf %27, %28 : vector<68x32xf32>
    %c0_18 = arith.constant 0 : index
    %c0_19 = arith.constant 0 : index
    %c0_20 = arith.constant 0 : index
    %30 = vector.load %arg8[%c0_18, %c0_19, %c0_20] : memref<2x32x96xf32, #tpu.memory_space<vmem>>, vector<1x32x96xf32>
    %31 = vector.shape_cast %30 : vector<1x32x96xf32> to vector<32x96xf32>
    %cst_21 = arith.constant dense<0.000000e+00> : vector<68x96xf32>
    %32 = tpu.matmul %29, %31, %cst_21 {dimension_numbers = #tpu.dot_dimension_numbers<[1], [0], [0], [1], [0, 0, 1, 1], [], []>} : vector<68x32xf32>, vector<32x96xf32>, vector<68x96xf32> -> vector<68x96xf32>
    %c0_22 = arith.constant 0 : index
    %c0_23 = arith.constant 0 : index
    %c0_24 = arith.constant 0 : index
    %33 = vector.load %arg9[%c0_22, %c0_23, %c0_24] : memref<2x1x96xf32, #tpu.memory_space<vmem>>, vector<1x1x96xf32>
    %34 = vector.shape_cast %33 : vector<1x1x96xf32> to vector<1x96xf32>
    %35 = vector.broadcast %34 : vector<1x96xf32> to vector<68x96xf32>
    %36 = arith.addf %32, %35 : vector<68x96xf32>
    %c0_25 = arith.constant 0 : index
    %c0_26 = arith.constant 0 : index
    %c0_27 = arith.constant 0 : index
    %37 = vector.load %arg10[%c0_25, %c0_26, %c0_27] : memref<2x32x32xf32, #tpu.memory_space<vmem>>, vector<1x32x32xf32>
    %38 = vector.shape_cast %37 : vector<1x32x32xf32> to vector<32x32xf32>
    %c0_28 = arith.constant 0 : index
    %c0_29 = arith.constant 0 : index
    %c0_30 = arith.constant 0 : index
    %39 = vector.load %arg11[%c0_28, %c0_29, %c0_30] : memref<2x1x32xf32, #tpu.memory_space<vmem>>, vector<1x1x32xf32>
    %40 = vector.shape_cast %39 : vector<1x1x32xf32> to vector<1x32xf32>
    %41 = vector.extract_strided_slice %36 {offsets = [0, 0], sizes = [68, 16], strides = [1, 1]} : vector<68x96xf32> to vector<68x16xf32>
    %42 = vector.extract_strided_slice %36 {offsets = [0, 32], sizes = [68, 16], strides = [1, 1]} : vector<68x96xf32> to vector<68x16xf32>
    %43 = vector.extract_strided_slice %36 {offsets = [0, 64], sizes = [68, 16], strides = [1, 1]} : vector<68x96xf32> to vector<68x16xf32>
    %cst_31 = arith.constant dense<0.000000e+00> : vector<68x68xf32>
    %44 = tpu.matmul %41, %42, %cst_31 {dimension_numbers = #tpu.dot_dimension_numbers<[1], [1], [0], [0], [0, 0, 1, 0], [], []>} : vector<68x16xf32>, vector<68x16xf32>, vector<68x68xf32> -> vector<68x68xf32>
    %cst_32 = arith.constant 2.500000e-01 : f32
    %45 = vector.broadcast %cst_32 : f32 to vector<68x68xf32>
    %46 = arith.mulf %44, %45 : vector<68x68xf32>
    %47 = arith.addf %46, %0 : vector<68x68xf32>
    %cst_33 = arith.constant dense<0xFF800000> : vector<68xf32>
    %48 = vector.multi_reduction <maximumf>, %47, %cst_33 [1] : vector<68x68xf32> to vector<68xf32>
    %49 = vector.shape_cast %48 : vector<68xf32> to vector<68x1xf32>
    %50 = vector.broadcast %49 : vector<68x1xf32> to vector<68x68xf32>
    %51 = arith.subf %47, %50 : vector<68x68xf32>
    %52 = math.exp %51 : vector<68x68xf32>
    %cst_34 = arith.constant dense<0.000000e+00> : vector<68xf32>
    %53 = vector.multi_reduction <add>, %52, %cst_34 [1] : vector<68x68xf32> to vector<68xf32>
    %54 = vector.shape_cast %53 : vector<68xf32> to vector<68x1xf32>
    %55 = tpu.reciprocal %54 {approx = true} : vector<68x1xf32> -> vector<68x1xf32>
    %56 = vector.broadcast %55 : vector<68x1xf32> to vector<68x68xf32>
    %57 = arith.mulf %52, %56 : vector<68x68xf32>
    %cst_35 = arith.constant dense<0.000000e+00> : vector<68x16xf32>
    %58 = tpu.matmul %57, %43, %cst_35 {dimension_numbers = #tpu.dot_dimension_numbers<[1], [0], [0], [1], [0, 0, 1, 1], [], []>} : vector<68x68xf32>, vector<68x16xf32>, vector<68x16xf32> -> vector<68x16xf32>
    %59 = vector.extract_strided_slice %38 {offsets = [0, 0], sizes = [16, 32], strides = [1, 1]} : vector<32x32xf32> to vector<16x32xf32>
    %cst_36 = arith.constant dense<0.000000e+00> : vector<68x32xf32>
    %60 = tpu.matmul %58, %59, %cst_36 {dimension_numbers = #tpu.dot_dimension_numbers<[1], [0], [0], [1], [0, 0, 1, 1], [], []>} : vector<68x16xf32>, vector<16x32xf32>, vector<68x32xf32> -> vector<68x32xf32>
    %61 = vector.broadcast %40 : vector<1x32xf32> to vector<68x32xf32>
    %62 = arith.addf %61, %60 : vector<68x32xf32>
    %63 = vector.extract_strided_slice %36 {offsets = [0, 16], sizes = [68, 16], strides = [1, 1]} : vector<68x96xf32> to vector<68x16xf32>
    %64 = vector.extract_strided_slice %36 {offsets = [0, 48], sizes = [68, 16], strides = [1, 1]} : vector<68x96xf32> to vector<68x16xf32>
    %65 = vector.extract_strided_slice %36 {offsets = [0, 80], sizes = [68, 16], strides = [1, 1]} : vector<68x96xf32> to vector<68x16xf32>
    %cst_37 = arith.constant dense<0.000000e+00> : vector<68x68xf32>
    %66 = tpu.matmul %63, %64, %cst_37 {dimension_numbers = #tpu.dot_dimension_numbers<[1], [1], [0], [0], [0, 0, 1, 0], [], []>} : vector<68x16xf32>, vector<68x16xf32>, vector<68x68xf32> -> vector<68x68xf32>
    %cst_38 = arith.constant 2.500000e-01 : f32
    %67 = vector.broadcast %cst_38 : f32 to vector<68x68xf32>
    %68 = arith.mulf %66, %67 : vector<68x68xf32>
    %69 = arith.addf %68, %0 : vector<68x68xf32>
    %cst_39 = arith.constant dense<0xFF800000> : vector<68xf32>
    %70 = vector.multi_reduction <maximumf>, %69, %cst_39 [1] : vector<68x68xf32> to vector<68xf32>
    %71 = vector.shape_cast %70 : vector<68xf32> to vector<68x1xf32>
    %72 = vector.broadcast %71 : vector<68x1xf32> to vector<68x68xf32>
    %73 = arith.subf %69, %72 : vector<68x68xf32>
    %74 = math.exp %73 : vector<68x68xf32>
    %cst_40 = arith.constant dense<0.000000e+00> : vector<68xf32>
    %75 = vector.multi_reduction <add>, %74, %cst_40 [1] : vector<68x68xf32> to vector<68xf32>
    %76 = vector.shape_cast %75 : vector<68xf32> to vector<68x1xf32>
    %77 = tpu.reciprocal %76 {approx = true} : vector<68x1xf32> -> vector<68x1xf32>
    %78 = vector.broadcast %77 : vector<68x1xf32> to vector<68x68xf32>
    %79 = arith.mulf %74, %78 : vector<68x68xf32>
    %cst_41 = arith.constant dense<0.000000e+00> : vector<68x16xf32>
    %80 = tpu.matmul %79, %65, %cst_41 {dimension_numbers = #tpu.dot_dimension_numbers<[1], [0], [0], [1], [0, 0, 1, 1], [], []>} : vector<68x68xf32>, vector<68x16xf32>, vector<68x16xf32> -> vector<68x16xf32>
    %81 = vector.extract_strided_slice %38 {offsets = [16, 0], sizes = [16, 32], strides = [1, 1]} : vector<32x32xf32> to vector<16x32xf32>
    %cst_42 = arith.constant dense<0.000000e+00> : vector<68x32xf32>
    %82 = tpu.matmul %80, %81, %cst_42 {dimension_numbers = #tpu.dot_dimension_numbers<[1], [0], [0], [1], [0, 0, 1, 1], [], []>} : vector<68x16xf32>, vector<16x32xf32>, vector<68x32xf32> -> vector<68x32xf32>
    %83 = arith.addf %62, %82 : vector<68x32xf32>
    %84 = arith.addf %5, %83 : vector<68x32xf32>
    %c0_43 = arith.constant 0 : index
    %c0_44 = arith.constant 0 : index
    %c0_45 = arith.constant 0 : index
    %85 = vector.load %arg12[%c0_43, %c0_44, %c0_45] : memref<2x1x32xf32, #tpu.memory_space<vmem>>, vector<1x1x32xf32>
    %86 = vector.shape_cast %85 : vector<1x1x32xf32> to vector<1x32xf32>
    %c0_46 = arith.constant 0 : index
    %c0_47 = arith.constant 0 : index
    %c0_48 = arith.constant 0 : index
    %87 = vector.load %arg13[%c0_46, %c0_47, %c0_48] : memref<2x1x32xf32, #tpu.memory_space<vmem>>, vector<1x1x32xf32>
    %88 = vector.shape_cast %87 : vector<1x1x32xf32> to vector<1x32xf32>
    %cst_49 = arith.constant dense<0.000000e+00> : vector<68xf32>
    %89 = vector.multi_reduction <add>, %84, %cst_49 [1] : vector<68x32xf32> to vector<68xf32>
    %90 = vector.shape_cast %89 : vector<68xf32> to vector<68x1xf32>
    %cst_50 = arith.constant 3.200000e+01 : f32
    %91 = vector.broadcast %cst_50 : f32 to vector<68x1xf32>
    %92 = arith.divf %90, %91 : vector<68x1xf32>
    %93 = vector.broadcast %92 : vector<68x1xf32> to vector<68x32xf32>
    %94 = arith.subf %84, %93 : vector<68x32xf32>
    %95 = arith.mulf %94, %94 : vector<68x32xf32>
    %cst_51 = arith.constant dense<0.000000e+00> : vector<68xf32>
    %96 = vector.multi_reduction <add>, %95, %cst_51 [1] : vector<68x32xf32> to vector<68xf32>
    %97 = vector.shape_cast %96 : vector<68xf32> to vector<68x1xf32>
    %cst_52 = arith.constant 3.200000e+01 : f32
    %98 = vector.broadcast %cst_52 : f32 to vector<68x1xf32>
    %99 = arith.divf %97, %98 : vector<68x1xf32>
    %cst_53 = arith.constant 9.99999996E-13 : f32
    %100 = vector.broadcast %cst_53 : f32 to vector<68x1xf32>
    %101 = arith.addf %99, %100 : vector<68x1xf32>
    %102 = math.rsqrt %101 : vector<68x1xf32>
    %103 = vector.broadcast %102 : vector<68x1xf32> to vector<68x32xf32>
    %104 = arith.mulf %94, %103 : vector<68x32xf32>
    %105 = vector.broadcast %86 : vector<1x32xf32> to vector<68x32xf32>
    %106 = arith.mulf %104, %105 : vector<68x32xf32>
    %107 = vector.broadcast %88 : vector<1x32xf32> to vector<68x32xf32>
    %108 = arith.addf %106, %107 : vector<68x32xf32>
    %c0_54 = arith.constant 0 : index
    %c0_55 = arith.constant 0 : index
    %c0_56 = arith.constant 0 : index
    %109 = vector.load %arg14[%c0_54, %c0_55, %c0_56] : memref<2x32x64xf32, #tpu.memory_space<vmem>>, vector<1x32x64xf32>
    %110 = vector.shape_cast %109 : vector<1x32x64xf32> to vector<32x64xf32>
    %cst_57 = arith.constant dense<0.000000e+00> : vector<68x64xf32>
    %111 = tpu.matmul %108, %110, %cst_57 {dimension_numbers = #tpu.dot_dimension_numbers<[1], [0], [0], [1], [0, 0, 1, 1], [], []>} : vector<68x32xf32>, vector<32x64xf32>, vector<68x64xf32> -> vector<68x64xf32>
    %c0_58 = arith.constant 0 : index
    %c0_59 = arith.constant 0 : index
    %c0_60 = arith.constant 0 : index
    %112 = vector.load %arg15[%c0_58, %c0_59, %c0_60] : memref<2x1x64xf32, #tpu.memory_space<vmem>>, vector<1x1x64xf32>
    %113 = vector.shape_cast %112 : vector<1x1x64xf32> to vector<1x64xf32>
    %114 = vector.broadcast %113 : vector<1x64xf32> to vector<68x64xf32>
    %115 = arith.addf %111, %114 : vector<68x64xf32>
    %cst_61 = arith.constant 5.000000e-01 : f32
    %116 = vector.broadcast %cst_61 : f32 to vector<68x64xf32>
    %117 = arith.mulf %116, %115 : vector<68x64xf32>
    %cst_62 = arith.constant 4.471500e-02 : f32
    %118 = vector.broadcast %cst_62 : f32 to vector<68x64xf32>
    %119 = arith.mulf %118, %115 : vector<68x64xf32>
    %120 = arith.mulf %119, %115 : vector<68x64xf32>
    %121 = arith.mulf %120, %115 : vector<68x64xf32>
    %122 = arith.addf %115, %121 : vector<68x64xf32>
    %cst_63 = arith.constant 0.797884583 : f32
    %123 = vector.broadcast %cst_63 : f32 to vector<68x64xf32>
    %124 = arith.mulf %123, %122 : vector<68x64xf32>
    %125 = math.tanh %124 : vector<68x64xf32>
    %cst_64 = arith.constant 1.000000e+00 : f32
    %126 = vector.broadcast %cst_64 : f32 to vector<68x64xf32>
    %127 = arith.addf %126, %125 : vector<68x64xf32>
    %128 = arith.mulf %117, %127 : vector<68x64xf32>
    %c0_65 = arith.constant 0 : index
    %c0_66 = arith.constant 0 : index
    %c0_67 = arith.constant 0 : index
    %129 = vector.load %arg16[%c0_65, %c0_66, %c0_67] : memref<2x64x32xf32, #tpu.memory_space<vmem>>, vector<1x64x32xf32>
    %130 = vector.shape_cast %129 : vector<1x64x32xf32> to vector<64x32xf32>
    %cst_68 = arith.constant dense<0.000000e+00> : vector<68x32xf32>
    %131 = tpu.matmul %128, %130, %cst_68 {dimension_numbers = #tpu.dot_dimension_numbers<[1], [0], [0], [1], [0, 0, 1, 1], [], []>} : vector<68x64xf32>, vector<64x32xf32>, vector<68x32xf32> -> vector<68x32xf32>
    %c0_69 = arith.constant 0 : index
    %c0_70 = arith.constant 0 : index
    %c0_71 = arith.constant 0 : index
    %132 = vector.load %arg17[%c0_69, %c0_70, %c0_71] : memref<2x1x32xf32, #tpu.memory_space<vmem>>, vector<1x1x32xf32>
    %133 = vector.shape_cast %132 : vector<1x1x32xf32> to vector<1x32xf32>
    %134 = vector.broadcast %133 : vector<1x32xf32> to vector<68x32xf32>
    %135 = arith.addf %131, %134 : vector<68x32xf32>
    %136 = arith.addf %84, %135 : vector<68x32xf32>
    %c1 = arith.constant 1 : index
    %c0_72 = arith.constant 0 : index
    %c0_73 = arith.constant 0 : index
    %137 = vector.load %arg6[%c1, %c0_72, %c0_73] : memref<2x1x32xf32, #tpu.memory_space<vmem>>, vector<1x1x32xf32>
    %138 = vector.shape_cast %137 : vector<1x1x32xf32> to vector<1x32xf32>
    %c1_74 = arith.constant 1 : index
    %c0_75 = arith.constant 0 : index
    %c0_76 = arith.constant 0 : index
    %139 = vector.load %arg7[%c1_74, %c0_75, %c0_76] : memref<2x1x32xf32, #tpu.memory_space<vmem>>, vector<1x1x32xf32>
    %140 = vector.shape_cast %139 : vector<1x1x32xf32> to vector<1x32xf32>
    %cst_77 = arith.constant dense<0.000000e+00> : vector<68xf32>
    %141 = vector.multi_reduction <add>, %136, %cst_77 [1] : vector<68x32xf32> to vector<68xf32>
    %142 = vector.shape_cast %141 : vector<68xf32> to vector<68x1xf32>
    %cst_78 = arith.constant 3.200000e+01 : f32
    %143 = vector.broadcast %cst_78 : f32 to vector<68x1xf32>
    %144 = arith.divf %142, %143 : vector<68x1xf32>
    %145 = vector.broadcast %144 : vector<68x1xf32> to vector<68x32xf32>
    %146 = arith.subf %136, %145 : vector<68x32xf32>
    %147 = arith.mulf %146, %146 : vector<68x32xf32>
    %cst_79 = arith.constant dense<0.000000e+00> : vector<68xf32>
    %148 = vector.multi_reduction <add>, %147, %cst_79 [1] : vector<68x32xf32> to vector<68xf32>
    %149 = vector.shape_cast %148 : vector<68xf32> to vector<68x1xf32>
    %cst_80 = arith.constant 3.200000e+01 : f32
    %150 = vector.broadcast %cst_80 : f32 to vector<68x1xf32>
    %151 = arith.divf %149, %150 : vector<68x1xf32>
    %cst_81 = arith.constant 9.99999996E-13 : f32
    %152 = vector.broadcast %cst_81 : f32 to vector<68x1xf32>
    %153 = arith.addf %151, %152 : vector<68x1xf32>
    %154 = math.rsqrt %153 : vector<68x1xf32>
    %155 = vector.broadcast %154 : vector<68x1xf32> to vector<68x32xf32>
    %156 = arith.mulf %146, %155 : vector<68x32xf32>
    %157 = vector.broadcast %138 : vector<1x32xf32> to vector<68x32xf32>
    %158 = arith.mulf %156, %157 : vector<68x32xf32>
    %159 = vector.broadcast %140 : vector<1x32xf32> to vector<68x32xf32>
    %160 = arith.addf %158, %159 : vector<68x32xf32>
    %c1_82 = arith.constant 1 : index
    %c0_83 = arith.constant 0 : index
    %c0_84 = arith.constant 0 : index
    %161 = vector.load %arg8[%c1_82, %c0_83, %c0_84] : memref<2x32x96xf32, #tpu.memory_space<vmem>>, vector<1x32x96xf32>
    %162 = vector.shape_cast %161 : vector<1x32x96xf32> to vector<32x96xf32>
    %cst_85 = arith.constant dense<0.000000e+00> : vector<68x96xf32>
    %163 = tpu.matmul %160, %162, %cst_85 {dimension_numbers = #tpu.dot_dimension_numbers<[1], [0], [0], [1], [0, 0, 1, 1], [], []>} : vector<68x32xf32>, vector<32x96xf32>, vector<68x96xf32> -> vector<68x96xf32>
    %c1_86 = arith.constant 1 : index
    %c0_87 = arith.constant 0 : index
    %c0_88 = arith.constant 0 : index
    %164 = vector.load %arg9[%c1_86, %c0_87, %c0_88] : memref<2x1x96xf32, #tpu.memory_space<vmem>>, vector<1x1x96xf32>
    %165 = vector.shape_cast %164 : vector<1x1x96xf32> to vector<1x96xf32>
    %166 = vector.broadcast %165 : vector<1x96xf32> to vector<68x96xf32>
    %167 = arith.addf %163, %166 : vector<68x96xf32>
    %c1_89 = arith.constant 1 : index
    %c0_90 = arith.constant 0 : index
    %c0_91 = arith.constant 0 : index
    %168 = vector.load %arg10[%c1_89, %c0_90, %c0_91] : memref<2x32x32xf32, #tpu.memory_space<vmem>>, vector<1x32x32xf32>
    %169 = vector.shape_cast %168 : vector<1x32x32xf32> to vector<32x32xf32>
    %c1_92 = arith.constant 1 : index
    %c0_93 = arith.constant 0 : index
    %c0_94 = arith.constant 0 : index
    %170 = vector.load %arg11[%c1_92, %c0_93, %c0_94] : memref<2x1x32xf32, #tpu.memory_space<vmem>>, vector<1x1x32xf32>
    %171 = vector.shape_cast %170 : vector<1x1x32xf32> to vector<1x32xf32>
    %172 = vector.extract_strided_slice %167 {offsets = [0, 0], sizes = [68, 16], strides = [1, 1]} : vector<68x96xf32> to vector<68x16xf32>
    %173 = vector.extract_strided_slice %167 {offsets = [0, 32], sizes = [68, 16], strides = [1, 1]} : vector<68x96xf32> to vector<68x16xf32>
    %174 = vector.extract_strided_slice %167 {offsets = [0, 64], sizes = [68, 16], strides = [1, 1]} : vector<68x96xf32> to vector<68x16xf32>
    %cst_95 = arith.constant dense<0.000000e+00> : vector<68x68xf32>
    %175 = tpu.matmul %172, %173, %cst_95 {dimension_numbers = #tpu.dot_dimension_numbers<[1], [1], [0], [0], [0, 0, 1, 0], [], []>} : vector<68x16xf32>, vector<68x16xf32>, vector<68x68xf32> -> vector<68x68xf32>
    %cst_96 = arith.constant 2.500000e-01 : f32
    %176 = vector.broadcast %cst_96 : f32 to vector<68x68xf32>
    %177 = arith.mulf %175, %176 : vector<68x68xf32>
    %178 = arith.addf %177, %0 : vector<68x68xf32>
    %cst_97 = arith.constant dense<0xFF800000> : vector<68xf32>
    %179 = vector.multi_reduction <maximumf>, %178, %cst_97 [1] : vector<68x68xf32> to vector<68xf32>
    %180 = vector.shape_cast %179 : vector<68xf32> to vector<68x1xf32>
    %181 = vector.broadcast %180 : vector<68x1xf32> to vector<68x68xf32>
    %182 = arith.subf %178, %181 : vector<68x68xf32>
    %183 = math.exp %182 : vector<68x68xf32>
    %cst_98 = arith.constant dense<0.000000e+00> : vector<68xf32>
    %184 = vector.multi_reduction <add>, %183, %cst_98 [1] : vector<68x68xf32> to vector<68xf32>
    %185 = vector.shape_cast %184 : vector<68xf32> to vector<68x1xf32>
    %186 = tpu.reciprocal %185 {approx = true} : vector<68x1xf32> -> vector<68x1xf32>
    %187 = vector.broadcast %186 : vector<68x1xf32> to vector<68x68xf32>
    %188 = arith.mulf %183, %187 : vector<68x68xf32>
    %cst_99 = arith.constant dense<0.000000e+00> : vector<68x16xf32>
    %189 = tpu.matmul %188, %174, %cst_99 {dimension_numbers = #tpu.dot_dimension_numbers<[1], [0], [0], [1], [0, 0, 1, 1], [], []>} : vector<68x68xf32>, vector<68x16xf32>, vector<68x16xf32> -> vector<68x16xf32>
    %190 = vector.extract_strided_slice %169 {offsets = [0, 0], sizes = [16, 32], strides = [1, 1]} : vector<32x32xf32> to vector<16x32xf32>
    %cst_100 = arith.constant dense<0.000000e+00> : vector<68x32xf32>
    %191 = tpu.matmul %189, %190, %cst_100 {dimension_numbers = #tpu.dot_dimension_numbers<[1], [0], [0], [1], [0, 0, 1, 1], [], []>} : vector<68x16xf32>, vector<16x32xf32>, vector<68x32xf32> -> vector<68x32xf32>
    %192 = vector.broadcast %171 : vector<1x32xf32> to vector<68x32xf32>
    %193 = arith.addf %192, %191 : vector<68x32xf32>
    %194 = vector.extract_strided_slice %167 {offsets = [0, 16], sizes = [68, 16], strides = [1, 1]} : vector<68x96xf32> to vector<68x16xf32>
    %195 = vector.extract_strided_slice %167 {offsets = [0, 48], sizes = [68, 16], strides = [1, 1]} : vector<68x96xf32> to vector<68x16xf32>
    %196 = vector.extract_strided_slice %167 {offsets = [0, 80], sizes = [68, 16], strides = [1, 1]} : vector<68x96xf32> to vector<68x16xf32>
    %cst_101 = arith.constant dense<0.000000e+00> : vector<68x68xf32>
    %197 = tpu.matmul %194, %195, %cst_101 {dimension_numbers = #tpu.dot_dimension_numbers<[1], [1], [0], [0], [0, 0, 1, 0], [], []>} : vector<68x16xf32>, vector<68x16xf32>, vector<68x68xf32> -> vector<68x68xf32>
    %cst_102 = arith.constant 2.500000e-01 : f32
    %198 = vector.broadcast %cst_102 : f32 to vector<68x68xf32>
    %199 = arith.mulf %197, %198 : vector<68x68xf32>
    %200 = arith.addf %199, %0 : vector<68x68xf32>
    %cst_103 = arith.constant dense<0xFF800000> : vector<68xf32>
    %201 = vector.multi_reduction <maximumf>, %200, %cst_103 [1] : vector<68x68xf32> to vector<68xf32>
    %202 = vector.shape_cast %201 : vector<68xf32> to vector<68x1xf32>
    %203 = vector.broadcast %202 : vector<68x1xf32> to vector<68x68xf32>
    %204 = arith.subf %200, %203 : vector<68x68xf32>
    %205 = math.exp %204 : vector<68x68xf32>
    %cst_104 = arith.constant dense<0.000000e+00> : vector<68xf32>
    %206 = vector.multi_reduction <add>, %205, %cst_104 [1] : vector<68x68xf32> to vector<68xf32>
    %207 = vector.shape_cast %206 : vector<68xf32> to vector<68x1xf32>
    %208 = tpu.reciprocal %207 {approx = true} : vector<68x1xf32> -> vector<68x1xf32>
    %209 = vector.broadcast %208 : vector<68x1xf32> to vector<68x68xf32>
    %210 = arith.mulf %205, %209 : vector<68x68xf32>
    %cst_105 = arith.constant dense<0.000000e+00> : vector<68x16xf32>
    %211 = tpu.matmul %210, %196, %cst_105 {dimension_numbers = #tpu.dot_dimension_numbers<[1], [0], [0], [1], [0, 0, 1, 1], [], []>} : vector<68x68xf32>, vector<68x16xf32>, vector<68x16xf32> -> vector<68x16xf32>
    %212 = vector.extract_strided_slice %169 {offsets = [16, 0], sizes = [16, 32], strides = [1, 1]} : vector<32x32xf32> to vector<16x32xf32>
    %cst_106 = arith.constant dense<0.000000e+00> : vector<68x32xf32>
    %213 = tpu.matmul %211, %212, %cst_106 {dimension_numbers = #tpu.dot_dimension_numbers<[1], [0], [0], [1], [0, 0, 1, 1], [], []>} : vector<68x16xf32>, vector<16x32xf32>, vector<68x32xf32> -> vector<68x32xf32>
    %214 = arith.addf %193, %213 : vector<68x32xf32>
    %215 = arith.addf %136, %214 : vector<68x32xf32>
    %c1_107 = arith.constant 1 : index
    %c0_108 = arith.constant 0 : index
    %c0_109 = arith.constant 0 : index
    %216 = vector.load %arg12[%c1_107, %c0_108, %c0_109] : memref<2x1x32xf32, #tpu.memory_space<vmem>>, vector<1x1x32xf32>
    %217 = vector.shape_cast %216 : vector<1x1x32xf32> to vector<1x32xf32>
    %c1_110 = arith.constant 1 : index
    %c0_111 = arith.constant 0 : index
    %c0_112 = arith.constant 0 : index
    %218 = vector.load %arg13[%c1_110, %c0_111, %c0_112] : memref<2x1x32xf32, #tpu.memory_space<vmem>>, vector<1x1x32xf32>
    %219 = vector.shape_cast %218 : vector<1x1x32xf32> to vector<1x32xf32>
    %cst_113 = arith.constant dense<0.000000e+00> : vector<68xf32>
    %220 = vector.multi_reduction <add>, %215, %cst_113 [1] : vector<68x32xf32> to vector<68xf32>
    %221 = vector.shape_cast %220 : vector<68xf32> to vector<68x1xf32>
    %cst_114 = arith.constant 3.200000e+01 : f32
    %222 = vector.broadcast %cst_114 : f32 to vector<68x1xf32>
    %223 = arith.divf %221, %222 : vector<68x1xf32>
    %224 = vector.broadcast %223 : vector<68x1xf32> to vector<68x32xf32>
    %225 = arith.subf %215, %224 : vector<68x32xf32>
    %226 = arith.mulf %225, %225 : vector<68x32xf32>
    %cst_115 = arith.constant dense<0.000000e+00> : vector<68xf32>
    %227 = vector.multi_reduction <add>, %226, %cst_115 [1] : vector<68x32xf32> to vector<68xf32>
    %228 = vector.shape_cast %227 : vector<68xf32> to vector<68x1xf32>
    %cst_116 = arith.constant 3.200000e+01 : f32
    %229 = vector.broadcast %cst_116 : f32 to vector<68x1xf32>
    %230 = arith.divf %228, %229 : vector<68x1xf32>
    %cst_117 = arith.constant 9.99999996E-13 : f32
    %231 = vector.broadcast %cst_117 : f32 to vector<68x1xf32>
    %232 = arith.addf %230, %231 : vector<68x1xf32>
    %233 = math.rsqrt %232 : vector<68x1xf32>
    %234 = vector.broadcast %233 : vector<68x1xf32> to vector<68x32xf32>
    %235 = arith.mulf %225, %234 : vector<68x32xf32>
    %236 = vector.broadcast %217 : vector<1x32xf32> to vector<68x32xf32>
    %237 = arith.mulf %235, %236 : vector<68x32xf32>
    %238 = vector.broadcast %219 : vector<1x32xf32> to vector<68x32xf32>
    %239 = arith.addf %237, %238 : vector<68x32xf32>
    %c1_118 = arith.constant 1 : index
    %c0_119 = arith.constant 0 : index
    %c0_120 = arith.constant 0 : index
    %240 = vector.load %arg14[%c1_118, %c0_119, %c0_120] : memref<2x32x64xf32, #tpu.memory_space<vmem>>, vector<1x32x64xf32>
    %241 = vector.shape_cast %240 : vector<1x32x64xf32> to vector<32x64xf32>
    %cst_121 = arith.constant dense<0.000000e+00> : vector<68x64xf32>
    %242 = tpu.matmul %239, %241, %cst_121 {dimension_numbers = #tpu.dot_dimension_numbers<[1], [0], [0], [1], [0, 0, 1, 1], [], []>} : vector<68x32xf32>, vector<32x64xf32>, vector<68x64xf32> -> vector<68x64xf32>
    %c1_122 = arith.constant 1 : index
    %c0_123 = arith.constant 0 : index
    %c0_124 = arith.constant 0 : index
    %243 = vector.load %arg15[%c1_122, %c0_123, %c0_124] : memref<2x1x64xf32, #tpu.memory_space<vmem>>, vector<1x1x64xf32>
    %244 = vector.shape_cast %243 : vector<1x1x64xf32> to vector<1x64xf32>
    %245 = vector.broadcast %244 : vector<1x64xf32> to vector<68x64xf32>
    %246 = arith.addf %242, %245 : vector<68x64xf32>
    %cst_125 = arith.constant 5.000000e-01 : f32
    %247 = vector.broadcast %cst_125 : f32 to vector<68x64xf32>
    %248 = arith.mulf %247, %246 : vector<68x64xf32>
    %cst_126 = arith.constant 4.471500e-02 : f32
    %249 = vector.broadcast %cst_126 : f32 to vector<68x64xf32>
    %250 = arith.mulf %249, %246 : vector<68x64xf32>
    %251 = arith.mulf %250, %246 : vector<68x64xf32>
    %252 = arith.mulf %251, %246 : vector<68x64xf32>
    %253 = arith.addf %246, %252 : vector<68x64xf32>
    %cst_127 = arith.constant 0.797884583 : f32
    %254 = vector.broadcast %cst_127 : f32 to vector<68x64xf32>
    %255 = arith.mulf %254, %253 : vector<68x64xf32>
    %256 = math.tanh %255 : vector<68x64xf32>
    %cst_128 = arith.constant 1.000000e+00 : f32
    %257 = vector.broadcast %cst_128 : f32 to vector<68x64xf32>
    %258 = arith.addf %257, %256 : vector<68x64xf32>
    %259 = arith.mulf %248, %258 : vector<68x64xf32>
    %c1_129 = arith.constant 1 : index
    %c0_130 = arith.constant 0 : index
    %c0_131 = arith.constant 0 : index
    %260 = vector.load %arg16[%c1_129, %c0_130, %c0_131] : memref<2x64x32xf32, #tpu.memory_space<vmem>>, vector<1x64x32xf32>
    %261 = vector.shape_cast %260 : vector<1x64x32xf32> to vector<64x32xf32>
    %cst_132 = arith.constant dense<0.000000e+00> : vector<68x32xf32>
    %262 = tpu.matmul %259, %261, %cst_132 {dimension_numbers = #tpu.dot_dimension_numbers<[1], [0], [0], [1], [0, 0, 1, 1], [], []>} : vector<68x64xf32>, vector<64x32xf32>, vector<68x32xf32> -> vector<68x32xf32>
    %c1_133 = arith.constant 1 : index
    %c0_134 = arith.constant 0 : index
    %c0_135 = arith.constant 0 : index
    %263 = vector.load %arg17[%c1_133, %c0_134, %c0_135] : memref<2x1x32xf32, #tpu.memory_space<vmem>>, vector<1x1x32xf32>
    %264 = vector.shape_cast %263 : vector<1x1x32xf32> to vector<1x32xf32>
    %265 = vector.broadcast %264 : vector<1x32xf32> to vector<68x32xf32>
    %266 = arith.addf %262, %265 : vector<68x32xf32>
    %267 = arith.addf %215, %266 : vector<68x32xf32>
    %c0_136 = arith.constant 0 : index
    %c0_137 = arith.constant 0 : index
    %268 = vector.load %arg18[%c0_136, %c0_137] : memref<1x32xf32, #tpu.memory_space<vmem>>, vector<1x32xf32>
    %c0_138 = arith.constant 0 : index
    %c0_139 = arith.constant 0 : index
    %269 = vector.load %arg19[%c0_138, %c0_139] : memref<1x32xf32, #tpu.memory_space<vmem>>, vector<1x32xf32>
    %cst_140 = arith.constant dense<0.000000e+00> : vector<68xf32>
    %270 = vector.multi_reduction <add>, %267, %cst_140 [1] : vector<68x32xf32> to vector<68xf32>
    %271 = vector.shape_cast %270 : vector<68xf32> to vector<68x1xf32>
    %cst_141 = arith.constant 3.200000e+01 : f32
    %272 = vector.broadcast %cst_141 : f32 to vector<68x1xf32>
    %273 = arith.divf %271, %272 : vector<68x1xf32>
    %274 = vector.broadcast %273 : vector<68x1xf32> to vector<68x32xf32>
    %275 = arith.subf %267, %274 : vector<68x32xf32>
    %276 = arith.mulf %275, %275 : vector<68x32xf32>
    %cst_142 = arith.constant dense<0.000000e+00> : vector<68xf32>
    %277 = vector.multi_reduction <add>, %276, %cst_142 [1] : vector<68x32xf32> to vector<68xf32>
    %278 = vector.shape_cast %277 : vector<68xf32> to vector<68x1xf32>
    %cst_143 = arith.constant 3.200000e+01 : f32
    %279 = vector.broadcast %cst_143 : f32 to vector<68x1xf32>
    %280 = arith.divf %278, %279 : vector<68x1xf32>
    %cst_144 = arith.constant 9.99999996E-13 : f32
    %281 = vector.broadcast %cst_144 : f32 to vector<68x1xf32>
    %282 = arith.addf %280, %281 : vector<68x1xf32>
    %283 = math.rsqrt %282 : vector<68x1xf32>
    %284 = vector.broadcast %283 : vector<68x1xf32> to vector<68x32xf32>
    %285 = arith.mulf %275, %284 : vector<68x32xf32>
    %286 = vector.broadcast %268 : vector<1x32xf32> to vector<68x32xf32>
    %287 = arith.mulf %285, %286 : vector<68x32xf32>
    %288 = vector.broadcast %269 : vector<1x32xf32> to vector<68x32xf32>
    %289 = arith.addf %287, %288 : vector<68x32xf32>
    %c0_145 = arith.constant 0 : index
    %c0_146 = arith.constant 0 : index
    %290 = vector.load %arg5[%c0_145, %c0_146] : memref<4x68xf32, #tpu.memory_space<vmem>>, vector<4x68xf32>
    %cst_147 = arith.constant dense<0.000000e+00> : vector<4x32xf32>
    %291 = tpu.matmul %290, %289, %cst_147 {dimension_numbers = #tpu.dot_dimension_numbers<[1], [0], [0], [1], [0, 0, 1, 1], [], []>} : vector<4x68xf32>, vector<68x32xf32>, vector<4x32xf32> -> vector<4x32xf32>
    %c0_148 = arith.constant 0 : index
    %c0_149 = arith.constant 0 : index
    %292 = vector.load %arg20[%c0_148, %c0_149] : memref<4x32xf32, #tpu.memory_space<vmem>>, vector<4x32xf32>
    tpu.vector_store %arg20[%c0_148, %c0_149], %291 {strides = array<i32>} : memref<4x32xf32, #tpu.memory_space<vmem>>, vector<4x32xf32>,
    return
  }
  func.func @transform_0(%arg0: i32) -> (i32, i32) {
    %c0_i32 = arith.constant 0 : i32
    %c0_i32_0 = arith.constant 0 : i32
    %c0_i32_1 = arith.constant 0 : i32
    return %c0_i32, %c0_i32_0 : i32, i32
  }
  func.func @transform_1(%arg0: i32) -> (i32, i32) {
    %c0_i32 = arith.constant 0 : i32
    %c0_i32_0 = arith.constant 0 : i32
    %c0_i32_1 = arith.constant 0 : i32
    return %c0_i32, %c0_i32_0 : i32, i32
  }
  func.func @transform_2(%arg0: i32) -> (i32, i32) {
    %c0_i32 = arith.constant 0 : i32
    %c0_i32_0 = arith.constant 0 : i32
    %c0_i32_1 = arith.constant 0 : i32
    return %c0_i32, %c0_i32_0 : i32, i32
  }
  func.func @transform_3(%arg0: i32) -> (i32, i32) {
    %c0_i32 = arith.constant 0 : i32
    %c0_i32_0 = arith.constant 0 : i32
    %c0_i32_1 = arith.constant 0 : i32
    return %c0_i32, %c0_i32_0 : i32, i32
  }
  func.func @transform_4(%arg0: i32) -> (i32, i32) {
    %c0_i32 = arith.constant 0 : i32
    %c0_i32_0 = arith.constant 0 : i32
    %c0_i32_1 = arith.constant 0 : i32
    return %c0_i32, %c0_i32_0 : i32, i32
  }
  func.func @transform_5(%arg0: i32) -> (i32, i32, i32) {
    %c0_i32 = arith.constant 0 : i32
    %c0_i32_0 = arith.constant 0 : i32
    %c0_i32_1 = arith.constant 0 : i32
    %c0_i32_2 = arith.constant 0 : i32
    return %c0_i32, %c0_i32_0, %c0_i32_1 : i32, i32, i32
  }
  func.func @transform_6(%arg0: i32) -> (i32, i32, i32) {
    %c0_i32 = arith.constant 0 : i32
    %c0_i32_0 = arith.constant 0 : i32
    %c0_i32_1 = arith.constant 0 : i32
    %c0_i32_2 = arith.constant 0 : i32
    return %c0_i32, %c0_i32_0, %c0_i32_1 : i32, i32, i32
  }
  func.func @transform_7(%arg0: i32) -> (i32, i32, i32) {
    %c0_i32 = arith.constant 0 : i32
    %c0_i32_0 = arith.constant 0 : i32
    %c0_i32_1 = arith.constant 0 : i32
    %c0_i32_2 = arith.constant 0 : i32
    return %c0_i32, %c0_i32_0, %c0_i32_1 : i32, i32, i32
  }
  func.func @transform_8(%arg0: i32) -> (i32, i32, i32) {
    %c0_i32 = arith.constant 0 : i32
    %c0_i32_0 = arith.constant 0 : i32
    %c0_i32_1 = arith.constant 0 : i32
    %c0_i32_2 = arith.constant 0 : i32
    return %c0_i32, %c0_i32_0, %c0_i32_1 : i32, i32, i32
  }
  func.func @transform_9(%arg0: i32) -> (i32, i32, i32) {
    %c0_i32 = arith.constant 0 : i32
    %c0_i32_0 = arith.constant 0 : i32
    %c0_i32_1 = arith.constant 0 : i32
    %c0_i32_2 = arith.constant 0 : i32
    return %c0_i32, %c0_i32_0, %c0_i32_1 : i32, i32, i32
  }
  func.func @transform_10(%arg0: i32) -> (i32, i32, i32) {
    %c0_i32 = arith.constant 0 : i32
    %c0_i32_0 = arith.constant 0 : i32
    %c0_i32_1 = arith.constant 0 : i32
    %c0_i32_2 = arith.constant 0 : i32
    return %c0_i32, %c0_i32_0, %c0_i32_1 : i32, i32, i32
  }
  func.func @transform_11(%arg0: i32) -> (i32, i32, i32) {
    %c0_i32 = arith.constant 0 : i32
    %c0_i32_0 = arith.constant 0 : i32
    %c0_i32_1 = arith.constant 0 : i32
    %c0_i32_2 = arith.constant 0 : i32
    return %c0_i32, %c0_i32_0, %c0_i32_1 : i32, i32, i32
  }
  func.func @transform_12(%arg0: i32) -> (i32, i32, i32) {
    %c0_i32 = arith.constant 0 : i32
    %c0_i32_0 = arith.constant 0 : i32
    %c0_i32_1 = arith.constant 0 : i32
    %c0_i32_2 = arith.constant 0 : i32
    return %c0_i32, %c0_i32_0, %c0_i32_1 : i32, i32, i32
  }
  func.func @transform_13(%arg0: i32) -> (i32, i32, i32) {
    %c0_i32 = arith.constant 0 : i32
    %c0_i32_0 = arith.constant 0 : i32
    %c0_i32_1 = arith.constant 0 : i32
    %c0_i32_2 = arith.constant 0 : i32
    return %c0_i32, %c0_i32_0, %c0_i32_1 : i32, i32, i32
  }
  func.func @transform_14(%arg0: i32) -> (i32, i32, i32) {
    %c0_i32 = arith.constant 0 : i32
    %c0_i32_0 = arith.constant 0 : i32
    %c0_i32_1 = arith.constant 0 : i32
    %c0_i32_2 = arith.constant 0 : i32
    return %c0_i32, %c0_i32_0, %c0_i32_1 : i32, i32, i32
  }
  func.func @transform_15(%arg0: i32) -> (i32, i32, i32) {
    %c0_i32 = arith.constant 0 : i32
    %c0_i32_0 = arith.constant 0 : i32
    %c0_i32_1 = arith.constant 0 : i32
    %c0_i32_2 = arith.constant 0 : i32
    return %c0_i32, %c0_i32_0, %c0_i32_1 : i32, i32, i32
  }
  func.func @transform_16(%arg0: i32) -> (i32, i32, i32) {
    %c0_i32 = arith.constant 0 : i32
    %c0_i32_0 = arith.constant 0 : i32
    %c0_i32_1 = arith.constant 0 : i32
    %c0_i32_2 = arith.constant 0 : i32
    return %c0_i32, %c0_i32_0, %c0_i32_1 : i32, i32, i32
  }
  func.func @transform_17(%arg0: i32) -> (i32, i32) {
    %c0_i32 = arith.constant 0 : i32
    %c0_i32_0 = arith.constant 0 : i32
    %c0_i32_1 = arith.constant 0 : i32
    return %c0_i32, %c0_i32_0 : i32, i32
  }
  func.func @transform_18(%arg0: i32) -> (i32, i32) {
    %c0_i32 = arith.constant 0 : i32
    %c0_i32_0 = arith.constant 0 : i32
    %c0_i32_1 = arith.constant 0 : i32
    return %c0_i32, %c0_i32_0 : i32, i32
  }
  func.func @transform_19(%arg0: i32) -> (i32, i32) {
    %c0_i32 = arith.constant 0 : i32
    %c0_i32_0 = arith.constant 0 : i32
    %c0_i32_1 = arith.constant 0 : i32
    return %c0_i32, %c0_i32_0 : i32, i32
  }
}

</mosaic_0001>

<bundles_post_ra>
// kernel: tile.9
= control target key start
LH: loop header
LB: loop body
LE: loop exit
PB: predicated region body
PF: predicated region fallthrough
CT: control target
= control target key end

     0   :  { %vm163_vm0 = vcmask 1047556   ;;  %s399_s10 = smov 51   ;;  %vm165_vm1 = vcmask 138240   ;;  %s401_s21 = smov 17   ;;  %vm202_vm2 = vcmask 556440   ;;  %vm245_vm3 = vcmask 417040   ;;  %s580_s0 = inlined_call_operand.vmem [shape: f32[4,17,32], index: 0, kind: input, shape index: {}]   ;;  %s581_s1 = inlined_call_operand.vmem [shape: f32[68,32], index: 1, kind: output, shape index: {}]  }
   0x1   :  { %v377_v0 = vld [vmem:[%s580_s0 + $0x1c] sm:$0xf]  ;;  %v378_v1 = vld [vmem:[%s580_s0 + $0x18] sm:$0xf]  ;;  %v379_v2 = vld [vmem:[%s580_s0 + $0x14] sm:$0xf] }
   0x2   :  { %129 = vst [vmem:[#allocation0 + $0x38] sm:$0xf] %v377_v0  ;;  %134 = vst [vmem:[#allocation0 + $0x30] sm:$0xf] %v378_v1  ;;  %v380_v3 = vld [vmem:[%s580_s0 + $0x10] sm:$0xf] }
   0x3   :  { %139 = vst [vmem:[#allocation0 + $0x28] sm:$0xf] %v379_v2  ;;  %v381_v4 = vld [vmem:[%s580_s0 + $0xc] sm:$0xf]  ;;  %v382_v5 = vld [vmem:[%s580_s0 + $0x8] sm:$0xf] }
   0x4   :  { %144 = vst [vmem:[#allocation0 + $0x20] sm:$0xf] %v380_v3  ;;  %149 = vst [vmem:[#allocation0 + $0x18] sm:$0xf] %v381_v4  ;;  %v383_v6 = vld [vmem:[%s580_s0 + $0x4] sm:$0xf] }
   0x5   :  { %154 = vst [vmem:[#allocation0 + $0x10] sm:$0xf] %v382_v5  ;;  %v159_v7 = vld [vmem:[%s580_s0] sm:$0xf]  ;;  %158 = vst [vmem:[#allocation0 + $0x8] sm:$0xf] %v383_v6 }
   0x6   :  { %160 = vst [vmem:[#allocation0] sm:$0xf] %v159_v7  ;;  %v361_v8 = vld [vmem:[%s580_s0 + $0x5c] sm:$0xf]  ;;  %v362_v9 = vld [vmem:[%s580_s0 + $0x58] sm:$0xf] }
   0x7   :  { %v363_v10 = vld [vmem:[%s580_s0 + $0x54] sm:$0xf]  ;;  %49 = vst [vmem:[#allocation0 + $0xb8] sm:$0xf] %v361_v8  ;;  %54 = vst [vmem:[#allocation0 + $0xb0] sm:$0xf] %v362_v9 }
   0x8   :  { %59 = vst [vmem:[#allocation0 + $0xa8] sm:$0xf] %v363_v10  ;;  %v364_v11 = vld [vmem:[%s580_s0 + $0x50] sm:$0xf]  ;;  %v365_v12 = vld [vmem:[%s580_s0 + $0x4c] sm:$0xf] }
   0x9   :  { %v366_v13 = vld [vmem:[%s580_s0 + $0x48] sm:$0xf]  ;;  %64 = vst [vmem:[#allocation0 + $0xa0] sm:$0xf] %v364_v11  ;;  %69 = vst [vmem:[#allocation0 + $0x98] sm:$0xf] %v365_v12 }
   0xa   :  { %74 = vst [vmem:[#allocation0 + $0x90] sm:$0xf] %v366_v13  ;;  %v367_v14 = vld [vmem:[%s580_s0 + $0x44] sm:$0xf]  ;;  %v368_v15 = vld [vmem:[%s580_s0 + $0x40] sm:$0xf] }
   0xb   :  { %v369_v16 = vld [vmem:[%s580_s0 + $0x3c] sm:$0xf]  ;;  %79 = vst [vmem:[#allocation0 + $0x88] sm:$0xf] %v367_v14  ;;  %84 = vst [vmem:[#allocation0 + $0x80] sm:$0xf] %v368_v15 }
   0xc   :  { %89 = vst [vmem:[#allocation0 + $0x78] sm:$0xf] %v369_v16  ;;  %v370_v17 = vld [vmem:[%s580_s0 + $0x38] sm:$0xf]  ;;  %v371_v18 = vld [vmem:[%s580_s0 + $0x34] sm:$0xf] }
   0xd   :  { %v372_v19 = vld [vmem:[%s580_s0 + $0x30] sm:$0xf]  ;;  %94 = vst [vmem:[#allocation0 + $0x70] sm:$0xf] %v370_v17  ;;  %99 = vst [vmem:[#allocation0 + $0x68] sm:$0xf] %v371_v18 }
   0xe   :  { %104 = vst [vmem:[#allocation0 + $0x60] sm:$0xf] %v372_v19  ;;  %v373_v20 = vld [vmem:[%s580_s0 + $0x2c] sm:$0xf]  ;;  %v374_v21 = vld [vmem:[%s580_s0 + $0x28] sm:$0xf] }
   0xf   :  { %v375_v22 = vld [vmem:[%s580_s0 + $0x24] sm:$0xf]  ;;  %109 = vst [vmem:[#allocation0 + $0x58] sm:$0xf] %v373_v20  ;;  %114 = vst [vmem:[#allocation0 + $0x50] sm:$0xf] %v374_v21 }
  0x10   :  { %119 = vst [vmem:[#allocation0 + $0x48] sm:$0xf] %v375_v22  ;;  %v376_v23 = vld [vmem:[%s580_s0 + $0x20] sm:$0xf]  ;;  %v353_v24 = vld [vmem:[%s580_s0 + $0x7c] sm:$0xf] }
  0x11   :  { %v354_v25 = vld [vmem:[%s580_s0 + $0x78] sm:$0xf]  ;;  %124 = vst [vmem:[#allocation0 + $0x40] sm:$0xf] %v376_v23  ;;  %9 = vst [vmem:[#allocation0 + $0xf8] sm:$0xf] %v353_v24 }
  0x12   :  { %v197_v26 = vld [vmem:[#allocation0 + $0x3] ss:$8 sm:$0xf0]   ;;  %14 = vst [vmem:[#allocation0 + $0xf0] sm:$0xf] %v354_v25  ;;  %vm288_vm4 = vcmask 277640  }
  0x13   :  { %v355_v27 = vld [vmem:[%s580_s0 + $0x74] sm:$0xf]  ;;  %v195_v28 = vld [vmem:[#allocation0 + $0x3] ss:$8 sm:$0xf]  }
  0x14   :  { %19 = vst [vmem:[#allocation0 + $0xe8] sm:$0xf] %v355_v27  ;;  %v356_v29 = vld [vmem:[%s580_s0 + $0x70] sm:$0xf]  ;;  %v199_v30 = vsel %vm163_vm0, %v197_v26, %v195_v28  ;;  %v357_v31 = vld [vmem:[%s580_s0 + $0x6c] sm:$0xf] }
  0x15   :  { %24 = vst [vmem:[#allocation0 + $0xe0] sm:$0xf] %v356_v29  ;;  %v358_v32 = vld [vmem:[%s580_s0 + $0x68] sm:$0xf]  ;;  %v359_v33 = vld [vmem:[%s580_s0 + $0x64] sm:$0xf]  ;;  %200 = vrot.lane.b32.xlu0 %v199_v30, %s399_s10 }
  0x16   :  { %v218_v34 = vld [vmem:[#allocation0 + $0x83] ss:$8 sm:$0xf0]   ;;  %29 = vst [vmem:[#allocation0 + $0xd8] sm:$0xf] %v357_v31 }
  0x17   :  { %34 = vst [vmem:[#allocation0 + $0xd0] sm:$0xf] %v358_v32  ;;  %39 = vst [vmem:[#allocation0 + $0xc8] sm:$0xf] %v359_v33  ;;  %v360_v35 = vld [vmem:[%s580_s0 + $0x60] sm:$0xf] }
  0x18   :  { %v216_v36 = vld [vmem:[#allocation0 + $0x83] ss:$8 sm:$0xf]   ;;  %44 = vst [vmem:[#allocation0 + $0xc0] sm:$0xf] %v360_v35  ;;  %s400_s0 = smov 34  }
  0x19   :  { %v220_v37 = vsel %vm163_vm0, %v218_v34, %v216_v36  ;;  %v207_v38 = vld [vmem:[#allocation0 + $0x43] ss:$8 sm:$0xf0]   ;;  %v238_v39 = vld [vmem:[#allocation0 + $0x2] ss:$8 sm:$0xf]  }
  0x1a   :  { %221 = vrot.lane.b32.xlu1 %v220_v37, %s399_s10  ;;  %v205_v40 = vld [vmem:[#allocation0 + $0x43] ss:$8 sm:$0xf]   ;;  %v240_v41 = vld [vmem:[#allocation0 + $0x2] ss:$8 sm:$0xf0]  }
  0x1b   :  { %v209_v42 = vsel %vm163_vm0, %v207_v38, %v205_v40  ;;  %v250_v44 = vld [vmem:[#allocation0 + $0x42] ss:$8 sm:$0xf0]   ;;  %v242_v45 = vsel %vm163_vm0, %v240_v41, %v238_v39  ;;  %v281_v52 = vld [vmem:[#allocation0 + $0x1] ss:$8 sm:$0xf]  }
  0x1c   :  { %210 = vrot.lane.b32.xlu0 %v209_v42, %s399_s10  ;;  %v229_v43 = vld [vmem:[#allocation0 + $0xc3] ss:$8 sm:$0xf0]   ;;  %v248_v46 = vld [vmem:[#allocation0 + $0x42] ss:$8 sm:$0xf]  }
  0x1d   :  { %v259_v47 = vld [vmem:[#allocation0 + $0x82] ss:$8 sm:$0xf]   ;;  %v252_v53 = vsel %vm163_vm0, %v250_v44, %v248_v46  ;;  %v283_v55 = vld [vmem:[#allocation0 + $0x1] ss:$8 sm:$0xf0]  }
  0x1e   :  { %v261_v49 = vld [vmem:[#allocation0 + $0x82] ss:$8 sm:$0xf0]   ;;  %v161_v56 = vld [vmem:[#allocation0] ss:$8 sm:$0xf]   ;;  %v285_v4 = vsel %vm163_vm0, %v283_v55, %v281_v52 }
  0x1f   :  { %v227_v48 = vld [vmem:[#allocation0 + $0xc3] ss:$8 sm:$0xf]   ;;  %v272_v51 = vld [vmem:[#allocation0 + $0xc2] ss:$8 sm:$0xf0]   ;;  %v263_v54 = vsel %vm163_vm0, %v261_v49, %v259_v47 }
  0x20   :  { %v231_v50 = vsel %vm163_vm0, %v229_v43, %v227_v48  ;;  %243 = vrot.lane.b32.xlu0 %v242_v45, %s400_s0  ;;  %v270_v57 = vld [vmem:[#allocation0 + $0xc2] ss:$8 sm:$0xf]   ;;  %v162_v58 = vld [vmem:[#allocation0] ss:$8 sm:$0xf0]  }
  0x21   :  { %232 = vrot.lane.b32.xlu1 %v231_v50, %s399_s10  ;;  %v164_v59 = vsel %vm163_vm0, %v162_v58, %v161_v56  ;;  %v177_v60 = vld [vmem:[#allocation0 + $0x80] ss:$8 sm:$0xf]   ;;  %v291_v62 = vld [vmem:[#allocation0 + $0x41] ss:$8 sm:$0xf]   ;;  %v274_v3 = vsel %vm163_vm0, %v272_v51, %v270_v57 }
  0x22   :  { %v179_v61 = vld [vmem:[#allocation0 + $0x80] ss:$8 sm:$0xf0]   ;;  %v293_v63 = vld [vmem:[#allocation0 + $0x41] ss:$8 sm:$0xf0]  }
  0x23   :  { %166 = vst.msk [vmem:[%s581_s1] sm:$0xff] %vm165_vm1, %v164_v59   ;;  %v181_v0 = vsel %vm163_vm0, %v179_v61, %v177_v60  ;;  %v168_v1 = vld [vmem:[#allocation0 + $0x40] ss:$8 sm:$0xf]   ;;  %v295_v11 = vsel %vm163_vm0, %v293_v63, %v291_v62 }
  0x24   :  { %264 = vrot.lane.b32.xlu0 %v263_v54, %s400_s0  ;;  %v170_v2 = vld [vmem:[#allocation0 + $0x40] ss:$8 sm:$0xf0]   ;;  %385 = vst.msk [vmem:[%s581_s1 + $0x10] sm:$0xff] %vm165_vm1, %v181_v0  }
  0x25   :  { %253 = vrot.lane.b32.xlu1 %v252_v53, %s400_s0  ;;  %v172_v5 = vsel %vm163_vm0, %v170_v2, %v168_v1  ;;  %v186_v6 = vld [vmem:[#allocation0 + $0xc0] ss:$8 sm:$0xf]   ;;  %v302_v8 = vld [vmem:[#allocation0 + $0x81] ss:$8 sm:$0xf]  }
  0x26   :  { %v188_v7 = vld [vmem:[#allocation0 + $0xc0] ss:$8 sm:$0xf0]   ;;  %v304_v9 = vld [vmem:[#allocation0 + $0x81] ss:$8 sm:$0xf0]  }
  0x27   :  { %384 = vst.msk [vmem:[%s581_s1 + $0x8] sm:$0xff] %vm165_vm1, %v172_v5   ;;  %v190_v10 = vsel %vm163_vm0, %v188_v7, %v186_v6  ;;  %v306_v12 = vsel %vm163_vm0, %v304_v9, %v302_v8  ;;  %v313_v13 = vld [vmem:[#allocation0 + $0xc1] ss:$8 sm:$0xf]  }
  0x28   :  { %386 = vst.msk [vmem:[%s581_s1 + $0x18] sm:$0xff] %vm165_vm1, %v190_v10   ;;  %286 = vrot.lane.b32.xlu0 %v285_v4, %s401_s21  ;;  %v315_v14 = vld [vmem:[#allocation0 + $0xc1] ss:$8 sm:$0xf0]  }
  0x29   :  { %275 = vrot.lane.b32.xlu1 %v274_v3, %s400_s0  ;;  %v317_v15 = vsel %vm163_vm0, %v315_v14, %v313_v13 }
  0x2c   :  { %307 = vrot.lane.b32.xlu0 %v306_v12, %s401_s21 }
  0x2d   :  { %296 = vrot.lane.b32.xlu1 %v295_v11, %s401_s21 }
  0x31   :  { %318 = vrot.lane.b32.xlu1 %v317_v15, %s401_s21 }
  0x87   :  { %v201_v16 = vpop.permute.xlu0 %200  }
  0x88   :  { %203 = vst.msk [vmem:[%s581_s1] sm:$0xff] %vm202_vm2, %v201_v16  }
  0x8c   :  { %v222_v17 = vpop.permute.xlu1 %221  }
  0x8d   :  { %388 = vst.msk [vmem:[%s581_s1 + $0x10] sm:$0xff] %vm202_vm2, %v222_v17  }
  0x8e   :  { %v211_v18 = vpop.permute.xlu0 %210  }
  0x8f   :  { %387 = vst.msk [vmem:[%s581_s1 + $0x8] sm:$0xff] %vm202_vm2, %v211_v18  }
  0x92   :  { %v244_v20 = vpop.permute.xlu0 %243  }
  0x93   :  { %v233_v19 = vpop.permute.xlu1 %232   ;;  %246 = vst.msk [vmem:[%s581_s1] sm:$0xff] %vm245_vm3, %v244_v20  }
  0x94   :  { %389 = vst.msk [vmem:[%s581_s1 + $0x18] sm:$0xff] %vm202_vm2, %v233_v19  }
  0x96   :  { %v265_v22 = vpop.permute.xlu0 %264  }
  0x97   :  { %v254_v21 = vpop.permute.xlu1 %253   ;;  %391 = vst.msk [vmem:[%s581_s1 + $0x10] sm:$0xff] %vm245_vm3, %v265_v22  }
  0x98   :  { %390 = vst.msk [vmem:[%s581_s1 + $0x8] sm:$0xff] %vm245_vm3, %v254_v21  }
  0x9a   :  { %v287_v24 = vpop.permute.xlu0 %286  }
  0x9b   :  { %v276_v23 = vpop.permute.xlu1 %275   ;;  %289 = vst.msk [vmem:[%s581_s1] sm:$0xff] %vm288_vm4, %v287_v24  }
  0x9c   :  { %392 = vst.msk [vmem:[%s581_s1 + $0x18] sm:$0xff] %vm245_vm3, %v276_v23  }
  0x9e   :  { %v308_v26 = vpop.permute.xlu0 %307  }
  0x9f   :  { %v297_v25 = vpop.permute.xlu1 %296   ;;  %394 = vst.msk [vmem:[%s581_s1 + $0x10] sm:$0xff] %vm288_vm4, %v308_v26  }
  0xa0   :  { %393 = vst.msk [vmem:[%s581_s1 + $0x8] sm:$0xff] %vm288_vm4, %v297_v25  }
  0xa3   :  { %v319_v27 = vpop.permute.xlu1 %318  }
  0xa4   :  { %395 = vst.msk [vmem:[%s581_s1 + $0x18] sm:$0xff] %vm288_vm4, %v319_v27  }

// kernel: vit_forward.1
= control target key start
LH: loop header
LB: loop body
LE: loop exit
PB: predicated region body
PF: predicated region fallthrough
CT: control target
= control target key end

     0   :  { %s8701_s0 = inlined_call_operand.vmem [shape: f32[68,48], index: 0, kind: input, shape index: {}]   ;;  %s8702_s1 = inlined_call_operand.vmem [shape: f32[48,32], index: 1, kind: input, shape index: {}]   ;;  %s8703_s2 = inlined_call_operand.vmem [shape: f32[68,32], index: 2, kind: input, shape index: {}]   ;;  %s8704_s3 = inlined_call_operand.vmem [shape: f32[68,68], index: 3, kind: input, shape index: {}]   ;;  %s8705_s4 = inlined_call_operand.vmem [shape: f32[4,68], index: 4, kind: input, shape index: {}]   ;;  %s8706_s5 = inlined_call_operand.vmem [shape: f32[2,1,32], index: 5, kind: input, shape index: {}]   ;;  %s8707_s6 = inlined_call_operand.vmem [shape: f32[2,1,32], index: 6, kind: input, shape index: {}]   ;;  %s8708_s7 = inlined_call_operand.vmem [shape: f32[2,32,96], index: 7, kind: input, shape index: {}]   ;;  %s8709_s8 = inlined_call_operand.vmem [shape: f32[2,1,96], index: 8, kind: input, shape index: {}]   ;;  %s8710_s9 = inlined_call_operand.vmem [shape: f32[2,32,32], index: 9, kind: input, shape index: {}]   ;;  %s8711_s10 = inlined_call_operand.vmem [shape: f32[2,1,32], index: 10, kind: input, shape index: {}]   ;;  %s8712_s11 = inlined_call_operand.vmem [shape: f32[2,1,32], index: 11, kind: input, shape index: {}]   ;;  %s8713_s12 = inlined_call_operand.vmem [shape: f32[2,1,32], index: 12, kind: input, shape index: {}]   ;;  %s8714_s13 = inlined_call_operand.vmem [shape: f32[2,32,64], index: 13, kind: input, shape index: {}]   ;;  %s8715_s14 = inlined_call_operand.vmem [shape: f32[2,1,64], index: 14, kind: input, shape index: {}]   ;;  %s8716_s15 = inlined_call_operand.vmem [shape: f32[2,64,32], index: 15, kind: input, shape index: {}]   ;;  %s8717_s16 = inlined_call_operand.vmem [shape: f32[2,1,32], index: 16, kind: input, shape index: {}]   ;;  %s8718_s17 = inlined_call_operand.vmem [shape: f32[1,32], index: 17, kind: input, shape index: {}]   ;;  %s8719_s18 = inlined_call_operand.vmem [shape: f32[1,32], index: 18, kind: input, shape index: {}]   ;;  %s8720_s19 = inlined_call_operand.hbm [shape: f32[4,32], index: 19, kind: output, shape index: {}]  }
   0x1   :  { %8725 = sst [smem:[#allocation5_spill]] %s8701_s0 }
   0x2   :  { %8726 = sst [smem:[#allocation6_spill]] %s8702_s1 }
   0x3   :  { %8727 = sst [smem:[#allocation7_spill]] %s8703_s2 }
   0x4   :  { %8728 = sst [smem:[#allocation8_spill]] %s8704_s3 }
   0x5   :  { %s8729_s20 = sld [smem:[#allocation6_spill]]  ;;  %v6284_v1 = vmov 0.0   ;;  %vm6285_vm0 = vmmov 0  }
   0x6   :  { %5187 = vmatprep.subr.mxu0 %v6284_v1  ;;  %5199 = vmatprep.mubr.msk.f32.mxu0 %vm6285_vm0, %v6284_v1 }
   0x7   :  { %5226 = vmatprep.subr.mxu1 %v6284_v1  ;;  %5234 = vmatprep.mubr.msk.f32.mxu1 %vm6285_vm0, %v6284_v1 }
   0xb   :  { %v86_v0 = vld [vmem:[%s8729_s20 + $0x28] sm:$0xff]  ;;  %v85_v2 = vld [vmem:[%s8729_s20 + $0x20] sm:$0xff]  ;;  %v84_v3 = vld [vmem:[%s8729_s20 + $0x18] sm:$0xff] }
   0xc   :  { %5188 = vmatpush3.msra.mxu0 %v86_v0  ;;  %v83_v4 = vld [vmem:[%s8729_s20 + $0x10] sm:$0xff] }
   0xd   :  { %5189 = vmatprep.subr.mxu0 %v6284_v1 }
   0xe   :  { %5190 = vmatpush3.msra.mxu0 %v85_v2 }
   0xf   :  { %5191 = vmatprep.subr.mxu0 %v6284_v1 }
  0x10   :  { %24 = vsyncpa [#allocation3], 0  ;;  %5192 = vmatpush3.msra.mxu0 %v84_v3  ;;  %v82_v5 = vld [vmem:[%s8729_s20 + $0x8] sm:$0xff]  ;;  %v81_v6 = vld [vmem:[%s8729_s20] sm:$0xff]  ;;  %s8730_s0 = sld [smem:[#allocation5_spill]]  ;;  %vm96_vm1 = vcmask 392192  }
  0x11   :  { %5193 = vmatprep.subr.mxu0 %v6284_v1  ;;  %s8731_s22 = sld [smem:[#allocation7_spill]]  ;;  %vm236_vm2 = vcmask 261120   ;;  %vm261_vm3 = vcmask 257024   ;;  %s6286_s23 = smov 96   ;;  %vm566_vm4 = vcmask 130048   ;;  %vm731_vm5 = vcmask 556032  }
  0x12   :  { %5194 = vmatpush3.msra.mxu0 %v83_v4  ;;  %s8732_s24 = sld [smem:[#allocation8_spill]]  ;;  %vm756_vm6 = vcmask 551936   ;;  %s6288_s28 = smov 80   ;;  %vm885_vm7 = vcmask 1043456   ;;  %vm2162_vm8 = vcmask 523264  }
  0x13   :  { %5195 = vmatprep.subr.mxu0 %v6284_v1  ;;  %s6289_s29 = smov 112   ;;  %s6290_s30 = smov 48  }
  0x14   :  { %5196 = vmatpush3.msra.mxu0 %v82_v5 }
  0x15   :  { %5197 = vmatprep.subr.mxu0 %v6284_v1 }
  0x16   :  { %v72_v7 = vld [vmem:[%s8730_s0] sm:$0xff]  ;;  %5198 = vmatpush3.msra.mxu0 %v81_v6  ;;  %v73_v8 = vld [vmem:[%s8730_s0 + $0x8] sm:$0xff]  ;;  %v74_v9 = vld [vmem:[%s8730_s0 + $0x10] sm:$0xff] }
  0x17   :  { %5200 = vmatmul.mubr.msk.f32.vlgmr.msra.gmra.mxu0 %vm96_vm1, %v72_v7  ;;  %5306 = vmatprep.subr.mxu0 %v6284_v1  ;;  %v75_v10 = vld [vmem:[%s8730_s0 + $0x18] sm:$0xff]  ;;  %v76_v11 = vld [vmem:[%s8730_s0 + $0x20] sm:$0xff]  ;;  %v77_v12 = vld [vmem:[%s8730_s0 + $0x28] sm:$0xff] }
  0x18   :  { %5202 = vmatprep.mubr.msk.f32.mxu0 %vm6285_vm0, %v6284_v1  ;;  %v78_v13 = vld [vmem:[%s8730_s0 + $0x30] sm:$0xff]  ;;  %v79_v14 = vld [vmem:[%s8730_s0 + $0x38] sm:$0xff]  ;;  %v80_v15 = vld [vmem:[%s8730_s0 + $0x40] sm:$0xf]  ;;  %s6287_s0 = smov 64  }
  0x19   :  { %v87_v16 = vld [vmem:[%s8731_s22] sm:$0xff]  ;;  %v88_v20 = vld [vmem:[%s8731_s22 + $0x8] sm:$0xff]  ;;  %v89_v25 = vld [vmem:[%s8731_s22 + $0x10] sm:$0xff] }
  0x1a   :  { %v90_v30 = vld [vmem:[%s8731_s22 + $0x18] sm:$0xff]  ;;  %v91_v35 = vld [vmem:[%s8731_s22 + $0x20] sm:$0xff]  ;;  %v92_v40 = vld [vmem:[%s8731_s22 + $0x28] sm:$0xff] }
  0x1b   :  { %5203 = vmatmul.mubr.msk.f32.gmra.mxu0 %vm96_vm1, %v73_v8  ;;  %v93_v45 = vld [vmem:[%s8731_s22 + $0x30] sm:$0xff]  ;;  %v94_v50 = vld [vmem:[%s8731_s22 + $0x38] sm:$0xff]  ;;  %v95_v55 = vld [vmem:[%s8731_s22 + $0x40] sm:$0xf] }
  0x1c   :  { %5205 = vmatprep.mubr.msk.f32.mxu0 %vm6285_vm0, %v6284_v1 }
  0x1f   :  { %5206 = vmatmul.mubr.msk.f32.gmra.mxu0 %vm96_vm1, %v74_v9 }
  0x20   :  { %5208 = vmatprep.mubr.msk.f32.mxu0 %vm6285_vm0, %v6284_v1 }
  0x23   :  { %5209 = vmatmul.mubr.msk.f32.gmra.mxu0 %vm96_vm1, %v75_v10 }
  0x24   :  { %5211 = vmatprep.mubr.msk.f32.mxu0 %vm6285_vm0, %v6284_v1 }
  0x27   :  { %5212 = vmatmul.mubr.msk.f32.gmra.mxu0 %vm96_vm1, %v76_v11 }
  0x28   :  { %5214 = vmatprep.mubr.msk.f32.mxu0 %vm6285_vm0, %v6284_v1 }
  0x2b   :  { %5215 = vmatmul.mubr.msk.f32.gmra.mxu0 %vm96_vm1, %v77_v12 }
  0x2c   :  { %5217 = vmatprep.mubr.msk.f32.mxu0 %vm6285_vm0, %v6284_v1 }
  0x2f   :  { %5218 = vmatmul.mubr.msk.f32.gmra.mxu0 %vm96_vm1, %v78_v13 }
  0x30   :  { %5220 = vmatprep.mubr.msk.f32.mxu0 %vm6285_vm0, %v6284_v1 }
  0x33   :  { %5221 = vmatmul.mubr.msk.f32.gmra.mxu0 %vm96_vm1, %v79_v14 }
  0x34   :  { %5223 = vmatprep.mubr.msk.f32.mxu0 %vm6285_vm0, %v6284_v1 }
  0x37   :  { %5224 = vmatmul.mubr.msk.f32.gmra.mxu0 %vm96_vm1, %v80_v15 }
  0x38   :  { %5324 = vmatprep.mubr.msk.f32.mxu0 %vm6285_vm0, %v6284_v1 }
  0xd7   :  { %v190_v17 = vpop.f32.mrf.mxu0 }
  0xd8   :  { %v6479_v18 = vadd.f32 %v190_v17, %v87_v16 }
  0xd9   :  { %v5201_v19 = vpop.f32.mrf.mxu0 }
  0xda   :  { %v237_v21 = vsel %vm236_vm2, %v6479_v18, 0.0 }
  0xdb   :  { %238 = vadd.xlane.f32.xlu0 %v237_v21  ;;  %v195_v22 = vpop.f32.mrf.mxu0 }
  0xdc   :  { %v6486_v23 = vadd.f32 %v195_v22, %v88_v20 }
  0xdd   :  { %v5204_v24 = vpop.f32.mrf.mxu0 }
  0xde   :  { %v240_v26 = vsel %vm236_vm2, %v6486_v23, 0.0 }
  0xdf   :  { %241 = vadd.xlane.f32.xlu0 %v240_v26  ;;  %v200_v27 = vpop.f32.mrf.mxu0 }
  0xe0   :  { %v6493_v28 = vadd.f32 %v200_v27, %v89_v25 }
  0xe1   :  { %v5207_v29 = vpop.f32.mrf.mxu0 }
  0xe2   :  { %v243_v31 = vsel %vm236_vm2, %v6493_v28, 0.0 }
  0xe3   :  { %244 = vadd.xlane.f32.xlu1 %v243_v31  ;;  %v205_v32 = vpop.f32.mrf.mxu0 }
  0xe4   :  { %v6500_v33 = vadd.f32 %v205_v32, %v90_v30 }
  0xe5   :  { %v5210_v34 = vpop.f32.mrf.mxu0 }
  0xe6   :  { %v246_v36 = vsel %vm236_vm2, %v6500_v33, 0.0 }
  0xe7   :  { %247 = vadd.xlane.f32.xlu1 %v246_v36  ;;  %v210_v37 = vpop.f32.mrf.mxu0 }
  0xe8   :  { %v6507_v38 = vadd.f32 %v210_v37, %v91_v35 }
  0xe9   :  { %v5213_v39 = vpop.f32.mrf.mxu0 }
  0xea   :  { %v249_v41 = vsel %vm236_vm2, %v6507_v38, 0.0 }
  0xeb   :  { %250 = vadd.xlane.f32.xlu0 %v249_v41  ;;  %v215_v42 = vpop.f32.mrf.mxu0 }
  0xec   :  { %v6514_v43 = vadd.f32 %v215_v42, %v92_v40 }
  0xed   :  { %v5216_v44 = vpop.f32.mrf.mxu0 }
  0xee   :  { %v252_v46 = vsel %vm236_vm2, %v6514_v43, 0.0 }
  0xef   :  { %253 = vadd.xlane.f32.xlu1 %v252_v46  ;;  %v220_v47 = vpop.f32.mrf.mxu0 }
  0xf0   :  { %v6521_v48 = vadd.f32 %v220_v47, %v93_v45  ;;  %v389_v45 = vld [vmem:[%s8708_s7 + $0x18] sm:$0xff] }
  0xf1   :  { %v5219_v49 = vpop.f32.mrf.mxu0  ;;  %5227 = vmatpush3.msra.mxu1 %v389_v45 }
  0xf2   :  { %v255_v51 = vsel %vm236_vm2, %v6521_v48, 0.0  ;;  %5228 = vmatprep.subr.mxu1 %v6284_v1  ;;  %v388_v49 = vld [vmem:[%s8708_s7 + $0x10] sm:$0xff] }
  0xf3   :  { %256 = vadd.xlane.f32.xlu0 %v255_v51  ;;  %v225_v52 = vpop.f32.mrf.mxu0  ;;  %5229 = vmatpush3.msra.mxu1 %v388_v49  ;;  %v387_v51 = vld [vmem:[%s8708_s7 + $0x8] sm:$0xff] }
  0xf4   :  { %v6528_v53 = vadd.f32 %v225_v52, %v94_v50  ;;  %5230 = vmatprep.subr.mxu1 %v6284_v1 }
  0xf5   :  { %v5222_v54 = vpop.f32.mrf.mxu0  ;;  %5231 = vmatpush3.msra.mxu1 %v387_v51 }
  0xf6   :  { %v258_v56 = vsel %vm236_vm2, %v6528_v53, 0.0  ;;  %5232 = vmatprep.subr.mxu1 %v6284_v1  ;;  %v386_v54 = vld [vmem:[%s8708_s7] sm:$0xff] }
  0xf7   :  { %259 = vadd.xlane.f32.xlu1 %v258_v56  ;;  %v230_v57 = vpop.f32.mrf.mxu0  ;;  %5233 = vmatpush3.msra.mxu1 %v386_v54 }
  0xf8   :  { %v6535_v58 = vadd.f32 %v230_v57, %v95_v55  ;;  %5261 = vmatprep.subr.mxu1 %v6284_v1 }
  0xf9   :  { %v5225_v59 = vpop.f32.mrf.mxu0 }
  0xfa   :  { %v262_v60 = vsel %vm261_vm3, %v6535_v58, 0.0 }
  0xfb   :  { %263 = vadd.xlane.f32.xlu0 %v262_v60 }
 0x164   :  { %v239_v61 = vpop.xlane.xlu0 %238 }
 0x165   :  { %v266_v62 = vmul.f32 0.03125, %v239_v61 }
 0x167   :  { %v6540_v63 = vsub.f32 %v6479_v18, %v266_v62 }
 0x168   :  { %v242_v0 = vpop.xlane.xlu0 %241 }
 0x169   :  { %v267_v2 = vmul.f32 0.03125, %v242_v0  ;;  %v284_v3 = vmul.f32 %v6540_v63, %v6540_v63 }
 0x16b   :  { %v6545_v4 = vsub.f32 %v6486_v23, %v267_v2  ;;  %v293_v5 = vsel %vm236_vm2, %v284_v3, 0.0 }
 0x16c   :  { %v245_v6 = vpop.xlane.xlu1 %244  ;;  %294 = vadd.xlane.f32.xlu1 %v293_v5 }
 0x16d   :  { %v268_v7 = vmul.f32 0.03125, %v245_v6  ;;  %v285_v8 = vmul.f32 %v6545_v4, %v6545_v4 }
 0x16f   :  { %v6551_v9 = vsub.f32 %v6493_v28, %v268_v7  ;;  %v296_v10 = vsel %vm236_vm2, %v285_v8, 0.0 }
 0x170   :  { %v248_v11 = vpop.xlane.xlu1 %247  ;;  %297 = vadd.xlane.f32.xlu0 %v296_v10 }
 0x171   :  { %v269_v12 = vmul.f32 0.03125, %v248_v11  ;;  %v286_v13 = vmul.f32 %v6551_v9, %v6551_v9  ;;  %v6612_v11 = vld [vmem:[%s8706_s5] ss:$0 sm:$0xff] }
 0x173   :  { %v6557_v14 = vsub.f32 %v6500_v33, %v269_v12  ;;  %v299_v15 = vsel %vm236_vm2, %v286_v13, 0.0 }
 0x174   :  { %v251_v16 = vpop.xlane.xlu0 %250  ;;  %300 = vadd.xlane.f32.xlu1 %v299_v15 }
 0x175   :  { %v270_v17 = vmul.f32 0.03125, %v251_v16  ;;  %v287_v19 = vmul.f32 %v6557_v14, %v6557_v14  ;;  %v6618_v16 = vld [vmem:[%s8707_s6] ss:$0 sm:$0xff] }
 0x177   :  { %v6563_v20 = vsub.f32 %v6507_v38, %v270_v17  ;;  %v302_v21 = vsel %vm236_vm2, %v287_v19, 0.0 }
 0x178   :  { %v254_v22 = vpop.xlane.xlu1 %253  ;;  %303 = vadd.xlane.f32.xlu0 %v302_v21 }
 0x179   :  { %v271_v24 = vmul.f32 0.03125, %v254_v22  ;;  %v288_v25 = vmul.f32 %v6563_v20, %v6563_v20 }
 0x17b   :  { %v6569_v26 = vsub.f32 %v6514_v43, %v271_v24  ;;  %v305_v27 = vsel %vm236_vm2, %v288_v25, 0.0 }
 0x17c   :  { %v257_v29 = vpop.xlane.xlu0 %256  ;;  %306 = vadd.xlane.f32.xlu1 %v305_v27 }
 0x17d   :  { %v272_v30 = vmul.f32 0.03125, %v257_v29  ;;  %v289_v31 = vmul.f32 %v6569_v26, %v6569_v26 }
 0x17f   :  { %v6575_v32 = vsub.f32 %v6521_v48, %v272_v30  ;;  %v308_v34 = vsel %vm236_vm2, %v289_v31, 0.0 }
 0x180   :  { %v260_v35 = vpop.xlane.xlu1 %259  ;;  %309 = vadd.xlane.f32.xlu0 %v308_v34 }
 0x181   :  { %v273_v36 = vmul.f32 0.03125, %v260_v35  ;;  %v290_v37 = vmul.f32 %v6575_v32, %v6575_v32 }
 0x183   :  { %v6581_v39 = vsub.f32 %v6528_v53, %v273_v36  ;;  %v311_v40 = vsel %vm236_vm2, %v290_v37, 0.0 }
 0x184   :  { %312 = vadd.xlane.f32.xlu1 %v311_v40  ;;  %v264_v41 = vpop.xlane.xlu0 %263 }
 0x185   :  { %v274_v42 = vmul.f32 0.03125, %v264_v41  ;;  %v291_v44 = vmul.f32 %v6581_v39, %v6581_v39 }
 0x187   :  { %v6590_v46 = vsub.f32 %v6535_v58, %v274_v42  ;;  %v314_v47 = vsel %vm236_vm2, %v291_v44, 0.0 }
 0x188   :  { %315 = vadd.xlane.f32.xlu0 %v314_v47 }
 0x189   :  { %v292_v50 = vmul.f32 %v6590_v46, %v6590_v46 }
 0x18b   :  { %v317_v52 = vsel %vm261_vm3, %v292_v50, 0.0 }
 0x18c   :  { %318 = vadd.xlane.f32.xlu1 %v317_v52 }
 0x1f5   :  { %v295_v55 = vpop.xlane.xlu1 %294 }
 0x1f6   :  { %v320_v56 = vmul.f32 0.03125, %v295_v55 }
 0x1f8   :  { %v329_v57 = vadd.f32 1e-12, %v320_v56 }
 0x1f9   :  { %v298_v59 = vpop.xlane.xlu0 %297 }
 0x1fa   :  { %5983 = vrsqrt.f32 %v329_v57  ;;  %v321_v60 = vmul.f32 0.03125, %v298_v59 }
 0x1fc   :  { %v330_v61 = vadd.f32 1e-12, %v321_v60 }
 0x1fd   :  { %v301_v62 = vpop.xlane.xlu1 %300 }
 0x1fe   :  { %5985 = vrsqrt.f32 %v330_v61  ;;  %v322_v0 = vmul.f32 0.03125, %v301_v62 }
 0x200   :  { %v331_v2 = vadd.f32 1e-12, %v322_v0 }
 0x201   :  { %v304_v3 = vpop.xlane.xlu0 %303 }
 0x202   :  { %5987 = vrsqrt.f32 %v331_v2  ;;  %v323_v5 = vmul.f32 0.03125, %v304_v3 }
 0x204   :  { %v332_v6 = vadd.f32 1e-12, %v323_v5 }
 0x205   :  { %v307_v7 = vpop.xlane.xlu1 %306 }
 0x206   :  { %5989 = vrsqrt.f32 %v332_v6  ;;  %v324_v8 = vmul.f32 0.03125, %v307_v7 }
 0x207   :  { %v5984_v10 = vpop.eup %5983 }
 0x208   :  { %v333_v12 = vadd.f32 1e-12, %v324_v8  ;;  %v347_v13 = vmul.f32 %v5984_v10, %v6540_v63 }
 0x209   :  { %v310_v15 = vpop.xlane.xlu0 %309 }
 0x20a   :  { %5991 = vrsqrt.f32 %v333_v12  ;;  %v325_v17 = vmul.f32 0.03125, %v310_v15  ;;  %v362_v19 = vmul.f32 %v6612_v11, %v347_v13 }
 0x20b   :  { %v5986_v21 = vpop.eup %5985 }
 0x20c   :  { %v334_v22 = vadd.f32 1e-12, %v325_v17  ;;  %v377_v24 = vadd.f32 %v6618_v16, %v362_v19  ;;  %v348_v25 = vmul.f32 %v5986_v21, %v6545_v4 }
 0x20d   :  { %v313_v27 = vpop.xlane.xlu1 %312 }
 0x20e   :  { %5993 = vrsqrt.f32 %v334_v22  ;;  %v326_v29 = vmul.f32 0.03125, %v313_v27  ;;  %5235 = vmatmul.mubr.msk.f32.vlgmr.msra.gmra.mxu1 %vm236_vm2, %v377_v24  ;;  %v363_v63 = vmul.f32 %v6612_v11, %v348_v25 }
 0x20f   :  { %v5988_v30 = vpop.eup %5987  ;;  %5237 = vmatprep.mubr.msk.f32.mxu1 %vm6285_vm0, %v6284_v1 }
 0x210   :  { %v335_v31 = vadd.f32 1e-12, %v326_v29  ;;  %v378_v34 = vadd.f32 %v6618_v16, %v363_v63  ;;  %v349_v35 = vmul.f32 %v5988_v30, %v6551_v9 }
 0x211   :  { %v316_v36 = vpop.xlane.xlu0 %315 }
 0x212   :  { %5995 = vrsqrt.f32 %v335_v31  ;;  %v327_v37 = vmul.f32 0.03125, %v316_v36  ;;  %5238 = vmatmul.mubr.msk.f32.gmra.mxu1 %vm236_vm2, %v378_v34  ;;  %v364_v4 = vmul.f32 %v6612_v11, %v349_v35 }
 0x213   :  { %v5990_v40 = vpop.eup %5989  ;;  %5240 = vmatprep.mubr.msk.f32.mxu1 %vm6285_vm0, %v6284_v1 }
 0x214   :  { %v336_v41 = vadd.f32 1e-12, %v327_v37  ;;  %v379_v42 = vadd.f32 %v6618_v16, %v364_v4  ;;  %v350_v44 = vmul.f32 %v5990_v40, %v6557_v14 }
 0x215   :  { %v319_v45 = vpop.xlane.xlu1 %318 }
 0x216   :  { %5997 = vrsqrt.f32 %v336_v41  ;;  %v328_v47 = vmul.f32 0.03125, %v319_v45  ;;  %5241 = vmatmul.mubr.msk.f32.gmra.mxu1 %vm236_vm2, %v379_v42  ;;  %v365_v9 = vmul.f32 %v6612_v11, %v350_v44 }
 0x217   :  { %v5992_v49 = vpop.eup %5991  ;;  %5243 = vmatprep.mubr.msk.f32.mxu1 %vm6285_vm0, %v6284_v1 }
 0x218   :  { %v337_v50 = vadd.f32 1e-12, %v328_v47  ;;  %v380_v51 = vadd.f32 %v6618_v16, %v365_v9  ;;  %v351_v52 = vmul.f32 %v5992_v49, %v6563_v20 }
 0x21a   :  { %5999 = vrsqrt.f32 %v337_v50  ;;  %5244 = vmatmul.mubr.msk.f32.gmra.mxu1 %vm236_vm2, %v380_v51  ;;  %v366_v14 = vmul.f32 %v6612_v11, %v351_v52 }
 0x21b   :  { %v5994_v54 = vpop.eup %5993  ;;  %5246 = vmatprep.mubr.msk.f32.mxu1 %vm6285_vm0, %v6284_v1 }
 0x21c   :  { %v381_v55 = vadd.f32 %v6618_v16, %v366_v14  ;;  %v352_v56 = vmul.f32 %v5994_v54, %v6569_v26 }
 0x21e   :  { %5247 = vmatmul.mubr.msk.f32.gmra.mxu1 %vm236_vm2, %v381_v55  ;;  %v367_v57 = vmul.f32 %v6612_v11, %v352_v56  ;;  %v6769_v55 = vld [vmem:[%s8732_s24] sm:$0xff] }
 0x21f   :  { %v5996_v59 = vpop.eup %5995  ;;  %5249 = vmatprep.mubr.msk.f32.mxu1 %vm6285_vm0, %v6284_v1 }
 0x220   :  { %v382_v20 = vadd.f32 %v6618_v16, %v367_v57  ;;  %v353_v60 = vmul.f32 %v5996_v59, %v6575_v32 }
 0x222   :  { %5250 = vmatmul.mubr.msk.f32.gmra.mxu1 %vm236_vm2, %v382_v20  ;;  %v368_v61 = vmul.f32 %v6612_v11, %v353_v60  ;;  %v6777_v60 = vld [vmem:[%s8732_s24 + $0x8] sm:$0xff] }
 0x223   :  { %v5998_v62 = vpop.eup %5997  ;;  %5252 = vmatprep.mubr.msk.f32.mxu1 %vm6285_vm0, %v6284_v1 }
 0x224   :  { %v383_v26 = vadd.f32 %v6618_v16, %v368_v61  ;;  %v354_v0 = vmul.f32 %v5998_v62, %v6581_v39 }
 0x226   :  { %5253 = vmatmul.mubr.msk.f32.gmra.mxu1 %vm236_vm2, %v383_v26  ;;  %v369_v2 = vmul.f32 %v6612_v11, %v354_v0 }
 0x227   :  { %v6000_v3 = vpop.eup %5999  ;;  %5255 = vmatprep.mubr.msk.f32.mxu1 %vm6285_vm0, %v6284_v1 }
 0x228   :  { %v384_v32 = vadd.f32 %v6618_v16, %v369_v2  ;;  %v355_v5 = vmul.f32 %v6000_v3, %v6590_v46  ;;  %v6787_v3 = vld [vmem:[%s8732_s24 + $0x10] sm:$0xff] }
 0x22a   :  { %5256 = vmatmul.mubr.msk.f32.gmra.mxu1 %vm236_vm2, %v384_v32  ;;  %v370_v6 = vmul.f32 %v6612_v11, %v355_v5 }
 0x22b   :  { %5258 = vmatprep.mubr.msk.f32.mxu1 %vm6285_vm0, %v6284_v1 }
 0x22c   :  { %v385_v39 = vadd.f32 %v6618_v16, %v370_v6  ;;  %v4640_v16 = vld [vmem:[%s8709_s8] ss:$0 sm:$0xff] }
 0x22e   :  { %5259 = vmatmul.mubr.msk.f32.gmra.mxu1 %vm236_vm2, %v385_v39 }
 0x22f   :  { %5279 = vmatprep.mubr.msk.f32.mxu1 %vm6285_vm0, %v6284_v1 }
 0x2ce   :  { %v490_v7 = vpop.f32.mrf.mxu1 }
 0x2cf   :  { %v6704_v41 = vadd.f32 %v4640_v16, %v490_v7 }
 0x2d0   :  { %v5236_v8 = vpop.f32.mrf.mxu1 }
 0x2d1   :  { %v6797_v8 = vld [vmem:[%s8732_s24 + $0x18] sm:$0xff] }
 0x2d2   :  { %v495_v10 = vpop.f32.mrf.mxu1 }
 0x2d3   :  { %v6706_v42 = vadd.f32 %v4640_v16, %v495_v10 }
 0x2d4   :  { %v5239_v12 = vpop.f32.mrf.mxu1 }
 0x2d6   :  { %v500_v13 = vpop.f32.mrf.mxu1 }
 0x2d7   :  { %v6696_v4 = vadd.f32 %v4640_v16, %v500_v13 }
 0x2d8   :  { %v5242_v46 = vpop.f32.mrf.mxu1 }
 0x2da   :  { %v505_v15 = vpop.f32.mrf.mxu1 }
 0x2db   :  { %v6698_v40 = vadd.f32 %v4640_v16, %v505_v15 }
 0x2dc   :  { %v5245_v17 = vpop.f32.mrf.mxu1 }
 0x2dd   :  { %v6807_v17 = vld [vmem:[%s8732_s24 + $0x20] sm:$0xff] }
 0x2de   :  { %v510_v19 = vpop.f32.mrf.mxu1 }
 0x2df   :  { %v6688_v36 = vadd.f32 %v4640_v16, %v510_v19 }
 0x2e0   :  { %v5248_v11 = vpop.f32.mrf.mxu1 }
 0x2e2   :  { %v515_v21 = vpop.f32.mrf.mxu1 }
 0x2e3   :  { %v6690_v37 = vadd.f32 %v4640_v16, %v515_v21 }
 0x2e4   :  { %v5251_v22 = vpop.f32.mrf.mxu1 }
 0x2e6   :  { %v520_v24 = vpop.f32.mrf.mxu1 }
 0x2e7   :  { %v6680_v31 = vadd.f32 %v4640_v16, %v520_v24 }
 0x2e8   :  { %v5254_v25 = vpop.f32.mrf.mxu1 }
 0x2e9   :  { %v6817_v25 = vld [vmem:[%s8732_s24 + $0x28] sm:$0xff] }
 0x2ea   :  { %v525_v27 = vpop.f32.mrf.mxu1 }
 0x2eb   :  { %v6676_v29 = vadd.f32 %v4640_v16, %v525_v27 }
 0x2ec   :  { %v5257_v63 = vpop.f32.mrf.mxu1 }
 0x2ed   :  { %562 = vrot.lane.b32.xlu1 %v6676_v29, %s6286_s23 }
 0x2ee   :  { %v530_v30 = vpop.f32.mrf.mxu1 }
 0x2ef   :  { %v6682_v34 = vadd.f32 %v4640_v16, %v530_v30 }
 0x2f0   :  { %v5260_v35 = vpop.f32.mrf.mxu1 }
 0x2f1   :  { %560 = vrot.lane.b32.xlu1 %v6680_v31, %s6286_s23  ;;  %564 = vrot.lane.b32.xlu0 %v6682_v34, %s6286_s23 }
 0x2f5   :  { %558 = vrot.lane.b32.xlu1 %v6690_v37, %s6286_s23  ;;  %556 = vrot.lane.b32.xlu0 %v6688_v36, %s6286_s23 }
 0x2f9   :  { %554 = vrot.lane.b32.xlu1 %v6698_v40, %s6286_s23  ;;  %552 = vrot.lane.b32.xlu0 %v6696_v4, %s6286_s23 }
 0x2fd   :  { %550 = vrot.lane.b32.xlu1 %v6706_v42, %s6286_s23  ;;  %548 = vrot.lane.b32.xlu0 %v6704_v41, %s6286_s23 }
 0x35f   :  { %v563_v44 = vpop.permute.xlu1 %562 }
 0x363   :  { %v565_v45 = vpop.permute.xlu0 %564  ;;  %v561_v47 = vpop.permute.xlu1 %560 }
 0x364   :  { %5262 = vmatpush3.xpose.msk.msra.mxu1 %vm566_vm4, %v565_v45 }
 0x365   :  { %5263 = vmatprep.subr.mxu1 %v6284_v1 }
 0x367   :  { %v559_v9 = vpop.permute.xlu1 %558  ;;  %v557_v49 = vpop.permute.xlu0 %556 }
 0x368   :  { %5264 = vmatpush3.xpose.msk.msra.mxu1 %vm566_vm4, %v563_v44  ;;  %v6827_v44 = vld [vmem:[%s8732_s24 + $0x30] sm:$0xff] }
 0x369   :  { %5265 = vmatprep.subr.mxu1 %v6284_v1 }
 0x36b   :  { %v555_v50 = vpop.permute.xlu1 %554  ;;  %v553_v51 = vpop.permute.xlu0 %552 }
 0x36c   :  { %5266 = vmatpush3.xpose.msk.msra.mxu1 %vm566_vm4, %v561_v47 }
 0x36d   :  { %5267 = vmatprep.subr.mxu1 %v6284_v1 }
 0x36f   :  { %v551_v52 = vpop.permute.xlu1 %550  ;;  %v549_v14 = vpop.permute.xlu0 %548 }
 0x370   :  { %5268 = vmatpush3.xpose.msk.msra.mxu1 %vm566_vm4, %v559_v9 }
 0x371   :  { %5269 = vmatprep.subr.mxu1 %v6284_v1 }
 0x374   :  { %5270 = vmatpush3.xpose.msk.msra.mxu1 %vm566_vm4, %v557_v49 }
 0x375   :  { %5271 = vmatprep.subr.mxu1 %v6284_v1 }
 0x378   :  { %5272 = vmatpush3.xpose.msk.msra.mxu1 %vm566_vm4, %v555_v50 }
 0x379   :  { %5273 = vmatprep.subr.mxu1 %v6284_v1 }
 0x37c   :  { %5274 = vmatpush3.xpose.msk.msra.mxu1 %vm566_vm4, %v553_v51 }
 0x37d   :  { %5275 = vmatprep.subr.mxu1 %v6284_v1 }
 0x380   :  { %5276 = vmatpush3.xpose.msk.msra.mxu1 %vm566_vm4, %v551_v52 }
 0x381   :  { %5277 = vmatprep.subr.mxu1 %v6284_v1 }
 0x384   :  { %5278 = vmatpush3.xpose.msk.msra.mxu1 %vm566_vm4, %v549_v14 }
 0x385   :  { %5351 = vmatprep.subr.mxu1 %v6284_v1 }
 0x387   :  { %5280 = vmatmul.mubr.msk.f32.vlgmr.msra.gmra.mxu1 %vm566_vm4, %v6704_v41 }
 0x388   :  { %5282 = vmatprep.mubr.msk.f32.mxu1 %vm6285_vm0, %v6284_v1 }
 0x38b   :  { %5283 = vmatmul.mubr.msk.f32.gmra.mxu1 %vm566_vm4, %v6706_v42 }
 0x38c   :  { %5285 = vmatprep.mubr.msk.f32.mxu1 %vm6285_vm0, %v6284_v1 }
 0x38f   :  { %5286 = vmatmul.mubr.msk.f32.gmra.mxu1 %vm566_vm4, %v6696_v4 }
 0x390   :  { %5288 = vmatprep.mubr.msk.f32.mxu1 %vm6285_vm0, %v6284_v1 }
 0x393   :  { %5289 = vmatmul.mubr.msk.f32.gmra.mxu1 %vm566_vm4, %v6698_v40 }
 0x394   :  { %5291 = vmatprep.mubr.msk.f32.mxu1 %vm6285_vm0, %v6284_v1 }
 0x397   :  { %5292 = vmatmul.mubr.msk.f32.gmra.mxu1 %vm566_vm4, %v6688_v36 }
 0x398   :  { %5294 = vmatprep.mubr.msk.f32.mxu1 %vm6285_vm0, %v6284_v1 }
 0x39b   :  { %5295 = vmatmul.mubr.msk.f32.gmra.mxu1 %vm566_vm4, %v6690_v37 }
 0x39c   :  { %5297 = vmatprep.mubr.msk.f32.mxu1 %vm6285_vm0, %v6284_v1 }
 0x39f   :  { %5298 = vmatmul.mubr.msk.f32.gmra.mxu1 %vm566_vm4, %v6680_v31 }
 0x3a0   :  { %5300 = vmatprep.mubr.msk.f32.mxu1 %vm6285_vm0, %v6284_v1 }
 0x3a3   :  { %5301 = vmatmul.mubr.msk.f32.gmra.mxu1 %vm566_vm4, %v6676_v29 }
 0x3a4   :  { %5303 = vmatprep.mubr.msk.f32.mxu1 %vm6285_vm0, %v6284_v1 }
 0x3a7   :  { %5304 = vmatmul.mubr.msk.f32.gmra.mxu1 %vm566_vm4, %v6682_v34 }
 0x3a8   :  { %5355 = vmatprep.mubr.msk.f32.mxu1 %vm6285_vm0, %v6284_v1 }
 0x447   :  { %v669_v54 = vpop.f32.mrf.mxu1 }
 0x448   :  { %v713_v56 = vmul.f32 0.25, %v669_v54 }
 0x449   :  { %v5281_v57 = vpop.f32.mrf.mxu1 }
 0x44a   :  { %v6772_v59 = vadd.f32 %v713_v56, %v6769_v55  ;;  %v6843_v57 = vld [vmem:[%s8732_s24 + $0x38] sm:$0xff] }
 0x44b   :  { %v674_v20 = vpop.f32.mrf.mxu1 }
 0x44c   :  { %v714_v61 = vmul.f32 0.25, %v674_v20  ;;  %v732_v62 = vsel %vm731_vm5, %v6772_v59, -inf }
 0x44d   :  { %v5284_v26 = vpop.f32.mrf.mxu1  ;;  %733 = vmax.xlane.f32.xlu1 %v732_v62  ;;  %v6851_v62 = vld [vmem:[%s8732_s24 + $0x40] sm:$0xf] }
 0x44e   :  { %v6782_v0 = vadd.f32 %v714_v61, %v6777_v60 }
 0x44f   :  { %v679_v2 = vpop.f32.mrf.mxu1 }
 0x450   :  { %v715_v32 = vmul.f32 0.25, %v679_v2  ;;  %v735_v5 = vsel %vm731_vm5, %v6782_v0, -inf }
 0x451   :  { %v5287_v6 = vpop.f32.mrf.mxu1  ;;  %736 = vmax.xlane.f32.xlu0 %v735_v5 }
 0x452   :  { %v6792_v39 = vadd.f32 %v715_v32, %v6787_v3 }
 0x453   :  { %v684_v7 = vpop.f32.mrf.mxu1 }
 0x454   :  { %v716_v10 = vmul.f32 0.25, %v684_v7  ;;  %v738_v12 = vsel %vm731_vm5, %v6792_v39, -inf }
 0x455   :  { %v5290_v13 = vpop.f32.mrf.mxu1  ;;  %739 = vmax.xlane.f32.xlu0 %v738_v12 }
 0x456   :  { %v6802_v46 = vadd.f32 %v716_v10, %v6797_v8 }
 0x457   :  { %v689_v15 = vpop.f32.mrf.mxu1 }
 0x458   :  { %v717_v19 = vmul.f32 0.25, %v689_v15  ;;  %v741_v11 = vsel %vm731_vm5, %v6802_v46, -inf }
 0x459   :  { %v5293_v21 = vpop.f32.mrf.mxu1  ;;  %742 = vmax.xlane.f32.xlu0 %v741_v11 }
 0x45a   :  { %v6812_v22 = vadd.f32 %v717_v19, %v6807_v17 }
 0x45b   :  { %v694_v24 = vpop.f32.mrf.mxu1 }
 0x45c   :  { %v718_v16 = vmul.f32 0.25, %v694_v24  ;;  %v744_v27 = vsel %vm731_vm5, %v6812_v22, -inf }
 0x45d   :  { %v5296_v63 = vpop.f32.mrf.mxu1  ;;  %745 = vmax.xlane.f32.xlu1 %v744_v27 }
 0x45e   :  { %v6822_v30 = vadd.f32 %v718_v16, %v6817_v25 }
 0x45f   :  { %v699_v35 = vpop.f32.mrf.mxu1 }
 0x460   :  { %v719_v45 = vmul.f32 0.25, %v699_v35  ;;  %v747_v47 = vsel %vm731_vm5, %v6822_v30, -inf }
 0x461   :  { %v5299_v9 = vpop.f32.mrf.mxu1  ;;  %748 = vmax.xlane.f32.xlu0 %v747_v47 }
 0x462   :  { %v6832_v49 = vadd.f32 %v719_v45, %v6827_v44 }
 0x463   :  { %v704_v50 = vpop.f32.mrf.mxu1 }
 0x464   :  { %v750_v51 = vsel %vm731_vm5, %v6832_v49, -inf  ;;  %v720_v56 = vmul.f32 0.25, %v704_v50 }
 0x465   :  { %v5302_v52 = vpop.f32.mrf.mxu1  ;;  %751 = vmax.xlane.f32.xlu1 %v750_v51 }
 0x466   :  { %v6846_v61 = vadd.f32 %v720_v56, %v6843_v57 }
 0x467   :  { %v709_v14 = vpop.f32.mrf.mxu1 }
 0x468   :  { %v721_v20 = vmul.f32 0.25, %v709_v14  ;;  %v753_v26 = vsel %vm731_vm5, %v6846_v61, -inf }
 0x469   :  { %v5305_v54 = vpop.f32.mrf.mxu1 }
 0x46a   :  { %v6856_v2 = vadd.f32 %v721_v20, %v6851_v62 }
 0x46c   :  { %v757_v32 = vsel %vm756_vm6, %v6856_v2, -inf }
 0x476   :  { %848 = vrot.lane.b32.xlu1 %v6682_v34, %s6287_s0 }
 0x477   :  { %846 = vrot.lane.b32.xlu0 %v6676_v29, %s6287_s0 }
 0x496   :  { %754 = vmax.xlane.f32.xlu0 %v753_v26 }
 0x49a   :  { %758 = vmax.xlane.f32.xlu1 %v757_v32 }
 0x4ab   :  { %844 = vrot.lane.b32.xlu1 %v6680_v31, %s6287_s0 }
 0x4ac   :  { %842 = vrot.lane.b32.xlu0 %v6690_v37, %s6287_s0 }
 0x4af   :  { %838 = vrot.lane.b32.xlu1 %v6698_v40, %s6287_s0 }
 0x4b0   :  { %840 = vrot.lane.b32.xlu0 %v6688_v36, %s6287_s0 }
 0x4b3   :  { %1184 = vrot.lane.b32.xlu1 %v6682_v34, %s6288_s28 }
 0x4b4   :  { %836 = vrot.lane.b32.xlu0 %v6696_v4, %s6287_s0 }
 0x4b8   :  { %834 = vrot.lane.b32.xlu0 %v6706_v42, %s6287_s0 }
 0x4bc   :  { %832 = vrot.lane.b32.xlu0 %v6704_v41, %s6287_s0 }
 0x4c0   :  { %1182 = vrot.lane.b32.xlu0 %v6676_v29, %s6288_s28 }
 0x4c4   :  { %1180 = vrot.lane.b32.xlu0 %v6680_v31, %s6288_s28 }
 0x4c8   :  { %1178 = vrot.lane.b32.xlu0 %v6690_v37, %s6288_s28 }
 0x4d6   :  { %v734_v5 = vpop.xlane.xlu1 %733 }
 0x4d7   :  { %v760_v6 = vsub.f32 %v6772_v59, %v734_v5 }
 0x4d9   :  { %v769_v7 = vmul.f32 1.442695, %v760_v6 }
 0x4da   :  { %v737_v10 = vpop.xlane.xlu0 %736 }
 0x4db   :  { %6001 = vpow2.f32 %v769_v7  ;;  %v761_v12 = vsub.f32 %v6782_v0, %v737_v10 }
 0x4dd   :  { %v771_v13 = vmul.f32 1.442695, %v761_v12 }
 0x4de   :  { %v740_v15 = vpop.xlane.xlu0 %739 }
 0x4df   :  { %6003 = vpow2.f32 %v771_v13  ;;  %v762_v19 = vsub.f32 %v6792_v39, %v740_v15 }
 0x4e1   :  { %v773_v11 = vmul.f32 1.442695, %v762_v19 }
 0x4e2   :  { %v743_v21 = vpop.xlane.xlu0 %742 }
 0x4e3   :  { %6005 = vpow2.f32 %v773_v11  ;;  %v763_v24 = vsub.f32 %v6802_v46, %v743_v21 }
 0x4e5   :  { %v775_v16 = vmul.f32 1.442695, %v763_v24 }
 0x4e6   :  { %v746_v27 = vpop.xlane.xlu1 %745 }
 0x4e7   :  { %6007 = vpow2.f32 %v775_v16  ;;  %v764_v59 = vsub.f32 %v6812_v22, %v746_v27 }
 0x4e8   :  { %v6887_v63 = vpop.eup %6001 }
 0x4e9   :  { %v777_v35 = vmul.f32 1.442695, %v764_v59  ;;  %v787_v0 = vsel %vm731_vm5, %v6887_v63, 0.0 }
 0x4ea   :  { %788 = vadd.xlane.f32.xlu0 %v787_v0  ;;  %v749_v47 = vpop.xlane.xlu0 %748 }
 0x4eb   :  { %6009 = vpow2.f32 %v777_v35  ;;  %v765_v5 = vsub.f32 %v6822_v30, %v749_v47 }
 0x4ec   :  { %v6891_v45 = vpop.eup %6003 }
 0x4ed   :  { %v790_v39 = vsel %vm731_vm5, %v6891_v45, 0.0  ;;  %v779_v6 = vmul.f32 1.442695, %v765_v5 }
 0x4ee   :  { %791 = vadd.xlane.f32.xlu1 %v790_v39  ;;  %v752_v46 = vpop.xlane.xlu1 %751  ;;  %v847_v54 = vpop.permute.xlu0 %846 }
 0x4ef   :  { %v766_v9 = vsub.f32 %v6832_v49, %v752_v46 }
 0x4f0   :  { %v6896_v50 = vpop.eup %6005 }
 0x4f1   :  { %v781_v22 = vmul.f32 1.442695, %v766_v9  ;;  %v793_v51 = vsel %vm731_vm5, %v6896_v50, 0.0 }
 0x4f2   :  { %794 = vadd.xlane.f32.xlu0 %v793_v51  ;;  %v849_v52 = vpop.permute.xlu1 %848 }
 0x4f3   :  { %6011 = vpow2.f32 %v781_v22  ;;  %5307 = vmatpush3.msk.msra.mxu0 %vm885_vm7, %v849_v52 }
 0x4f4   :  { %v6901_v14 = vpop.eup %6007  ;;  %5308 = vmatprep.subr.mxu0 %v6284_v1  ;;  %6013 = vpow2.f32 %v779_v6 }
 0x4f5   :  { %5309 = vmatpush3.msra.mxu0 %v847_v54  ;;  %v796_v49 = vsel %vm731_vm5, %v6901_v14, 0.0  ;;  %v534_v54 = vld [vmem:[%s8710_s9] sm:$0xff] }
 0x4f6   :  { %797 = vadd.xlane.f32.xlu0 %v796_v49  ;;  %5310 = vmatprep.subr.mxu0 %v6284_v1 }
 0x4f8   :  { %v6907_v56 = vpop.eup %6009 }
 0x4f9   :  { %v799_v20 = vsel %vm731_vm5, %v6907_v56, 0.0 }
 0x4fa   :  { %800 = vadd.xlane.f32.xlu1 %v799_v20 }
 0x500   :  { %v6911_v26 = vpop.eup %6011 }
 0x501   :  { %v805_v32 = vsel %vm731_vm5, %v6911_v26, 0.0  ;;  %v6920_v21 = vpop.eup %6013 }
 0x502   :  { %806 = vadd.xlane.f32.xlu1 %v805_v32  ;;  %v802_v30 = vsel %vm731_vm5, %v6920_v21, 0.0 }
 0x50c   :  { %1176 = vrot.lane.b32.xlu0 %v6688_v36, %s6288_s28 }
 0x51f   :  { %v755_v7 = vpop.xlane.xlu0 %754 }
 0x520   :  { %v767_v10 = vsub.f32 %v6846_v61, %v755_v7 }
 0x522   :  { %v783_v12 = vmul.f32 1.442695, %v767_v10 }
 0x523   :  { %v843_v13 = vpop.permute.xlu0 %842  ;;  %v759_v15 = vpop.xlane.xlu1 %758 }
 0x524   :  { %6015 = vpow2.f32 %v783_v12  ;;  %v768_v19 = vsub.f32 %v6856_v2, %v759_v15 }
 0x526   :  { %v785_v11 = vmul.f32 1.442695, %v768_v19 }
 0x527   :  { %v841_v24 = vpop.permute.xlu0 %840  ;;  %v845_v16 = vpop.permute.xlu1 %844 }
 0x528   :  { %6017 = vpow2.f32 %v785_v11  ;;  %5311 = vmatpush3.msra.mxu0 %v845_v16 }
 0x529   :  { %5312 = vmatprep.subr.mxu0 %v6284_v1 }
 0x52a   :  { %5313 = vmatpush3.msra.mxu0 %v843_v13 }
 0x52b   :  { %v837_v61 = vpop.permute.xlu0 %836  ;;  %803 = vadd.xlane.f32.xlu0 %v802_v30  ;;  %5314 = vmatprep.subr.mxu0 %v6284_v1  ;;  %v839_v27 = vpop.permute.xlu1 %838 }
 0x52c   :  { %5315 = vmatpush3.msra.mxu0 %v841_v24 }
 0x52d   :  { %5316 = vmatprep.subr.mxu0 %v6284_v1 }
 0x52e   :  { %5317 = vmatpush3.msra.mxu0 %v839_v27 }
 0x52f   :  { %v835_v2 = vpop.permute.xlu0 %834  ;;  %5318 = vmatprep.subr.mxu0 %v6284_v1  ;;  %v1185_v51 = vpop.permute.xlu1 %1184 }
 0x530   :  { %5319 = vmatpush3.msra.mxu0 %v837_v61 }
 0x531   :  { %v6928_v59 = vpop.eup %6015  ;;  %5320 = vmatprep.subr.mxu0 %v6284_v1 }
 0x532   :  { %5321 = vmatpush3.msra.mxu0 %v835_v2  ;;  %v808_v35 = vsel %vm731_vm5, %v6928_v59, 0.0 }
 0x533   :  { %v833_v0 = vpop.permute.xlu0 %832  ;;  %809 = vadd.xlane.f32.xlu0 %v808_v35  ;;  %5322 = vmatprep.subr.mxu0 %v6284_v1 }
 0x534   :  { %5323 = vmatpush3.msra.mxu0 %v833_v0 }
 0x535   :  { %v6934_v39 = vpop.eup %6017  ;;  %5382 = vmatprep.subr.mxu0 %v6284_v1 }
 0x536   :  { %v811_v47 = vsel %vm756_vm6, %v6934_v39, 0.0 }
 0x537   :  { %812 = vadd.xlane.f32.xlu1 %v811_v47  ;;  %v1183_v46 = vpop.permute.xlu0 %1182 }
 0x53b   :  { %v1181_v9 = vpop.permute.xlu0 %1180 }
 0x53f   :  { %v1179_v22 = vpop.permute.xlu0 %1178 }
 0x548   :  { %1174 = vrot.lane.b32.xlu1 %v6698_v40, %s6288_s28 }
 0x549   :  { %1172 = vrot.lane.b32.xlu0 %v6696_v4, %s6288_s28 }
 0x54c   :  { %1154 = vrot.lane.b32.xlu1 %v6696_v4, %s6289_s29 }
 0x54d   :  { %1170 = vrot.lane.b32.xlu0 %v6706_v42, %s6288_s28 }
 0x550   :  { %1158 = vrot.lane.b32.xlu1 %v6688_v36, %s6289_s29 }
 0x551   :  { %1168 = vrot.lane.b32.xlu0 %v6704_v41, %s6288_s28 }
 0x554   :  { %1162 = vrot.lane.b32.xlu1 %v6680_v31, %s6289_s29 }
 0x555   :  { %1150 = vrot.lane.b32.xlu0 %v6704_v41, %s6289_s29 }
 0x558   :  { %1166 = vrot.lane.b32.xlu1 %v6682_v34, %s6289_s29 }
 0x559   :  { %1152 = vrot.lane.b32.xlu0 %v6706_v42, %s6289_s29 }
 0x55c   :  { %1465 = vrot.lane.b32.xlu1 %v6682_v34, %s6290_s30  ;;  %v535_v34 = vld [vmem:[%s8710_s9 + $0x8] sm:$0xff] }
 0x55d   :  { %1156 = vrot.lane.b32.xlu0 %v6698_v40, %s6289_s29  ;;  %5352 = vmatpush3.msra.mxu1 %v535_v34 }
 0x55e   :  { %5353 = vmatprep.subr.mxu1 %v6284_v1 }
 0x55f   :  { %5354 = vmatpush3.msra.mxu1 %v534_v54 }
 0x560   :  { %5957 = vmatprep.subr.mxu1 %v6284_v1 }
 0x561   :  { %1160 = vrot.lane.b32.xlu0 %v6690_v37, %s6289_s29 }
 0x565   :  { %1164 = vrot.lane.b32.xlu0 %v6676_v29, %s6289_s29 }
 0x569   :  { %1463 = vrot.lane.b32.xlu0 %v6676_v29, %s6290_s30 }
 0x573   :  { %v789_v52 = vpop.xlane.xlu0 %788 }
 0x574   :  { %6019 = vrcp.f32 %v789_v52 }
 0x577   :  { %v792_v49 = vpop.xlane.xlu1 %791 }
 0x578   :  { %6021 = vrcp.f32 %v792_v49 }
 0x57b   :  { %v795_v29 = vpop.xlane.xlu0 %794 }
 0x57c   :  { %6023 = vrcp.f32 %v795_v29 }
 0x57f   :  { %v798_v20 = vpop.xlane.xlu0 %797 }
 0x580   :  { %6025 = vrcp.f32 %v798_v20 }
 0x581   :  { %v6020_v32 = vpop.eup %6019 }
 0x582   :  { %v823_v5 = vmul.f32 %v6020_v32, %v6887_v63 }
 0x583   :  { %v801_v6 = vpop.xlane.xlu1 %800  ;;  %v1177_v19 = vpop.permute.xlu0 %1176 }
 0x584   :  { %6027 = vrcp.f32 %v801_v6  ;;  %5325 = vmatmul.mubr.msk.f32.vlgmr.msra.gmra.mxu0 %vm731_vm5, %v823_v5 }
 0x585   :  { %v6022_v7 = vpop.eup %6021  ;;  %5383 = vmatpush3.xpose.msk.msra.mxu0 %vm566_vm4, %v1185_v51  ;;  %5327 = vmatprep.mubr.msk.f32.mxu0 %vm6285_vm0, %v6284_v1 }
 0x586   :  { %5384 = vmatprep.subr.mxu0 %v6284_v1  ;;  %v824_v10 = vmul.f32 %v6022_v7, %v6891_v45 }
 0x588   :  { %5328 = vmatmul.mubr.msk.f32.gmra.mxu0 %vm731_vm5, %v824_v10 }
 0x589   :  { %v6024_v12 = vpop.eup %6023  ;;  %5385 = vmatpush3.xpose.msk.msra.mxu0 %vm566_vm4, %v1183_v46  ;;  %5330 = vmatprep.mubr.msk.f32.mxu0 %vm6285_vm0, %v6284_v1 }
 0x58a   :  { %5386 = vmatprep.subr.mxu0 %v6284_v1  ;;  %v825_v63 = vmul.f32 %v6024_v12, %v6896_v50 }
 0x58c   :  { %5331 = vmatmul.mubr.msk.f32.gmra.mxu0 %vm731_vm5, %v825_v63 }
 0x58d   :  { %v6026_v13 = vpop.eup %6025  ;;  %5387 = vmatpush3.xpose.msk.msra.mxu0 %vm566_vm4, %v1181_v9  ;;  %5333 = vmatprep.mubr.msk.f32.mxu0 %vm6285_vm0, %v6284_v1 }
 0x58e   :  { %5388 = vmatprep.subr.mxu0 %v6284_v1  ;;  %v826_v45 = vmul.f32 %v6026_v13, %v6901_v14  ;;  %v807_v14 = vpop.xlane.xlu1 %806 }
 0x590   :  { %5334 = vmatmul.mubr.msk.f32.gmra.mxu0 %vm731_vm5, %v826_v45 }
 0x591   :  { %v6028_v15 = vpop.eup %6027  ;;  %5389 = vmatpush3.xpose.msk.msra.mxu0 %vm566_vm4, %v1179_v22  ;;  %5336 = vmatprep.mubr.msk.f32.mxu0 %vm6285_vm0, %v6284_v1 }
 0x592   :  { %5390 = vmatprep.subr.mxu0 %v6284_v1  ;;  %v827_v50 = vmul.f32 %v6028_v15, %v6907_v56 }
 0x594   :  { %5337 = vmatmul.mubr.msk.f32.gmra.mxu0 %vm731_vm5, %v827_v50 }
 0x595   :  { %5391 = vmatpush3.xpose.msk.msra.mxu0 %vm566_vm4, %v1177_v19  ;;  %5339 = vmatprep.mubr.msk.f32.mxu0 %vm6285_vm0, %v6284_v1 }
 0x596   :  { %5392 = vmatprep.subr.mxu0 %v6284_v1 }
 0x5b4   :  { %v804_v11 = vpop.xlane.xlu0 %803 }
 0x5b5   :  { %6029 = vrcp.f32 %v804_v11 }
 0x5b6   :  { %6031 = vrcp.f32 %v807_v14 }
 0x5bc   :  { %v810_v24 = vpop.xlane.xlu0 %809 }
 0x5bd   :  { %6033 = vrcp.f32 %v810_v24 }
 0x5c0   :  { %v1173_v16 = vpop.permute.xlu0 %1172  ;;  %v813_v30 = vpop.xlane.xlu1 %812 }
 0x5c1   :  { %6035 = vrcp.f32 %v813_v30 }
 0x5c2   :  { %v6030_v56 = vpop.eup %6029 }
 0x5c3   :  { %v828_v61 = vmul.f32 %v6030_v56, %v6920_v21  ;;  %v6032_v27 = vpop.eup %6031 }
 0x5c4   :  { %v1171_v2 = vpop.permute.xlu0 %1170  ;;  %v1175_v35 = vpop.permute.xlu1 %1174  ;;  %v829_v0 = vmul.f32 %v6032_v27, %v6911_v26 }
 0x5c5   :  { %5340 = vmatmul.mubr.msk.f32.gmra.mxu0 %vm731_vm5, %v828_v61 }
 0x5c6   :  { %5393 = vmatpush3.xpose.msk.msra.mxu0 %vm566_vm4, %v1175_v35  ;;  %5342 = vmatprep.mubr.msk.f32.mxu0 %vm6285_vm0, %v6284_v1 }
 0x5c7   :  { %5394 = vmatprep.subr.mxu0 %v6284_v1 }
 0x5c8   :  { %v1169_v47 = vpop.permute.xlu0 %1168  ;;  %v1155_v46 = vpop.permute.xlu1 %1154 }
 0x5c9   :  { %5343 = vmatmul.mubr.msk.f32.gmra.mxu0 %vm731_vm5, %v829_v0 }
 0x5ca   :  { %v6034_v9 = vpop.eup %6033  ;;  %5395 = vmatpush3.xpose.msk.msra.mxu0 %vm566_vm4, %v1173_v16  ;;  %5345 = vmatprep.mubr.msk.f32.mxu0 %vm6285_vm0, %v6284_v1 }
 0x5cb   :  { %5396 = vmatprep.subr.mxu0 %v6284_v1  ;;  %v830_v21 = vmul.f32 %v6034_v9, %v6928_v59 }
 0x5cc   :  { %v1151_v22 = vpop.permute.xlu0 %1150  ;;  %v1159_v51 = vpop.permute.xlu1 %1158 }
 0x5cd   :  { %5346 = vmatmul.mubr.msk.f32.gmra.mxu0 %vm731_vm5, %v830_v21 }
 0x5ce   :  { %v6036_v52 = vpop.eup %6035  ;;  %5397 = vmatpush3.xpose.msk.msra.mxu0 %vm566_vm4, %v1171_v2  ;;  %5348 = vmatprep.mubr.msk.f32.mxu0 %vm6285_vm0, %v6284_v1 }
 0x5cf   :  { %5398 = vmatprep.subr.mxu0 %v6284_v1  ;;  %v831_v26 = vmul.f32 %v6036_v52, %v6934_v39 }
 0x5d0   :  { %v1153_v34 = vpop.permute.xlu0 %1152  ;;  %v1163_v54 = vpop.permute.xlu1 %1162 }
 0x5d1   :  { %5349 = vmatmul.mubr.msk.f32.gmra.mxu0 %vm731_vm5, %v831_v26 }
 0x5d2   :  { %5399 = vmatpush3.xpose.msk.msra.mxu0 %vm566_vm4, %v1169_v47  ;;  %5400 = vmatprep.mubr.msk.f32.mxu0 %vm6285_vm0, %v6284_v1 }
 0x5d3   :  { %5427 = vmatprep.subr.mxu0 %v6284_v1 }
 0x5d4   :  { %v1157_v59 = vpop.permute.xlu0 %1156  ;;  %v1167_v49 = vpop.permute.xlu1 %1166 }
 0x5d5   :  { %5401 = vmatmul.mubr.msk.f32.vlgmr.msra.gmra.mxu0 %vm566_vm4, %v1151_v22 }
 0x5d6   :  { %5403 = vmatprep.mubr.msk.f32.mxu0 %vm6285_vm0, %v6284_v1 }
 0x5d8   :  { %v1161_v29 = vpop.permute.xlu0 %1160  ;;  %v1466_v39 = vpop.permute.xlu1 %1465 }
 0x5d9   :  { %5404 = vmatmul.mubr.msk.f32.gmra.mxu0 %vm566_vm4, %v1153_v34 }
 0x5da   :  { %5428 = vmatpush3.msk.msra.mxu0 %vm885_vm7, %v1466_v39  ;;  %5406 = vmatprep.mubr.msk.f32.mxu0 %vm6285_vm0, %v6284_v1 }
 0x5db   :  { %5429 = vmatprep.subr.mxu0 %v6284_v1 }
 0x5dc   :  { %v1165_v20 = vpop.permute.xlu0 %1164 }
 0x5dd   :  { %5407 = vmatmul.mubr.msk.f32.gmra.mxu0 %vm566_vm4, %v1155_v46 }
 0x5de   :  { %5409 = vmatprep.mubr.msk.f32.mxu0 %vm6285_vm0, %v6284_v1 }
 0x5e0   :  { %v1464_v32 = vpop.permute.xlu0 %1463 }
 0x5e1   :  { %5410 = vmatmul.mubr.msk.f32.gmra.mxu0 %vm566_vm4, %v1157_v59 }
 0x5e2   :  { %5430 = vmatpush3.msra.mxu0 %v1464_v32  ;;  %5412 = vmatprep.mubr.msk.f32.mxu0 %vm6285_vm0, %v6284_v1 }
 0x5e3   :  { %5431 = vmatprep.subr.mxu0 %v6284_v1 }
 0x5e5   :  { %5413 = vmatmul.mubr.msk.f32.gmra.mxu0 %vm566_vm4, %v1159_v51 }
 0x5e6   :  { %5415 = vmatprep.mubr.msk.f32.mxu0 %vm6285_vm0, %v6284_v1 }
 0x5e9   :  { %5416 = vmatmul.mubr.msk.f32.gmra.mxu0 %vm566_vm4, %v1161_v29 }
 0x5ea   :  { %5418 = vmatprep.mubr.msk.f32.mxu0 %vm6285_vm0, %v6284_v1 }
 0x5ed   :  { %5419 = vmatmul.mubr.msk.f32.gmra.mxu0 %vm566_vm4, %v1163_v54 }
 0x5ee   :  { %5421 = vmatprep.mubr.msk.f32.mxu0 %vm6285_vm0, %v6284_v1 }
 0x5f1   :  { %5422 = vmatmul.mubr.msk.f32.gmra.mxu0 %vm566_vm4, %v1165_v20 }
 0x5f2   :  { %5424 = vmatprep.mubr.msk.f32.mxu0 %vm6285_vm0, %v6284_v1 }
 0x5f5   :  { %5425 = vmatmul.mubr.msk.f32.gmra.mxu0 %vm566_vm4, %v1167_v49 }
 0x5f6   :  { %5445 = vmatprep.mubr.msk.f32.mxu0 %vm6285_vm0, %v6284_v1 }
 0x644   :  { %v954_v5 = vpop.f32.mrf.mxu0 }
 0x645   :  { %5356 = vmatmul.mubr.msk.f32.vlgmr.msra.gmra.mxu1 %vm566_vm4, %v954_v5 }
 0x646   :  { %5966 = vmatpush3.msk.msra.mxu1 %vm885_vm7, %v1466_v39  ;;  %v5326_v6 = vpop.f32.mrf.mxu0  ;;  %5358 = vmatprep.mubr.msk.f32.mxu1 %vm6285_vm0, %v6284_v1 }
 0x647   :  { %5958 = vmatprep.subr.mxu1 %v6284_v1 }
 0x648   :  { %5967 = vmatpush3.msra.mxu1 %v1464_v32  ;;  %v959_v7 = vpop.f32.mrf.mxu0 }
 0x649   :  { %5359 = vmatmul.mubr.msk.f32.gmra.mxu1 %vm566_vm4, %v959_v7  ;;  %5959 = vmatprep.subr.mxu1 %v6284_v1 }
 0x64a   :  { %v5329_v10 = vpop.f32.mrf.mxu0  ;;  %5361 = vmatprep.mubr.msk.f32.mxu1 %vm6285_vm0, %v6284_v1 }
 0x64c   :  { %v964_v12 = vpop.f32.mrf.mxu0 }
 0x64d   :  { %5362 = vmatmul.mubr.msk.f32.gmra.mxu1 %vm566_vm4, %v964_v12 }
 0x64e   :  { %v5332_v63 = vpop.f32.mrf.mxu0  ;;  %5364 = vmatprep.mubr.msk.f32.mxu1 %vm6285_vm0, %v6284_v1 }
 0x650   :  { %v969_v13 = vpop.f32.mrf.mxu0 }
 0x651   :  { %5365 = vmatmul.mubr.msk.f32.gmra.mxu1 %vm566_vm4, %v969_v13 }
 0x652   :  { %v5335_v45 = vpop.f32.mrf.mxu0  ;;  %5367 = vmatprep.mubr.msk.f32.mxu1 %vm6285_vm0, %v6284_v1 }
 0x654   :  { %v974_v15 = vpop.f32.mrf.mxu0 }
 0x655   :  { %5368 = vmatmul.mubr.msk.f32.gmra.mxu1 %vm566_vm4, %v974_v15 }
 0x656   :  { %v5338_v50 = vpop.f32.mrf.mxu0  ;;  %5370 = vmatprep.mubr.msk.f32.mxu1 %vm6285_vm0, %v6284_v1 }
 0x685   :  { %v979_v19 = vpop.f32.mrf.mxu0 }
 0x686   :  { %5371 = vmatmul.mubr.msk.f32.gmra.mxu1 %vm566_vm4, %v979_v19 }
 0x687   :  { %v5341_v14 = vpop.f32.mrf.mxu0  ;;  %5373 = vmatprep.mubr.msk.f32.mxu1 %vm6285_vm0, %v6284_v1 }
 0x689   :  { %v984_v11 = vpop.f32.mrf.mxu0 }
 0x68a   :  { %5374 = vmatmul.mubr.msk.f32.gmra.mxu1 %vm566_vm4, %v984_v11 }
 0x68b   :  { %v5344_v24 = vpop.f32.mrf.mxu0  ;;  %5376 = vmatprep.mubr.msk.f32.mxu1 %vm6285_vm0, %v6284_v1 }
 0x68d   :  { %v989_v16 = vpop.f32.mrf.mxu0 }
 0x68e   :  { %5377 = vmatmul.mubr.msk.f32.gmra.mxu1 %vm566_vm4, %v989_v16 }
 0x68f   :  { %v5347_v30 = vpop.f32.mrf.mxu0  ;;  %5379 = vmatprep.mubr.msk.f32.mxu1 %vm6285_vm0, %v6284_v1 }
 0x691   :  { %v994_v56 = vpop.f32.mrf.mxu0 }
 0x692   :  { %5380 = vmatmul.mubr.msk.f32.gmra.mxu1 %vm566_vm4, %v994_v56 }
 0x693   :  { %v5350_v61 = vpop.f32.mrf.mxu0  ;;  %5454 = vmatprep.mubr.msk.f32.mxu1 %vm6285_vm0, %v6284_v1 }
 0x695   :  { %v1288_v27 = vpop.f32.mrf.mxu0 }
 0x696   :  { %v1332_v2 = vmul.f32 0.25, %v1288_v27 }
 0x697   :  { %v5402_v35 = vpop.f32.mrf.mxu0 }
 0x698   :  { %v7092_v0 = vadd.f32 %v1332_v2, %v6769_v55 }
 0x699   :  { %v1293_v47 = vpop.f32.mrf.mxu0 }
 0x69a   :  { %v1333_v46 = vmul.f32 0.25, %v1293_v47  ;;  %v1350_v9 = vsel %vm731_vm5, %v7092_v0, -inf }
 0x69b   :  { %1351 = vmax.xlane.f32.xlu0 %v1350_v9  ;;  %v5405_v21 = vpop.f32.mrf.mxu0 }
 0x69c   :  { %v7097_v22 = vadd.f32 %v1333_v46, %v6777_v60 }
 0x69d   :  { %v1298_v51 = vpop.f32.mrf.mxu0 }
 0x69e   :  { %v1334_v52 = vmul.f32 0.25, %v1298_v51  ;;  %v1353_v26 = vsel %vm731_vm5, %v7097_v22, -inf }
 0x69f   :  { %1354 = vmax.xlane.f32.xlu1 %v1353_v26  ;;  %v5408_v34 = vpop.f32.mrf.mxu0 }
 0x6a0   :  { %v1343_v55 = vadd.f32 %v1334_v52, %v6787_v3 }
 0x6a1   :  { %v1303_v54 = vpop.f32.mrf.mxu0 }
 0x6a2   :  { %v1335_v59 = vmul.f32 0.25, %v1303_v54  ;;  %v1356_v49 = vsel %vm731_vm5, %v1343_v55, -inf }
 0x6a3   :  { %1357 = vmax.xlane.f32.xlu0 %v1356_v49  ;;  %v5411_v29 = vpop.f32.mrf.mxu0 }
 0x6a4   :  { %v1344_v39 = vadd.f32 %v1335_v59, %v6797_v8 }
 0x6a5   :  { %v1308_v20 = vpop.f32.mrf.mxu0 }
 0x6a6   :  { %v1336_v60 = vmul.f32 0.25, %v1308_v20  ;;  %v1359_v32 = vsel %vm731_vm5, %v1344_v39, -inf }
 0x6a7   :  { %1360 = vmax.xlane.f32.xlu0 %v1359_v32  ;;  %v5414_v5 = vpop.f32.mrf.mxu0 }
 0x6a8   :  { %v1345_v6 = vadd.f32 %v1336_v60, %v6807_v17 }
 0x6a9   :  { %v1313_v7 = vpop.f32.mrf.mxu0 }
 0x6aa   :  { %v1337_v10 = vmul.f32 0.25, %v1313_v7  ;;  %v1362_v3 = vsel %vm731_vm5, %v1345_v6, -inf }
 0x6ab   :  { %1363 = vmax.xlane.f32.xlu1 %v1362_v3  ;;  %v5417_v12 = vpop.f32.mrf.mxu0 }
 0x6ac   :  { %v7108_v63 = vadd.f32 %v1337_v10, %v6817_v25 }
 0x6ad   :  { %v1318_v13 = vpop.f32.mrf.mxu0 }
 0x6ae   :  { %v1338_v45 = vmul.f32 0.25, %v1318_v13  ;;  %v1365_v8 = vsel %vm731_vm5, %v7108_v63, -inf }
 0x6af   :  { %1366 = vmax.xlane.f32.xlu0 %v1365_v8  ;;  %v5420_v15 = vpop.f32.mrf.mxu0 }
 0x6b0   :  { %v7113_v50 = vadd.f32 %v1338_v45, %v6827_v44 }
 0x6b1   :  { %v1323_v17 = vpop.f32.mrf.mxu0 }
 0x6b2   :  { %v1339_v19 = vmul.f32 0.25, %v1323_v17  ;;  %v1368_v14 = vsel %vm731_vm5, %v7113_v50, -inf }
 0x6b3   :  { %1369 = vmax.xlane.f32.xlu1 %v1368_v14  ;;  %v5423_v11 = vpop.f32.mrf.mxu0 }
 0x6b4   :  { %v7118_v25 = vadd.f32 %v1339_v19, %v6843_v57 }
 0x6b5   :  { %v1328_v24 = vpop.f32.mrf.mxu0 }
 0x6b6   :  { %v1340_v16 = vmul.f32 0.25, %v1328_v24  ;;  %v1371_v30 = vsel %vm731_vm5, %v7118_v25, -inf }
 0x6b7   :  { %1372 = vmax.xlane.f32.xlu0 %v1371_v30  ;;  %v5426_v56 = vpop.f32.mrf.mxu0 }
 0x6b8   :  { %v7123_v44 = vadd.f32 %v1340_v16, %v6851_v62 }
 0x6ba   :  { %v1374_v61 = vsel %vm756_vm6, %v7123_v44, -inf }
 0x6bb   :  { %1375 = vmax.xlane.f32.xlu1 %v1374_v61 }
 0x6cc   :  { %1461 = vrot.lane.b32.xlu1 %v6680_v31, %s6290_s30 }
 0x6cd   :  { %1459 = vrot.lane.b32.xlu0 %v6690_v37, %s6290_s30 }
 0x6d1   :  { %1457 = vrot.lane.b32.xlu0 %v6688_v36, %s6290_s30 }
 0x705   :  { %v7133_v57 = vpop.f32.mrf.mxu1 }
 0x707   :  { %v5357_v27 = vpop.f32.mrf.mxu1 }
 0x709   :  { %v7135_v2 = vpop.f32.mrf.mxu1 }
 0x70b   :  { %v5360_v62 = vpop.f32.mrf.mxu1 }
 0x70d   :  { %v7137_v35 = vpop.f32.mrf.mxu1 }
 0x70f   :  { %v5363_v47 = vpop.f32.mrf.mxu1 }
 0x711   :  { %v7139_v46 = vpop.f32.mrf.mxu1 }
 0x713   :  { %v5366_v9 = vpop.f32.mrf.mxu1 }
 0x715   :  { %v7141_v21 = vpop.f32.mrf.mxu1 }
 0x717   :  { %v5369_v31 = vpop.f32.mrf.mxu1 }
 0x724   :  { %v1352_v51 = vpop.xlane.xlu0 %1351 }
 0x725   :  { %v1377_v37 = vsub.f32 %v7092_v0, %v1352_v51 }
 0x727   :  { %v1386_v52 = vmul.f32 1.442695, %v1377_v37 }
 0x728   :  { %v1355_v36 = vpop.xlane.xlu1 %1354 }
 0x729   :  { %6037 = vpow2.f32 %v1386_v52  ;;  %v1378_v26 = vsub.f32 %v7097_v22, %v1355_v36 }
 0x72b   :  { %v1388_v34 = vmul.f32 1.442695, %v1378_v26 }
 0x72c   :  { %v1358_v54 = vpop.xlane.xlu0 %1357 }
 0x72d   :  { %6039 = vpow2.f32 %v1388_v34  ;;  %v1379_v59 = vsub.f32 %v1343_v55, %v1358_v54 }
 0x72f   :  { %v1390_v49 = vmul.f32 1.442695, %v1379_v59 }
 0x730   :  { %v1361_v29 = vpop.xlane.xlu0 %1360 }
 0x731   :  { %6041 = vpow2.f32 %v1390_v49  ;;  %v1380_v20 = vsub.f32 %v1344_v39, %v1361_v29 }
 0x733   :  { %v1392_v60 = vmul.f32 1.442695, %v1380_v20 }
 0x734   :  { %v1364_v32 = vpop.xlane.xlu1 %1363 }
 0x735   :  { %6043 = vpow2.f32 %v1392_v60  ;;  %v1381_v5 = vsub.f32 %v1345_v6, %v1364_v32 }
 0x736   :  { %v7145_v7 = vpop.eup %6037 }
 0x737   :  { %v1394_v0 = vmul.f32 1.442695, %v1381_v5  ;;  %v1404_v10 = vsel %vm731_vm5, %v7145_v7, 0.0 }
 0x738   :  { %1405 = vadd.xlane.f32.xlu0 %v1404_v10  ;;  %v1367_v3 = vpop.xlane.xlu0 %1366 }
 0x739   :  { %6045 = vpow2.f32 %v1394_v0  ;;  %v1382_v31 = vsub.f32 %v7108_v63, %v1367_v3 }
 0x73a   :  { %v7149_v22 = vpop.eup %6039 }
 0x73b   :  { %v1407_v55 = vsel %vm731_vm5, %v7149_v22, 0.0  ;;  %v1396_v51 = vmul.f32 1.442695, %v1382_v31 }
 0x73c   :  { %1408 = vadd.xlane.f32.xlu1 %v1407_v55  ;;  %v1370_v12 = vpop.xlane.xlu1 %1369 }
 0x73d   :  { %v1383_v37 = vsub.f32 %v7113_v50, %v1370_v12  ;;  %6047 = vpow2.f32 %v1396_v51 }
 0x73e   :  { %v7153_v39 = vpop.eup %6041 }
 0x73f   :  { %v1410_v6 = vsel %vm731_vm5, %v7153_v39, 0.0  ;;  %v1398_v52 = vmul.f32 1.442695, %v1383_v37  ;;  %v536_v37 = vld [vmem:[%s8710_s9 + $0x10] sm:$0xff] }
 0x740   :  { %1411 = vadd.xlane.f32.xlu0 %v1410_v6  ;;  %v1373_v13 = vpop.xlane.xlu0 %1372 }
 0x741   :  { %6049 = vpow2.f32 %v1398_v52 }
 0x742   :  { %v7157_v45 = vpop.eup %6043 }
 0x743   :  { %v1413_v8 = vsel %vm731_vm5, %v7157_v45, 0.0 }
 0x744   :  { %1414 = vadd.xlane.f32.xlu0 %v1413_v8  ;;  %v1376_v15 = vpop.xlane.xlu1 %1375  ;;  %v1460_v14 = vpop.permute.xlu0 %1459 }
 0x745   :  { %v1385_v36 = vsub.f32 %v7123_v44, %v1376_v15  ;;  %v1384_v44 = vsub.f32 %v7118_v25, %v1373_v13 }
 0x746   :  { %v7161_v17 = vpop.eup %6045  ;;  %v7163_v19 = vpop.f32.mrf.mxu1 }
 0x747   :  { %v1416_v11 = vsel %vm731_vm5, %v7161_v17, 0.0  ;;  %v1402_v26 = vmul.f32 1.442695, %v1385_v36  ;;  %v1400_v59 = vmul.f32 1.442695, %v1384_v44 }
 0x748   :  { %v5372_v24 = vpop.f32.mrf.mxu1  ;;  %1417 = vadd.xlane.f32.xlu1 %v1416_v11  ;;  %v1462_v16 = vpop.permute.xlu1 %1461  ;;  %v537_v11 = vld [vmem:[%s8710_s9 + $0x18] sm:$0xff] }
 0x749   :  { %5432 = vmatpush3.msra.mxu0 %v1462_v16  ;;  %5968 = vmatpush3.msra.mxu1 %v1462_v16  ;;  %v1458_v61 = vpop.permute.xlu0 %1457  ;;  %6051 = vpow2.f32 %v1402_v26 }
 0x74a   :  { %v7167_v30 = vpop.f32.mrf.mxu1  ;;  %5433 = vmatprep.subr.mxu0 %v6284_v1  ;;  %5960 = vmatprep.subr.mxu1 %v6284_v1  ;;  %v7186_v34 = vpop.eup %6047  ;;  %6053 = vpow2.f32 %v1400_v59 }
 0x74b   :  { %5434 = vmatpush3.msra.mxu0 %v1460_v14  ;;  %5969 = vmatpush3.msra.mxu1 %v1460_v14 }
 0x74c   :  { %v5375_v56 = vpop.f32.mrf.mxu1  ;;  %5435 = vmatprep.subr.mxu0 %v6284_v1  ;;  %5961 = vmatprep.subr.mxu1 %v6284_v1 }
 0x74d   :  { %5436 = vmatpush3.msra.mxu0 %v1458_v61  ;;  %5970 = vmatpush3.msra.mxu1 %v1458_v61 }
 0x74e   :  { %v7173_v27 = vpop.f32.mrf.mxu1  ;;  %5437 = vmatprep.subr.mxu0 %v6284_v1  ;;  %5962 = vmatprep.subr.mxu1 %v6284_v1  ;;  %v7190_v54 = vpop.eup %6049 }
 0x750   :  { %v5378_v62 = vpop.f32.mrf.mxu1 }
 0x752   :  { %v7177_v47 = vpop.f32.mrf.mxu1 }
 0x754   :  { %v5381_v9 = vpop.f32.mrf.mxu1 }
 0x756   :  { %v7194_v63 = vpop.eup %6051 }
 0x757   :  { %v1428_v50 = vsel %vm756_vm6, %v7194_v63, 0.0  ;;  %v7203_v49 = vpop.eup %6053 }
 0x758   :  { %v1425_v29 = vsel %vm731_vm5, %v7203_v49, 0.0 }
 0x759   :  { %1455 = vrot.lane.b32.xlu1 %v6698_v40, %s6290_s30  ;;  %v1419_v40 = vsel %vm731_vm5, %v7186_v34, 0.0 }
 0x75a   :  { %1453 = vrot.lane.b32.xlu0 %v6696_v4, %s6290_s30  ;;  %v1422_v4 = vsel %vm731_vm5, %v7190_v54, 0.0 }
 0x779   :  { %1420 = vadd.xlane.f32.xlu0 %v1419_v40 }
 0x77d   :  { %1423 = vadd.xlane.f32.xlu1 %v1422_v4 }
 0x781   :  { %1429 = vadd.xlane.f32.xlu1 %v1428_v50 }
 0x78f   :  { %1451 = vrot.lane.b32.xlu0 %v6706_v42, %s6290_s30 }
 0x793   :  { %1449 = vrot.lane.b32.xlu0 %v6704_v41, %s6290_s30 }
 0x7b2   :  { %1426 = vadd.xlane.f32.xlu0 %v1425_v29 }
 0x7c1   :  { %v1406_v20 = vpop.xlane.xlu0 %1405 }
 0x7c2   :  { %6055 = vrcp.f32 %v1406_v20 }
 0x7c5   :  { %v1409_v32 = vpop.xlane.xlu1 %1408 }
 0x7c9   :  { %v1412_v60 = vpop.xlane.xlu0 %1411 }
 0x7cd   :  { %v1415_v5 = vpop.xlane.xlu0 %1414 }
 0x7ce   :  { %6057 = vrcp.f32 %v1415_v5 }
 0x7cf   :  { %6059 = vrcp.f32 %v1409_v32  ;;  %v6056_v25 = vpop.eup %6055 }
 0x7d0   :  { %v1440_v13 = vmul.f32 %v6056_v25, %v7145_v7 }
 0x7d1   :  { %v1418_v0 = vpop.xlane.xlu1 %1417  ;;  %v1454_v42 = vpop.permute.xlu0 %1453 }
 0x7d2   :  { %6061 = vrcp.f32 %v1418_v0 }
 0x7d3   :  { %6063 = vrcp.f32 %v1412_v60 }
 0x7d5   :  { %v1456_v10 = vpop.permute.xlu1 %1455 }
 0x7d6   :  { %5438 = vmatpush3.msra.mxu0 %v1456_v10  ;;  %5971 = vmatpush3.msra.mxu1 %v1456_v10 }
 0x7d7   :  { %5439 = vmatprep.subr.mxu0 %v6284_v1  ;;  %5963 = vmatprep.subr.mxu1 %v6284_v1 }
 0x7d8   :  { %5440 = vmatpush3.msra.mxu0 %v1454_v42  ;;  %5972 = vmatpush3.msra.mxu1 %v1454_v42  ;;  %v4687_v42 = vld [vmem:[%s8711_s10] ss:$0 sm:$0xff] }
 0x7d9   :  { %5441 = vmatprep.subr.mxu0 %v6284_v1  ;;  %5964 = vmatprep.subr.mxu1 %v6284_v1 }
 0x7db   :  { %v6058_v6 = vpop.eup %6057 }
 0x7dc   :  { %v6060_v12 = vpop.eup %6059  ;;  %v1443_v8 = vmul.f32 %v6058_v6, %v7157_v45  ;;  %v1142_v6 = vadd.f32 %v4687_v42, %v7135_v2 }
 0x7dd   :  { %v1441_v7 = vmul.f32 %v6060_v12, %v7149_v22 }
 0x7df   :  { %v6062_v14 = vpop.eup %6061 }
 0x7e0   :  { %v1444_v45 = vmul.f32 %v6062_v14, %v7161_v17  ;;  %v6064_v24 = vpop.eup %6063 }
 0x7e1   :  { %v1442_v17 = vmul.f32 %v6064_v24, %v7153_v39  ;;  %v1144_v24 = vadd.f32 %v4687_v42, %v7139_v46 }
 0x802   :  { %v1421_v41 = vpop.xlane.xlu0 %1420 }
 0x803   :  { %6065 = vrcp.f32 %v1421_v41  ;;  %v1141_v41 = vadd.f32 %v4687_v42, %v7133_v57 }
 0x806   :  { %v1452_v55 = vpop.permute.xlu0 %1451  ;;  %v1424_v3 = vpop.xlane.xlu1 %1423 }
 0x807   :  { %6067 = vrcp.f32 %v1424_v3  ;;  %5442 = vmatpush3.msra.mxu0 %v1452_v55  ;;  %5973 = vmatpush3.msra.mxu1 %v1452_v55 }
 0x808   :  { %5443 = vmatprep.subr.mxu0 %v6284_v1  ;;  %5965 = vmatprep.subr.mxu1 %v6284_v1 }
 0x80a   :  { %v1450_v15 = vpop.permute.xlu0 %1449  ;;  %v1430_v39 = vpop.xlane.xlu1 %1429 }
 0x80b   :  { %5444 = vmatpush3.msra.mxu0 %v1450_v15  ;;  %5974 = vmatpush3.msra.mxu1 %v1450_v15 }
 0x80c   :  { %5446 = vmatmul.mubr.msk.f32.vlgmr.msra.gmra.mxu0 %vm731_vm5, %v1440_v13  ;;  %5455 = vmatmul.mubr.msk.f32.vlgmr.msra.gmra.mxu1 %vm731_vm5, %v1443_v8 }
 0x80d   :  { %5448 = vmatprep.mubr.msk.f32.mxu0 %vm6285_vm0, %v6284_v1  ;;  %5457 = vmatprep.mubr.msk.f32.mxu1 %vm6285_vm0, %v6284_v1 }
 0x80e   :  { %5472 = vmatprep.subr.mxu0 %v6284_v1  ;;  %5503 = vmatprep.subr.mxu1 %v6284_v1 }
 0x80f   :  { %5473 = vmatpush3.msra.mxu0 %v537_v11  ;;  %v1143_v11 = vadd.f32 %v4687_v42, %v7137_v35 }
 0x810   :  { %v6066_v16 = vpop.eup %6065  ;;  %5449 = vmatmul.mubr.msk.f32.gmra.mxu0 %vm731_vm5, %v1441_v7  ;;  %5458 = vmatmul.mubr.msk.f32.gmra.mxu1 %vm731_vm5, %v1444_v45 }
 0x811   :  { %5451 = vmatprep.mubr.msk.f32.mxu0 %vm6285_vm0, %v6284_v1  ;;  %5460 = vmatprep.mubr.msk.f32.mxu1 %vm6285_vm0, %v6284_v1  ;;  %v1445_v22 = vmul.f32 %v6066_v16, %v7186_v34 }
 0x812   :  { %5474 = vmatprep.subr.mxu0 %v6284_v1 }
 0x813   :  { %5475 = vmatpush3.msra.mxu0 %v536_v37 }
 0x814   :  { %v6068_v56 = vpop.eup %6067  ;;  %5452 = vmatmul.mubr.msk.f32.gmra.mxu0 %vm731_vm5, %v1442_v17  ;;  %5461 = vmatmul.mubr.msk.f32.gmra.mxu1 %vm731_vm5, %v1445_v22 }
 0x815   :  { %5463 = vmatprep.mubr.msk.f32.mxu1 %vm6285_vm0, %v6284_v1  ;;  %v1446_v61 = vmul.f32 %v6068_v56, %v7190_v54  ;;  %5476 = vmatprep.mubr.msk.f32.mxu0 %vm6285_vm0, %v6284_v1  ;;  %v1145_v56 = vadd.f32 %v4687_v42, %v7141_v21 }
 0x816   :  { %5538 = vmatprep.subr.mxu0 %v6284_v1 }
 0x818   :  { %5464 = vmatmul.mubr.msk.f32.gmra.mxu1 %vm731_vm5, %v1446_v61 }
 0x819   :  { %5466 = vmatprep.mubr.msk.f32.mxu1 %vm6285_vm0, %v6284_v1 }
 0x83b   :  { %v1427_v62 = vpop.xlane.xlu0 %1426 }
 0x83c   :  { %6069 = vrcp.f32 %v1427_v62 }
 0x83d   :  { %6071 = vrcp.f32 %v1430_v39 }
 0x849   :  { %v6070_v9 = vpop.eup %6069 }
 0x84a   :  { %v1447_v31 = vmul.f32 %v6070_v9, %v7203_v49  ;;  %v6072_v51 = vpop.eup %6071  ;;  %v1146_v9 = vadd.f32 %v4687_v42, %v7163_v19 }
 0x84b   :  { %v1448_v52 = vmul.f32 %v6072_v51, %v7194_v63 }
 0x84c   :  { %5467 = vmatmul.mubr.msk.f32.gmra.mxu1 %vm731_vm5, %v1447_v31 }
 0x84d   :  { %5469 = vmatprep.mubr.msk.f32.mxu1 %vm6285_vm0, %v6284_v1 }
 0x850   :  { %5470 = vmatmul.mubr.msk.f32.gmra.mxu1 %vm731_vm5, %v1448_v52  ;;  %v1147_v52 = vadd.f32 %v4687_v42, %v7167_v30 }
 0x851   :  { %5511 = vmatprep.mubr.msk.f32.mxu1 %vm6285_vm0, %v6284_v1 }
 0x8cc   :  { %v1570_v36 = vpop.f32.mrf.mxu0  ;;  %v1585_v26 = vpop.f32.mrf.mxu1 }
 0x8cd   :  { %5477 = vmatmul.mubr.msk.f32.vlgmr.msra.gmra.mxu0 %vm566_vm4, %v1570_v36 }
 0x8ce   :  { %v5447_v34 = vpop.f32.mrf.mxu0  ;;  %v5456_v40 = vpop.f32.mrf.mxu1  ;;  %5479 = vmatprep.mubr.msk.f32.mxu0 %vm6285_vm0, %v6284_v1 }
 0x8d0   :  { %v1575_v54 = vpop.f32.mrf.mxu0  ;;  %v1590_v4 = vpop.f32.mrf.mxu1 }
 0x8d1   :  { %5480 = vmatmul.mubr.msk.f32.gmra.mxu0 %vm566_vm4, %v1575_v54 }
 0x8d2   :  { %v5450_v63 = vpop.f32.mrf.mxu0  ;;  %v5459_v50 = vpop.f32.mrf.mxu1  ;;  %5482 = vmatprep.mubr.msk.f32.mxu0 %vm6285_vm0, %v6284_v1 }
 0x8d3   :  { %v1149_v50 = vadd.f32 %v4687_v42, %v7177_v47 }
 0x8d4   :  { %v1580_v44 = vpop.f32.mrf.mxu0  ;;  %v1595_v59 = vpop.f32.mrf.mxu1 }
 0x8d5   :  { %5483 = vmatmul.mubr.msk.f32.gmra.mxu0 %vm566_vm4, %v1580_v44 }
 0x8d6   :  { %v5453_v49 = vpop.f32.mrf.mxu0  ;;  %v5462_v29 = vpop.f32.mrf.mxu1  ;;  %5485 = vmatprep.mubr.msk.f32.mxu0 %vm6285_vm0, %v6284_v1 }
 0x8d8   :  { %v1600_v20 = vpop.f32.mrf.mxu1 }
 0x8d9   :  { %5486 = vmatmul.mubr.msk.f32.gmra.mxu0 %vm566_vm4, %v1585_v26 }
 0x8da   :  { %v5465_v60 = vpop.f32.mrf.mxu1  ;;  %5488 = vmatprep.mubr.msk.f32.mxu0 %vm6285_vm0, %v6284_v1 }
 0x8dd   :  { %5489 = vmatmul.mubr.msk.f32.gmra.mxu0 %vm566_vm4, %v1590_v4  ;;  %v1148_v4 = vadd.f32 %v4687_v42, %v7173_v27 }
 0x8de   :  { %5491 = vmatprep.mubr.msk.f32.mxu0 %vm6285_vm0, %v6284_v1 }
 0x8e1   :  { %5492 = vmatmul.mubr.msk.f32.gmra.mxu0 %vm566_vm4, %v1595_v59 }
 0x8e2   :  { %5494 = vmatprep.mubr.msk.f32.mxu0 %vm6285_vm0, %v6284_v1 }
 0x8e5   :  { %5495 = vmatmul.mubr.msk.f32.gmra.mxu0 %vm566_vm4, %v1600_v20 }
 0x8e6   :  { %5497 = vmatprep.mubr.msk.f32.mxu0 %vm6285_vm0, %v6284_v1 }
 0x90c   :  { %v1605_v32 = vpop.f32.mrf.mxu1 }
 0x90d   :  { %5498 = vmatmul.mubr.msk.f32.gmra.mxu0 %vm566_vm4, %v1605_v32 }
 0x90e   :  { %v5468_v5 = vpop.f32.mrf.mxu1  ;;  %5500 = vmatprep.mubr.msk.f32.mxu0 %vm6285_vm0, %v6284_v1 }
 0x910   :  { %v1610_v0 = vpop.f32.mrf.mxu1 }
 0x911   :  { %5501 = vmatmul.mubr.msk.f32.gmra.mxu0 %vm566_vm4, %v1610_v0 }
 0x912   :  { %v5471_v10 = vpop.f32.mrf.mxu1  ;;  %5554 = vmatprep.mubr.msk.f32.mxu0 %vm6285_vm0, %v6284_v1 }
 0x98d   :  { %v1707_v25 = vpop.f32.mrf.mxu0 }
 0x98e   :  { %v1751_v55 = vadd.f32 %v1707_v25, %v1141_v41 }
 0x98f   :  { %v5478_v3 = vpop.f32.mrf.mxu0 }
 0x990   :  { %v7292_v12 = vadd.f32 %v1751_v55, %v6479_v18 }
 0x991   :  { %v1712_v13 = vpop.f32.mrf.mxu0 }
 0x992   :  { %v1752_v8 = vadd.f32 %v1712_v13, %v1142_v6  ;;  %v1771_v15 = vsel %vm236_vm2, %v7292_v12, 0.0 }
 0x993   :  { %1772 = vadd.xlane.f32.xlu1 %v1771_v15  ;;  %v5481_v14 = vpop.f32.mrf.mxu0 }
 0x994   :  { %v7298_v7 = vadd.f32 %v1752_v8, %v6486_v23 }
 0x995   :  { %v1717_v57 = vpop.f32.mrf.mxu0 }
 0x996   :  { %v1753_v45 = vadd.f32 %v1717_v57, %v1143_v11  ;;  %v1774_v2 = vsel %vm236_vm2, %v7298_v7, 0.0 }
 0x997   :  { %1775 = vadd.xlane.f32.xlu1 %v1774_v2  ;;  %v5484_v18 = vpop.f32.mrf.mxu0 }
 0x998   :  { %v7304_v16 = vadd.f32 %v1753_v45, %v6493_v28 }
 0x999   :  { %v1722_v22 = vpop.f32.mrf.mxu0 }
 0x99a   :  { %v1754_v17 = vadd.f32 %v1722_v22, %v1144_v24  ;;  %v1777_v35 = vsel %vm236_vm2, %v7304_v16, 0.0 }
 0x99b   :  { %1778 = vadd.xlane.f32.xlu1 %v1777_v35  ;;  %v5487_v23 = vpop.f32.mrf.mxu0 }
 0x99c   :  { %v7310_v61 = vadd.f32 %v1754_v17, %v6500_v33 }
 0x99d   :  { %v1727_v39 = vpop.f32.mrf.mxu0 }
 0x99e   :  { %v1755_v62 = vadd.f32 %v1727_v39, %v1145_v56  ;;  %v1780_v46 = vsel %vm236_vm2, %v7310_v61, 0.0 }
 0x99f   :  { %1781 = vadd.xlane.f32.xlu1 %v1780_v46  ;;  %v5490_v28 = vpop.f32.mrf.mxu0 }
 0x9a0   :  { %v7316_v31 = vadd.f32 %v1755_v62, %v6507_v38 }
 0x9a1   :  { %v1732_v51 = vpop.f32.mrf.mxu0 }
 0x9a2   :  { %v1756_v37 = vadd.f32 %v1732_v51, %v1146_v9  ;;  %v1783_v21 = vsel %vm236_vm2, %v7316_v31, 0.0 }
 0x9a3   :  { %1784 = vadd.xlane.f32.xlu0 %v1783_v21  ;;  %v5493_v33 = vpop.f32.mrf.mxu0  ;;  %v1920_v21 = vld [vmem:[%s8714_s13 + $0x10] sm:$0xff] }
 0x9a4   :  { %v7322_v36 = vadd.f32 %v1756_v37, %v6514_v43  ;;  %v1921_v37 = vld [vmem:[%s8714_s13 + $0x18] sm:$0xff]  ;;  %v1919_v33 = vld [vmem:[%s8714_s13 + $0x8] sm:$0xff] }
 0x9a5   :  { %v1737_v26 = vpop.f32.mrf.mxu0  ;;  %5504 = vmatpush3.msra.mxu1 %v1921_v37 }
 0x9a6   :  { %v1757_v34 = vadd.f32 %v1737_v26, %v1147_v52  ;;  %v1786_v19 = vsel %vm236_vm2, %v7322_v36, 0.0  ;;  %5505 = vmatprep.subr.mxu1 %v6284_v1  ;;  %v1918_v52 = vld [vmem:[%s8714_s13] sm:$0xff] }
 0x9a7   :  { %1787 = vadd.xlane.f32.xlu1 %v1786_v19  ;;  %v5496_v38 = vpop.f32.mrf.mxu0  ;;  %5506 = vmatpush3.msra.mxu1 %v1920_v21 }
 0x9a8   :  { %v7327_v40 = vadd.f32 %v1757_v34, %v6521_v48  ;;  %5507 = vmatprep.subr.mxu1 %v6284_v1 }
 0x9a9   :  { %5508 = vmatpush3.msra.mxu1 %v1919_v33 }
 0x9aa   :  { %v1789_v54 = vsel %vm236_vm2, %v7327_v40, 0.0  ;;  %5509 = vmatprep.subr.mxu1 %v6284_v1 }
 0x9ab   :  { %1790 = vadd.xlane.f32.xlu0 %v1789_v54  ;;  %5510 = vmatpush3.msra.mxu1 %v1918_v52 }
 0x9ac   :  { %5581 = vmatprep.subr.mxu1 %v6284_v1 }
 0x9cd   :  { %v1742_v30 = vpop.f32.mrf.mxu0 }
 0x9ce   :  { %v1758_v63 = vadd.f32 %v1742_v30, %v1148_v4 }
 0x9cf   :  { %v5499_v43 = vpop.f32.mrf.mxu0 }
 0x9d0   :  { %v7334_v44 = vadd.f32 %v1758_v63, %v6528_v53 }
 0x9d1   :  { %v1747_v59 = vpop.f32.mrf.mxu0 }
 0x9d2   :  { %v1759_v49 = vadd.f32 %v1747_v59, %v1149_v50  ;;  %v1792_v48 = vsel %vm236_vm2, %v7334_v44, 0.0 }
 0x9d3   :  { %1793 = vadd.xlane.f32.xlu1 %v1792_v48  ;;  %v5502_v29 = vpop.f32.mrf.mxu0 }
 0x9d4   :  { %v7339_v20 = vadd.f32 %v1759_v49, %v6535_v58 }
 0x9d6   :  { %v1795_v27 = vsel %vm261_vm3, %v7339_v20, 0.0 }
 0x9d7   :  { %1796 = vadd.xlane.f32.xlu0 %v1795_v27 }
 0xa1c   :  { %v1773_v60 = vpop.xlane.xlu1 %1772 }
 0xa1d   :  { %v1798_v32 = vmul.f32 0.03125, %v1773_v60 }
 0xa1f   :  { %v7344_v47 = vsub.f32 %v7292_v12, %v1798_v32 }
 0xa20   :  { %v1776_v53 = vpop.xlane.xlu1 %1775 }
 0xa21   :  { %v1799_v5 = vmul.f32 0.03125, %v1776_v53  ;;  %v1816_v0 = vmul.f32 %v7344_v47, %v7344_v47 }
 0xa23   :  { %v7349_v10 = vsub.f32 %v7298_v7, %v1799_v5  ;;  %v1825_v58 = vsel %vm236_vm2, %v1816_v0, 0.0 }
 0xa24   :  { %1826 = vadd.xlane.f32.xlu1 %v1825_v58  ;;  %v1779_v42 = vpop.xlane.xlu1 %1778 }
 0xa25   :  { %v1800_v41 = vmul.f32 0.03125, %v1779_v42  ;;  %v1817_v25 = vmul.f32 %v7349_v10, %v7349_v10 }
 0xa27   :  { %v7355_v55 = vsub.f32 %v7304_v16, %v1800_v41  ;;  %v1828_v3 = vsel %vm236_vm2, %v1817_v25, 0.0 }
 0xa28   :  { %1829 = vadd.xlane.f32.xlu0 %v1828_v3  ;;  %v1782_v6 = vpop.xlane.xlu1 %1781 }
 0xa29   :  { %v1801_v13 = vmul.f32 0.03125, %v1782_v6  ;;  %v1818_v8 = vmul.f32 %v7355_v55, %v7355_v55  ;;  %v7416_v6 = vld [vmem:[%s8712_s11] ss:$0 sm:$0xff] }
 0xa2b   :  { %v7361_v15 = vsub.f32 %v7310_v61, %v1801_v13  ;;  %v1831_v14 = vsel %vm236_vm2, %v1818_v8, 0.0 }
 0xa2c   :  { %v1785_v11 = vpop.xlane.xlu0 %1784  ;;  %1832 = vadd.xlane.f32.xlu1 %v1831_v14 }
 0xa2d   :  { %v1802_v57 = vmul.f32 0.03125, %v1785_v11  ;;  %v1819_v45 = vmul.f32 %v7361_v15, %v7361_v15  ;;  %v7422_v11 = vld [vmem:[%s8713_s12] ss:$0 sm:$0xff] }
 0xa2f   :  { %v7367_v2 = vsub.f32 %v7316_v31, %v1802_v57  ;;  %v1834_v18 = vsel %vm236_vm2, %v1819_v45, 0.0 }
 0xa30   :  { %1835 = vadd.xlane.f32.xlu0 %v1834_v18  ;;  %v1788_v24 = vpop.xlane.xlu1 %1787 }
 0xa31   :  { %v1803_v22 = vmul.f32 0.03125, %v1788_v24  ;;  %v1820_v17 = vmul.f32 %v7367_v2, %v7367_v2 }
 0xa33   :  { %v7373_v35 = vsub.f32 %v7322_v36, %v1803_v22  ;;  %v1837_v23 = vsel %vm236_vm2, %v1820_v17, 0.0 }
 0xa34   :  { %v1791_v56 = vpop.xlane.xlu0 %1790  ;;  %1838 = vadd.xlane.f32.xlu1 %v1837_v23 }
 0xa35   :  { %v1804_v39 = vmul.f32 0.03125, %v1791_v56  ;;  %v1821_v62 = vmul.f32 %v7373_v35, %v7373_v35 }
 0xa37   :  { %v7379_v46 = vsub.f32 %v7327_v40, %v1804_v39  ;;  %v1840_v28 = vsel %vm236_vm2, %v1821_v62, 0.0 }
 0xa38   :  { %1841 = vadd.xlane.f32.xlu0 %v1840_v28 }
 0xa39   :  { %v1822_v9 = vmul.f32 %v7379_v46, %v7379_v46 }
 0xa3b   :  { %v1843_v51 = vsel %vm236_vm2, %v1822_v9, 0.0 }
 0xa3c   :  { %1844 = vadd.xlane.f32.xlu1 %v1843_v51 }
 0xa5c   :  { %v1794_v26 = vpop.xlane.xlu1 %1793 }
 0xa5d   :  { %v1805_v34 = vmul.f32 0.03125, %v1794_v26 }
 0xa5f   :  { %v7402_v19 = vsub.f32 %v7334_v44, %v1805_v34 }
 0xa60   :  { %v1797_v38 = vpop.xlane.xlu0 %1796 }
 0xa61   :  { %v1806_v54 = vmul.f32 0.03125, %v1797_v38  ;;  %v1823_v4 = vmul.f32 %v7402_v19, %v7402_v19 }
 0xa63   :  { %v7407_v30 = vsub.f32 %v7339_v20, %v1806_v54  ;;  %v1846_v63 = vsel %vm236_vm2, %v1823_v4, 0.0 }
 0xa64   :  { %1847 = vadd.xlane.f32.xlu0 %v1846_v63 }
 0xa65   :  { %v1824_v43 = vmul.f32 %v7407_v30, %v7407_v30 }
 0xa67   :  { %v1849_v50 = vsel %vm261_vm3, %v1824_v43, 0.0 }
 0xa68   :  { %1850 = vadd.xlane.f32.xlu1 %v1849_v50 }
 0xaad   :  { %v1827_v59 = vpop.xlane.xlu1 %1826 }
 0xaae   :  { %v1852_v49 = vmul.f32 0.03125, %v1827_v59 }
 0xab0   :  { %v1861_v48 = vadd.f32 1e-12, %v1852_v49 }
 0xab1   :  { %v1830_v29 = vpop.xlane.xlu0 %1829 }
 0xab2   :  { %6073 = vrsqrt.f32 %v1861_v48  ;;  %v1853_v27 = vmul.f32 0.03125, %v1830_v29 }
 0xab4   :  { %v1862_v60 = vadd.f32 1e-12, %v1853_v27 }
 0xab5   :  { %v1833_v32 = vpop.xlane.xlu1 %1832 }
 0xab6   :  { %6075 = vrsqrt.f32 %v1862_v60  ;;  %v1854_v53 = vmul.f32 0.03125, %v1833_v32 }
 0xab8   :  { %v1863_v5 = vadd.f32 1e-12, %v1854_v53 }
 0xab9   :  { %v1836_v0 = vpop.xlane.xlu0 %1835 }
 0xaba   :  { %6077 = vrsqrt.f32 %v1863_v5  ;;  %v1855_v58 = vmul.f32 0.03125, %v1836_v0 }
 0xabc   :  { %v1864_v42 = vadd.f32 1e-12, %v1855_v58 }
 0xabd   :  { %v1839_v41 = vpop.xlane.xlu1 %1838 }
 0xabe   :  { %6079 = vrsqrt.f32 %v1864_v42  ;;  %v1856_v25 = vmul.f32 0.03125, %v1839_v41 }
 0xabf   :  { %v6074_v3 = vpop.eup %6073 }
 0xac0   :  { %v1879_v13 = vmul.f32 %v6074_v3, %v7344_v47  ;;  %v1865_v8 = vadd.f32 1e-12, %v1856_v25  ;;  %v2152_v25 = vld [vmem:[%s8716_s15 + $0x28] sm:$0xff]  ;;  %v2151_v3 = vld [vmem:[%s8716_s15 + $0x20] sm:$0xff] }
 0xac1   :  { %v1842_v14 = vpop.xlane.xlu0 %1841 }
 0xac2   :  { %v1894_v57 = vmul.f32 %v7416_v6, %v1879_v13  ;;  %6081 = vrsqrt.f32 %v1865_v8  ;;  %v1857_v45 = vmul.f32 0.03125, %v1842_v14  ;;  %v2149_v13 = vld [vmem:[%s8716_s15 + $0x10] sm:$0xff]  ;;  %v2148_v8 = vld [vmem:[%s8716_s15 + $0x8] sm:$0xff]  ;;  %v2147_v14 = vld [vmem:[%s8716_s15] sm:$0xff] }
 0xac3   :  { %v6076_v18 = vpop.eup %6075 }
 0xac4   :  { %v1866_v24 = vadd.f32 1e-12, %v1857_v45  ;;  %v1909_v22 = vadd.f32 %v7422_v11, %v1894_v57  ;;  %v1880_v17 = vmul.f32 %v6076_v18, %v7349_v10 }
 0xac5   :  { %v1845_v23 = vpop.xlane.xlu1 %1844 }
 0xac6   :  { %6083 = vrsqrt.f32 %v1866_v24  ;;  %v1858_v47 = vmul.f32 0.03125, %v1845_v23  ;;  %5512 = vmatmul.mubr.msk.f32.vlgmr.msra.gmra.mxu1 %vm236_vm2, %v1909_v22  ;;  %v1895_v56 = vmul.f32 %v7416_v6, %v1880_v17 }
 0xac7   :  { %v6078_v39 = vpop.eup %6077  ;;  %5514 = vmatprep.mubr.msk.f32.mxu1 %vm6285_vm0, %v6284_v1 }
 0xac8   :  { %v1867_v62 = vadd.f32 1e-12, %v1858_v47  ;;  %v1910_v28 = vadd.f32 %v7422_v11, %v1895_v56  ;;  %v1881_v9 = vmul.f32 %v6078_v39, %v7355_v55 }
 0xaca   :  { %6085 = vrsqrt.f32 %v1867_v62  ;;  %5515 = vmatmul.mubr.msk.f32.gmra.mxu1 %vm236_vm2, %v1910_v28  ;;  %v1896_v10 = vmul.f32 %v7416_v6, %v1881_v9 }
 0xacb   :  { %v6080_v51 = vpop.eup %6079  ;;  %5517 = vmatprep.mubr.msk.f32.mxu1 %vm6285_vm0, %v6284_v1 }
 0xacc   :  { %v1911_v37 = vadd.f32 %v7422_v11, %v1896_v10  ;;  %v1882_v21 = vmul.f32 %v6080_v51, %v7361_v15 }
 0xace   :  { %5518 = vmatmul.mubr.msk.f32.gmra.mxu1 %vm236_vm2, %v1911_v37  ;;  %v1897_v33 = vmul.f32 %v7416_v6, %v1882_v21 }
 0xacf   :  { %v6082_v52 = vpop.eup %6081  ;;  %5520 = vmatprep.mubr.msk.f32.mxu1 %vm6285_vm0, %v6284_v1 }
 0xad0   :  { %v1912_v55 = vadd.f32 %v7422_v11, %v1897_v33  ;;  %v1883_v26 = vmul.f32 %v6082_v52, %v7367_v2 }
 0xad2   :  { %5521 = vmatmul.mubr.msk.f32.gmra.mxu1 %vm236_vm2, %v1912_v55  ;;  %v1898_v34 = vmul.f32 %v7416_v6, %v1883_v26 }
 0xad3   :  { %v6084_v38 = vpop.eup %6083  ;;  %5523 = vmatprep.mubr.msk.f32.mxu1 %vm6285_vm0, %v6284_v1 }
 0xad4   :  { %v1913_v15 = vadd.f32 %v7422_v11, %v1898_v34  ;;  %v1884_v54 = vmul.f32 %v6084_v38, %v7373_v35 }
 0xad6   :  { %5524 = vmatmul.mubr.msk.f32.gmra.mxu1 %vm236_vm2, %v1913_v15  ;;  %v1899_v4 = vmul.f32 %v7416_v6, %v1884_v54 }
 0xad7   :  { %v6086_v63 = vpop.eup %6085  ;;  %5526 = vmatprep.mubr.msk.f32.mxu1 %vm6285_vm0, %v6284_v1 }
 0xad8   :  { %v1914_v2 = vadd.f32 %v7422_v11, %v1899_v4  ;;  %v1885_v43 = vmul.f32 %v6086_v63, %v7379_v46 }
 0xada   :  { %5527 = vmatmul.mubr.msk.f32.gmra.mxu1 %vm236_vm2, %v1914_v2  ;;  %v1900_v50 = vmul.f32 %v7416_v6, %v1885_v43 }
 0xadb   :  { %5529 = vmatprep.mubr.msk.f32.mxu1 %vm6285_vm0, %v6284_v1 }
 0xadc   :  { %v1915_v35 = vadd.f32 %v7422_v11, %v1900_v50 }
 0xade   :  { %5530 = vmatmul.mubr.msk.f32.gmra.mxu1 %vm236_vm2, %v1915_v35 }
 0xadf   :  { %5532 = vmatprep.mubr.msk.f32.mxu1 %vm6285_vm0, %v6284_v1 }
 0xaed   :  { %v1848_v59 = vpop.xlane.xlu0 %1847 }
 0xaee   :  { %v1859_v49 = vmul.f32 0.03125, %v1848_v59 }
 0xaf0   :  { %v1868_v48 = vadd.f32 1e-12, %v1859_v49 }
 0xaf1   :  { %v1851_v29 = vpop.xlane.xlu1 %1850 }
 0xaf2   :  { %6087 = vrsqrt.f32 %v1868_v48  ;;  %v1860_v46 = vmul.f32 0.03125, %v1851_v29 }
 0xaf4   :  { %v1869_v27 = vadd.f32 1e-12, %v1860_v46 }
 0xaf6   :  { %6089 = vrsqrt.f32 %v1869_v27 }
 0xaff   :  { %v6088_v60 = vpop.eup %6087 }
 0xb00   :  { %v1886_v32 = vmul.f32 %v6088_v60, %v7402_v19  ;;  %v2154_v19 = vld [vmem:[%s8716_s15 + $0x38] sm:$0xff] }
 0xb01   :  { %5539 = vmatpush3.msra.mxu0 %v2154_v19 }
 0xb02   :  { %v1901_v53 = vmul.f32 %v7416_v6, %v1886_v32  ;;  %5540 = vmatprep.subr.mxu0 %v6284_v1 }
 0xb03   :  { %v6090_v5 = vpop.eup %6089 }
 0xb04   :  { %v1916_v0 = vadd.f32 %v7422_v11, %v1901_v53  ;;  %v1887_v58 = vmul.f32 %v6090_v5, %v7407_v30  ;;  %v2153_v30 = vld [vmem:[%s8716_s15 + $0x30] sm:$0xff] }
 0xb05   :  { %5541 = vmatpush3.msra.mxu0 %v2153_v30 }
 0xb06   :  { %5533 = vmatmul.mubr.msk.f32.gmra.mxu1 %vm236_vm2, %v1916_v0  ;;  %v1902_v42 = vmul.f32 %v7416_v6, %v1887_v58  ;;  %5542 = vmatprep.subr.mxu0 %v6284_v1  ;;  %v2150_v6 = vld [vmem:[%s8716_s15 + $0x18] sm:$0xff] }
 0xb07   :  { %5535 = vmatprep.mubr.msk.f32.mxu1 %vm6285_vm0, %v6284_v1  ;;  %5543 = vmatpush3.msra.mxu0 %v2152_v25 }
 0xb08   :  { %v1917_v41 = vadd.f32 %v7422_v11, %v1902_v42  ;;  %5544 = vmatprep.subr.mxu0 %v6284_v1  ;;  %v7512_v11 = vld [vmem:[%s8715_s14] ss:$0 sm:$0xff] }
 0xb09   :  { %5545 = vmatpush3.msra.mxu0 %v2151_v3 }
 0xb0a   :  { %5536 = vmatmul.mubr.msk.f32.gmra.mxu1 %vm236_vm2, %v1917_v41  ;;  %5546 = vmatprep.subr.mxu0 %v6284_v1 }
 0xb0b   :  { %5589 = vmatprep.mubr.msk.f32.mxu1 %vm6285_vm0, %v6284_v1  ;;  %5547 = vmatpush3.msra.mxu0 %v2150_v6 }
 0xb0c   :  { %5548 = vmatprep.subr.mxu0 %v6284_v1 }
 0xb0d   :  { %5549 = vmatpush3.msra.mxu0 %v2149_v13 }
 0xb0e   :  { %5550 = vmatprep.subr.mxu0 %v6284_v1 }
 0xb0f   :  { %5551 = vmatpush3.msra.mxu0 %v2148_v8 }
 0xb10   :  { %5552 = vmatprep.subr.mxu0 %v6284_v1 }
 0xb11   :  { %5553 = vmatpush3.msra.mxu0 %v2147_v14 }
 0xb12   :  { %5616 = vmatprep.subr.mxu0 %v6284_v1 }
 0xb86   :  { %v2022_v57 = vpop.f32.mrf.mxu1 }
 0xb87   :  { %v2023_v45 = vadd.f32 %v7512_v11, %v2022_v57 }
 0xb88   :  { %v5513_v18 = vpop.f32.mrf.mxu1 }
 0xb89   :  { %v2075_v24 = vmul.f32 0.044715, %v2023_v45  ;;  %v2066_v25 = vmul.f32 0.5, %v2023_v45 }
 0xb8a   :  { %v2027_v22 = vpop.f32.mrf.mxu1 }
 0xb8b   :  { %v2084_v17 = vmul.f32 %v2075_v24, %v2023_v45  ;;  %v2028_v23 = vadd.f32 %v7512_v11, %v2027_v22 }
 0xb8c   :  { %v5516_v47 = vpop.f32.mrf.mxu1 }
 0xb8d   :  { %v2093_v56 = vmul.f32 %v2084_v17, %v2023_v45  ;;  %v2076_v39 = vmul.f32 0.044715, %v2028_v23  ;;  %v2067_v47 = vmul.f32 0.5, %v2028_v23 }
 0xb8e   :  { %v2032_v62 = vpop.f32.mrf.mxu1 }
 0xb8f   :  { %v2102_v28 = vadd.f32 %v2093_v56, %v2023_v45  ;;  %v2085_v9 = vmul.f32 %v2076_v39, %v2028_v23  ;;  %v2033_v10 = vadd.f32 %v7512_v11, %v2032_v62 }
 0xb90   :  { %v5519_v51 = vpop.f32.mrf.mxu1 }
 0xb91   :  { %v2111_v37 = vmul.f32 0.7978846, %v2102_v28  ;;  %v2094_v21 = vmul.f32 %v2085_v9, %v2028_v23  ;;  %v2077_v33 = vmul.f32 0.044715, %v2033_v10  ;;  %v2068_v9 = vmul.f32 0.5, %v2033_v10 }
 0xb92   :  { %v2037_v52 = vpop.f32.mrf.mxu1 }
 0xb93   :  { %6091 = vtanh.f32 %v2111_v37  ;;  %v2103_v55 = vadd.f32 %v2094_v21, %v2028_v23  ;;  %v2086_v26 = vmul.f32 %v2077_v33, %v2033_v10  ;;  %v2038_v34 = vadd.f32 %v7512_v11, %v2037_v52 }
 0xb94   :  { %v5522_v38 = vpop.f32.mrf.mxu1 }
 0xb95   :  { %v2095_v15 = vmul.f32 %v2086_v26, %v2033_v10  ;;  %v2078_v54 = vmul.f32 0.044715, %v2038_v34  ;;  %v2112_v4 = vmul.f32 0.7978846, %v2103_v55  ;;  %v2069_v33 = vmul.f32 0.5, %v2038_v34 }
 0xb96   :  { %v2042_v63 = vpop.f32.mrf.mxu1 }
 0xb97   :  { %v2104_v2 = vadd.f32 %v2095_v15, %v2033_v10  ;;  %v2087_v43 = vmul.f32 %v2078_v54, %v2038_v34  ;;  %v2043_v50 = vadd.f32 %v7512_v11, %v2042_v63  ;;  %6093 = vtanh.f32 %v2112_v4 }
 0xb98   :  { %v5525_v35 = vpop.f32.mrf.mxu1 }
 0xb99   :  { %v2096_v59 = vmul.f32 %v2087_v43, %v2038_v34  ;;  %v2079_v49 = vmul.f32 0.044715, %v2043_v50  ;;  %v2113_v48 = vmul.f32 0.7978846, %v2104_v2  ;;  %v2070_v10 = vmul.f32 0.5, %v2043_v50 }
 0xb9a   :  { %v2047_v29 = vpop.f32.mrf.mxu1 }
 0xb9b   :  { %v2105_v46 = vadd.f32 %v2096_v59, %v2038_v34  ;;  %v2088_v27 = vmul.f32 %v2079_v49, %v2043_v50  ;;  %v2048_v60 = vadd.f32 %v7512_v11, %v2047_v29  ;;  %6095 = vtanh.f32 %v2113_v48 }
 0xb9c   :  { %v5528_v32 = vpop.f32.mrf.mxu1 }
 0xb9d   :  { %v2097_v53 = vmul.f32 %v2088_v27, %v2043_v50  ;;  %v2080_v5 = vmul.f32 0.044715, %v2048_v60  ;;  %v2114_v0 = vmul.f32 0.7978846, %v2105_v46  ;;  %v2071_v4 = vmul.f32 0.5, %v2048_v60 }
 0xb9e   :  { %v2052_v58 = vpop.f32.mrf.mxu1 }
 0xb9f   :  { %v2106_v42 = vadd.f32 %v2097_v53, %v2043_v50  ;;  %v2089_v41 = vmul.f32 %v2080_v5, %v2048_v60  ;;  %v2053_v19 = vadd.f32 %v7512_v11, %v2052_v58  ;;  %6097 = vtanh.f32 %v2114_v0 }
 0xba0   :  { %v6092_v30 = vpop.eup %6091  ;;  %v5531_v3 = vpop.f32.mrf.mxu1 }
 0xba1   :  { %v2129_v6 = vadd.f32 1.0, %v6092_v30  ;;  %v2098_v13 = vmul.f32 %v2089_v41, %v2048_v60  ;;  %v2081_v8 = vmul.f32 0.044715, %v2053_v19  ;;  %v2115_v14 = vmul.f32 0.7978846, %v2106_v42 }
 0xba2   :  { %v2072_v43 = vmul.f32 0.5, %v2053_v19 }
 0xba3   :  { %v2138_v57 = vmul.f32 %v2129_v6, %v2066_v25  ;;  %v2107_v18 = vadd.f32 %v2098_v13, %v2048_v60  ;;  %v2090_v24 = vmul.f32 %v2081_v8, %v2053_v19  ;;  %6099 = vtanh.f32 %v2115_v14 }
 0xba4   :  { %v6094_v22 = vpop.eup %6093 }
 0xba5   :  { %v2099_v17 = vmul.f32 %v2090_v24, %v2053_v19  ;;  %5555 = vmatmul.mubr.msk.f32.vlgmr.msra.gmra.mxu0 %vm2162_vm8, %v2138_v57  ;;  %v2130_v56 = vadd.f32 1.0, %v6094_v22  ;;  %v2116_v39 = vmul.f32 0.7978846, %v2107_v18  ;;  %v4737_v18 = vld [vmem:[%s8717_s16] ss:$0 sm:$0xff] }
 0xba6   :  { %5557 = vmatprep.mubr.msk.f32.mxu0 %vm6285_vm0, %v6284_v1 }
 0xba7   :  { %v2108_v45 = vadd.f32 %v2099_v17, %v2053_v19  ;;  %v2139_v62 = vmul.f32 %v2130_v56, %v2067_v47  ;;  %6101 = vtanh.f32 %v2116_v39 }
 0xba8   :  { %v6096_v28 = vpop.eup %6095 }
 0xba9   :  { %5558 = vmatmul.mubr.msk.f32.gmra.mxu0 %vm2162_vm8, %v2139_v62  ;;  %v2131_v51 = vadd.f32 1.0, %v6096_v28  ;;  %v2117_v37 = vmul.f32 0.7978846, %v2108_v45 }
 0xbaa   :  { %5560 = vmatprep.mubr.msk.f32.mxu0 %vm6285_vm0, %v6284_v1 }
 0xbab   :  { %v2140_v21 = vmul.f32 %v2131_v51, %v2068_v9  ;;  %6103 = vtanh.f32 %v2117_v37 }
 0xbac   :  { %v6098_v23 = vpop.eup %6097 }
 0xbad   :  { %5561 = vmatmul.mubr.msk.f32.gmra.mxu0 %vm2162_vm8, %v2140_v21  ;;  %v2132_v52 = vadd.f32 1.0, %v6098_v23 }
 0xbae   :  { %5563 = vmatprep.mubr.msk.f32.mxu0 %vm6285_vm0, %v6284_v1 }
 0xbaf   :  { %v2141_v55 = vmul.f32 %v2132_v52, %v2069_v33 }
 0xbb0   :  { %v6100_v26 = vpop.eup %6099 }
 0xbb1   :  { %5564 = vmatmul.mubr.msk.f32.gmra.mxu0 %vm2162_vm8, %v2141_v55  ;;  %v2133_v38 = vadd.f32 1.0, %v6100_v26 }
 0xbb2   :  { %5566 = vmatprep.mubr.msk.f32.mxu0 %vm6285_vm0, %v6284_v1 }
 0xbb3   :  { %v2142_v15 = vmul.f32 %v2133_v38, %v2070_v10 }
 0xbb4   :  { %v6102_v54 = vpop.eup %6101 }
 0xbb5   :  { %5567 = vmatmul.mubr.msk.f32.gmra.mxu0 %vm2162_vm8, %v2142_v15  ;;  %v2134_v63 = vadd.f32 1.0, %v6102_v54 }
 0xbb6   :  { %5569 = vmatprep.mubr.msk.f32.mxu0 %vm6285_vm0, %v6284_v1 }
 0xbb7   :  { %v2143_v34 = vmul.f32 %v2134_v63, %v2071_v4 }
 0xbb8   :  { %v6104_v2 = vpop.eup %6103 }
 0xbb9   :  { %5570 = vmatmul.mubr.msk.f32.gmra.mxu0 %vm2162_vm8, %v2143_v34  ;;  %v2135_v35 = vadd.f32 1.0, %v6104_v2 }
 0xbba   :  { %5572 = vmatprep.mubr.msk.f32.mxu0 %vm6285_vm0, %v6284_v1 }
 0xbbb   :  { %v2144_v50 = vmul.f32 %v2135_v35, %v2072_v43 }
 0xbbd   :  { %5573 = vmatmul.mubr.msk.f32.gmra.mxu0 %vm2162_vm8, %v2144_v50 }
 0xbbe   :  { %5575 = vmatprep.mubr.msk.f32.mxu0 %vm6285_vm0, %v6284_v1 }
 0xbc6   :  { %v2057_v59 = vpop.f32.mrf.mxu1 }
 0xbc7   :  { %v2058_v49 = vadd.f32 %v7512_v11, %v2057_v59 }
 0xbc8   :  { %v5534_v48 = vpop.f32.mrf.mxu1 }
 0xbc9   :  { %v2082_v29 = vmul.f32 0.044715, %v2058_v49  ;;  %v2073_v3 = vmul.f32 0.5, %v2058_v49 }
 0xbca   :  { %v2062_v46 = vpop.f32.mrf.mxu1 }
 0xbcb   :  { %v2091_v27 = vmul.f32 %v2082_v29, %v2058_v49  ;;  %v2063_v60 = vadd.f32 %v7512_v11, %v2062_v46 }
 0xbcc   :  { %v5537_v32 = vpop.f32.mrf.mxu1 }
 0xbcd   :  { %v2100_v53 = vmul.f32 %v2091_v27, %v2058_v49  ;;  %v2083_v5 = vmul.f32 0.044715, %v2063_v60  ;;  %v2074_v14 = vmul.f32 0.5, %v2063_v60 }
 0xbcf   :  { %v2109_v0 = vadd.f32 %v2100_v53, %v2058_v49  ;;  %v2092_v58 = vmul.f32 %v2083_v5, %v2063_v60 }
 0xbd1   :  { %v2101_v42 = vmul.f32 %v2092_v58, %v2063_v60  ;;  %v2118_v41 = vmul.f32 0.7978846, %v2109_v0 }
 0xbd3   :  { %v2110_v19 = vadd.f32 %v2101_v42, %v2063_v60  ;;  %6105 = vtanh.f32 %v2118_v41 }
 0xbd5   :  { %v2119_v30 = vmul.f32 0.7978846, %v2110_v19 }
 0xbd7   :  { %6107 = vtanh.f32 %v2119_v30 }
 0xbe0   :  { %v6106_v25 = vpop.eup %6105 }
 0xbe1   :  { %v2136_v6 = vadd.f32 1.0, %v6106_v25 }
 0xbe3   :  { %v2145_v13 = vmul.f32 %v2136_v6, %v2073_v3 }
 0xbe4   :  { %v6108_v8 = vpop.eup %6107 }
 0xbe5   :  { %5576 = vmatmul.mubr.msk.f32.gmra.mxu0 %vm2162_vm8, %v2145_v13  ;;  %v2137_v11 = vadd.f32 1.0, %v6108_v8 }
 0xbe6   :  { %5578 = vmatprep.mubr.msk.f32.mxu0 %vm6285_vm0, %v6284_v1 }
 0xbe7   :  { %v2146_v57 = vmul.f32 %v2137_v11, %v2074_v14 }
 0xbe9   :  { %5579 = vmatmul.mubr.msk.f32.gmra.mxu0 %vm2162_vm8, %v2146_v57 }
 0xbea   :  { %5634 = vmatprep.mubr.msk.f32.mxu0 %vm6285_vm0, %v6284_v1 }
 0xc65   :  { %v2256_v24 = vpop.f32.mrf.mxu0 }
 0xc66   :  { %v2257_v22 = vadd.f32 %v4737_v18, %v2256_v24 }
 0xc67   :  { %v5556_v17 = vpop.f32.mrf.mxu0 }
 0xc68   :  { %v7554_v47 = vadd.f32 %v2257_v22, %v7292_v12 }
 0xc69   :  { %v2261_v56 = vpop.f32.mrf.mxu0 }
 0xc6a   :  { %v2262_v39 = vadd.f32 %v4737_v18, %v2261_v56  ;;  %v2313_v45 = vsel %vm236_vm2, %v7554_v47, 0.0 }
 0xc6b   :  { %2314 = vadd.xlane.f32.xlu0 %v2313_v45  ;;  %v5559_v62 = vpop.f32.mrf.mxu0 }
 0xc6c   :  { %v7559_v28 = vadd.f32 %v2262_v39, %v7298_v7 }
 0xc6d   :  { %v2266_v9 = vpop.f32.mrf.mxu0 }
 0xc6e   :  { %v2267_v51 = vadd.f32 %v4737_v18, %v2266_v9  ;;  %v2316_v37 = vsel %vm236_vm2, %v7559_v28, 0.0 }
 0xc6f   :  { %2317 = vadd.xlane.f32.xlu1 %v2316_v37  ;;  %v5562_v21 = vpop.f32.mrf.mxu0 }
 0xc70   :  { %v7564_v12 = vadd.f32 %v2267_v51, %v7304_v16 }
 0xc71   :  { %v2271_v23 = vpop.f32.mrf.mxu0 }
 0xc72   :  { %v2272_v33 = vadd.f32 %v4737_v18, %v2271_v23  ;;  %v2319_v52 = vsel %vm236_vm2, %v7564_v12, 0.0 }
 0xc73   :  { %2320 = vadd.xlane.f32.xlu0 %v2319_v52  ;;  %v5565_v55 = vpop.f32.mrf.mxu0 }
 0xc74   :  { %v7569_v7 = vadd.f32 %v2272_v33, %v7310_v61 }
 0xc75   :  { %v2276_v26 = vpop.f32.mrf.mxu0 }
 0xc76   :  { %v2277_v10 = vadd.f32 %v4737_v18, %v2276_v26  ;;  %v2322_v38 = vsel %vm236_vm2, %v7569_v7, 0.0 }
 0xc77   :  { %2323 = vadd.xlane.f32.xlu1 %v2322_v38  ;;  %v5568_v15 = vpop.f32.mrf.mxu0  ;;  %v4754_v38 = vld [vmem:[%s8708_s7 + $0x38] sm:$0xff] }
 0xc78   :  { %v7574_v16 = vadd.f32 %v2277_v10, %v7316_v31  ;;  %5582 = vmatpush3.msra.mxu1 %v4754_v38  ;;  %v4753_v15 = vld [vmem:[%s8708_s7 + $0x30] sm:$0xff] }
 0xc79   :  { %v2281_v54 = vpop.f32.mrf.mxu0  ;;  %5583 = vmatprep.subr.mxu1 %v6284_v1 }
 0xc7a   :  { %v2282_v4 = vadd.f32 %v4737_v18, %v2281_v54  ;;  %v2325_v63 = vsel %vm236_vm2, %v7574_v16, 0.0  ;;  %5584 = vmatpush3.msra.mxu1 %v4753_v15  ;;  %v4752_v54 = vld [vmem:[%s8708_s7 + $0x28] sm:$0xff] }
 0xc7b   :  { %2326 = vadd.xlane.f32.xlu0 %v2325_v63  ;;  %v5571_v34 = vpop.f32.mrf.mxu0  ;;  %5585 = vmatprep.subr.mxu1 %v6284_v1 }
 0xc7c   :  { %v7579_v61 = vadd.f32 %v2282_v4, %v7322_v36  ;;  %5586 = vmatpush3.msra.mxu1 %v4752_v54  ;;  %v4751_v4 = vld [vmem:[%s8708_s7 + $0x20] sm:$0xff] }
 0xc7d   :  { %v2286_v2 = vpop.f32.mrf.mxu0  ;;  %5587 = vmatprep.subr.mxu1 %v6284_v1 }
 0xc7e   :  { %v2287_v43 = vadd.f32 %v4737_v18, %v2286_v2  ;;  %v2328_v35 = vsel %vm236_vm2, %v7579_v61, 0.0  ;;  %5588 = vmatpush3.msra.mxu1 %v4751_v4 }
 0xc7f   :  { %2329 = vadd.xlane.f32.xlu1 %v2328_v35  ;;  %v5574_v50 = vpop.f32.mrf.mxu0  ;;  %5661 = vmatprep.subr.mxu1 %v6284_v1 }
 0xc80   :  { %v7584_v31 = vadd.f32 %v2287_v43, %v7327_v40 }
 0xc82   :  { %v2331_v59 = vsel %vm236_vm2, %v7584_v31, 0.0 }
 0xc83   :  { %2332 = vadd.xlane.f32.xlu0 %v2331_v59 }
 0xca5   :  { %v2291_v49 = vpop.f32.mrf.mxu0 }
 0xca6   :  { %v2292_v48 = vadd.f32 %v4737_v18, %v2291_v49 }
 0xca7   :  { %v5577_v29 = vpop.f32.mrf.mxu0 }
 0xca8   :  { %v7589_v36 = vadd.f32 %v2292_v48, %v7334_v44 }
 0xca9   :  { %v2296_v46 = vpop.f32.mrf.mxu0 }
 0xcaa   :  { %v2297_v27 = vadd.f32 %v4737_v18, %v2296_v46  ;;  %v2334_v60 = vsel %vm236_vm2, %v7589_v36, 0.0 }
 0xcab   :  { %2335 = vadd.xlane.f32.xlu1 %v2334_v60  ;;  %v5580_v32 = vpop.f32.mrf.mxu0 }
 0xcac   :  { %v7594_v40 = vadd.f32 %v2297_v27, %v7339_v20 }
 0xcae   :  { %v2337_v53 = vsel %vm261_vm3, %v7594_v40, 0.0 }
 0xcaf   :  { %2338 = vadd.xlane.f32.xlu0 %v2337_v53 }
 0xcf4   :  { %v2315_v5 = vpop.xlane.xlu0 %2314 }
 0xcf5   :  { %v2340_v0 = vmul.f32 0.03125, %v2315_v5 }
 0xcf7   :  { %v7599_v58 = vsub.f32 %v7554_v47, %v2340_v0 }
 0xcf8   :  { %v2318_v44 = vpop.xlane.xlu1 %2317 }
 0xcf9   :  { %v2341_v42 = vmul.f32 0.03125, %v2318_v44  ;;  %v2358_v41 = vmul.f32 %v7599_v58, %v7599_v58 }
 0xcfb   :  { %v7604_v19 = vsub.f32 %v7559_v28, %v2341_v42  ;;  %v2367_v20 = vsel %vm236_vm2, %v2358_v41, 0.0 }
 0xcfc   :  { %v2321_v30 = vpop.xlane.xlu0 %2320  ;;  %2368 = vadd.xlane.f32.xlu1 %v2367_v20 }
 0xcfd   :  { %v2342_v25 = vmul.f32 0.03125, %v2321_v30  ;;  %v2359_v3 = vmul.f32 %v7604_v19, %v7604_v19 }
 0xcff   :  { %v7610_v6 = vsub.f32 %v7564_v12, %v2342_v25  ;;  %v2370_v13 = vsel %vm236_vm2, %v2359_v3, 0.0 }
 0xd00   :  { %2371 = vadd.xlane.f32.xlu0 %v2370_v13  ;;  %v2324_v8 = vpop.xlane.xlu1 %2323 }
 0xd01   :  { %v2343_v14 = vmul.f32 0.03125, %v2324_v8  ;;  %v2360_v11 = vmul.f32 %v7610_v6, %v7610_v6  ;;  %v7671_v8 = vld [vmem:[%s8706_s5 + $0x1] ss:$0 sm:$0xff] }
 0xd03   :  { %v7616_v57 = vsub.f32 %v7569_v7, %v2343_v14  ;;  %v2373_v18 = vsel %vm236_vm2, %v2360_v11, 0.0 }
 0xd04   :  { %v2327_v24 = vpop.xlane.xlu0 %2326  ;;  %2374 = vadd.xlane.f32.xlu1 %v2373_v18 }
 0xd05   :  { %v2344_v22 = vmul.f32 0.03125, %v2327_v24  ;;  %v2361_v17 = vmul.f32 %v7616_v57, %v7616_v57  ;;  %v7677_v24 = vld [vmem:[%s8707_s6 + $0x1] ss:$0 sm:$0xff] }
 0xd07   :  { %v7622_v56 = vsub.f32 %v7574_v16, %v2344_v22  ;;  %v2376_v39 = vsel %vm236_vm2, %v2361_v17, 0.0 }
 0xd08   :  { %2377 = vadd.xlane.f32.xlu0 %v2376_v39  ;;  %v2330_v45 = vpop.xlane.xlu1 %2329 }
 0xd09   :  { %v2345_v62 = vmul.f32 0.03125, %v2330_v45  ;;  %v2362_v9 = vmul.f32 %v7622_v56, %v7622_v56 }
 0xd0b   :  { %v7628_v51 = vsub.f32 %v7579_v61, %v2345_v62  ;;  %v2379_v37 = vsel %vm236_vm2, %v2362_v9, 0.0 }
 0xd0c   :  { %v2333_v21 = vpop.xlane.xlu0 %2332  ;;  %2380 = vadd.xlane.f32.xlu1 %v2379_v37 }
 0xd0d   :  { %v2346_v23 = vmul.f32 0.03125, %v2333_v21  ;;  %v2363_v33 = vmul.f32 %v7628_v51, %v7628_v51 }
 0xd0f   :  { %v7634_v52 = vsub.f32 %v7584_v31, %v2346_v23  ;;  %v2382_v55 = vsel %vm236_vm2, %v2363_v33, 0.0 }
 0xd10   :  { %2383 = vadd.xlane.f32.xlu0 %v2382_v55 }
 0xd11   :  { %v2364_v26 = vmul.f32 %v7634_v52, %v7634_v52 }
 0xd13   :  { %v2385_v10 = vsel %vm236_vm2, %v2364_v26, 0.0 }
 0xd14   :  { %2386 = vadd.xlane.f32.xlu1 %v2385_v10 }
 0xd34   :  { %v2336_v63 = vpop.xlane.xlu1 %2335 }
 0xd35   :  { %v2347_v34 = vmul.f32 0.03125, %v2336_v63 }
 0xd37   :  { %v7657_v2 = vsub.f32 %v7589_v36, %v2347_v34 }
 0xd38   :  { %v2339_v43 = vpop.xlane.xlu0 %2338 }
 0xd39   :  { %v2348_v35 = vmul.f32 0.03125, %v2339_v43  ;;  %v2365_v50 = vmul.f32 %v7657_v2, %v7657_v2 }
 0xd3b   :  { %v7662_v59 = vsub.f32 %v7594_v40, %v2348_v35  ;;  %v2388_v49 = vsel %vm236_vm2, %v2365_v50, 0.0 }
 0xd3c   :  { %2389 = vadd.xlane.f32.xlu0 %v2388_v49 }
 0xd3d   :  { %v2366_v48 = vmul.f32 %v7662_v59, %v7662_v59 }
 0xd3f   :  { %v2391_v29 = vsel %vm261_vm3, %v2366_v48, 0.0 }
 0xd40   :  { %2392 = vadd.xlane.f32.xlu1 %v2391_v29 }
 0xd85   :  { %v2369_v46 = vpop.xlane.xlu1 %2368 }
 0xd86   :  { %v2394_v27 = vmul.f32 0.03125, %v2369_v46 }
 0xd88   :  { %v2403_v60 = vadd.f32 1e-12, %v2394_v27 }
 0xd89   :  { %v2372_v32 = vpop.xlane.xlu0 %2371 }
 0xd8a   :  { %6109 = vrsqrt.f32 %v2403_v60  ;;  %v2395_v53 = vmul.f32 0.03125, %v2372_v32 }
 0xd8c   :  { %v2404_v5 = vadd.f32 1e-12, %v2395_v53 }
 0xd8d   :  { %v2375_v0 = vpop.xlane.xlu1 %2374 }
 0xd8e   :  { %6111 = vrsqrt.f32 %v2404_v5  ;;  %v2396_v44 = vmul.f32 0.03125, %v2375_v0 }
 0xd90   :  { %v2405_v42 = vadd.f32 1e-12, %v2396_v44 }
 0xd91   :  { %v2378_v41 = vpop.xlane.xlu0 %2377 }
 0xd92   :  { %6113 = vrsqrt.f32 %v2405_v42  ;;  %v2397_v20 = vmul.f32 0.03125, %v2378_v41 }
 0xd94   :  { %v2406_v30 = vadd.f32 1e-12, %v2397_v20 }
 0xd95   :  { %v2381_v25 = vpop.xlane.xlu1 %2380 }
 0xd96   :  { %6115 = vrsqrt.f32 %v2406_v30  ;;  %v2398_v3 = vmul.f32 0.03125, %v2381_v25 }
 0xd97   :  { %v6110_v13 = vpop.eup %6109 }
 0xd98   :  { %v2421_v14 = vmul.f32 %v6110_v13, %v7599_v58  ;;  %v2407_v11 = vadd.f32 1e-12, %v2398_v3 }
 0xd99   :  { %v2384_v18 = vpop.xlane.xlu0 %2383 }
 0xd9a   :  { %v2436_v22 = vmul.f32 %v7671_v8, %v2421_v14  ;;  %6117 = vrsqrt.f32 %v2407_v11  ;;  %v2399_v17 = vmul.f32 0.03125, %v2384_v18 }
 0xd9b   :  { %v6112_v39 = vpop.eup %6111 }
 0xd9c   :  { %v2408_v45 = vadd.f32 1e-12, %v2399_v17  ;;  %v2451_v62 = vadd.f32 %v7677_v24, %v2436_v22  ;;  %v2422_v9 = vmul.f32 %v6112_v39, %v7604_v19 }
 0xd9d   :  { %v2387_v37 = vpop.xlane.xlu1 %2386 }
 0xd9e   :  { %6119 = vrsqrt.f32 %v2408_v45  ;;  %v2400_v58 = vmul.f32 0.03125, %v2387_v37  ;;  %5590 = vmatmul.mubr.msk.f32.vlgmr.msra.gmra.mxu1 %vm236_vm2, %v2451_v62  ;;  %v2437_v21 = vmul.f32 %v7671_v8, %v2422_v9 }
 0xd9f   :  { %v6114_v23 = vpop.eup %6113  ;;  %5592 = vmatprep.mubr.msk.f32.mxu1 %vm6285_vm0, %v6284_v1 }
 0xda0   :  { %v2409_v33 = vadd.f32 1e-12, %v2400_v58  ;;  %v2452_v55 = vadd.f32 %v7677_v24, %v2437_v21  ;;  %v2423_v26 = vmul.f32 %v6114_v23, %v7610_v6 }
 0xda2   :  { %6121 = vrsqrt.f32 %v2409_v33  ;;  %5593 = vmatmul.mubr.msk.f32.gmra.mxu1 %vm236_vm2, %v2452_v55  ;;  %v2438_v19 = vmul.f32 %v7671_v8, %v2423_v26 }
 0xda3   :  { %v6116_v10 = vpop.eup %6115  ;;  %5595 = vmatprep.mubr.msk.f32.mxu1 %vm6285_vm0, %v6284_v1 }
 0xda4   :  { %v2453_v38 = vadd.f32 %v7677_v24, %v2438_v19  ;;  %v2424_v15 = vmul.f32 %v6116_v10, %v7616_v57 }
 0xda6   :  { %5596 = vmatmul.mubr.msk.f32.gmra.mxu1 %vm236_vm2, %v2453_v38  ;;  %v2439_v54 = vmul.f32 %v7671_v8, %v2424_v15 }
 0xda7   :  { %v6118_v4 = vpop.eup %6117  ;;  %5598 = vmatprep.mubr.msk.f32.mxu1 %vm6285_vm0, %v6284_v1 }
 0xda8   :  { %v2454_v6 = vadd.f32 %v7677_v24, %v2439_v54  ;;  %v2425_v63 = vmul.f32 %v6118_v4, %v7622_v56 }
 0xdaa   :  { %5599 = vmatmul.mubr.msk.f32.gmra.mxu1 %vm236_vm2, %v2454_v6  ;;  %v2440_v34 = vmul.f32 %v7671_v8, %v2425_v63 }
 0xdab   :  { %v6120_v43 = vpop.eup %6119  ;;  %5601 = vmatprep.mubr.msk.f32.mxu1 %vm6285_vm0, %v6284_v1 }
 0xdac   :  { %v2455_v57 = vadd.f32 %v7677_v24, %v2440_v34  ;;  %v2426_v35 = vmul.f32 %v6120_v43, %v7628_v51 }
 0xdae   :  { %5602 = vmatmul.mubr.msk.f32.gmra.mxu1 %vm236_vm2, %v2455_v57  ;;  %v2441_v50 = vmul.f32 %v7671_v8, %v2426_v35 }
 0xdaf   :  { %v6122_v49 = vpop.eup %6121  ;;  %5604 = vmatprep.mubr.msk.f32.mxu1 %vm6285_vm0, %v6284_v1 }
 0xdb0   :  { %v2456_v56 = vadd.f32 %v7677_v24, %v2441_v50  ;;  %v2427_v48 = vmul.f32 %v6122_v49, %v7634_v52 }
 0xdb2   :  { %5605 = vmatmul.mubr.msk.f32.gmra.mxu1 %vm236_vm2, %v2456_v56  ;;  %v2442_v29 = vmul.f32 %v7671_v8, %v2427_v48 }
 0xdb3   :  { %5607 = vmatprep.mubr.msk.f32.mxu1 %vm6285_vm0, %v6284_v1 }
 0xdb4   :  { %v2457_v51 = vadd.f32 %v7677_v24, %v2442_v29 }
 0xdb6   :  { %5608 = vmatmul.mubr.msk.f32.gmra.mxu1 %vm236_vm2, %v2457_v51 }
 0xdb7   :  { %5610 = vmatprep.mubr.msk.f32.mxu1 %vm6285_vm0, %v6284_v1 }
 0xdc5   :  { %v2390_v46 = vpop.xlane.xlu0 %2389 }
 0xdc6   :  { %v2401_v27 = vmul.f32 0.03125, %v2390_v46 }
 0xdc8   :  { %v2410_v60 = vadd.f32 1e-12, %v2401_v27 }
 0xdc9   :  { %v2393_v32 = vpop.xlane.xlu1 %2392 }
 0xdca   :  { %6123 = vrsqrt.f32 %v2410_v60  ;;  %v2402_v52 = vmul.f32 0.03125, %v2393_v32 }
 0xdcc   :  { %v2411_v53 = vadd.f32 1e-12, %v2402_v52 }
 0xdce   :  { %6125 = vrsqrt.f32 %v2411_v53  ;;  %v7844_v53 = vld [vmem:[%s8732_s24] sm:$0xff] }
 0xdd7   :  { %v6124_v5 = vpop.eup %6123 }
 0xdd8   :  { %v2428_v0 = vmul.f32 %v6124_v5, %v7657_v2 }
 0xdda   :  { %v2443_v44 = vmul.f32 %v7671_v8, %v2428_v0 }
 0xddb   :  { %v6126_v42 = vpop.eup %6125 }
 0xddc   :  { %v2458_v41 = vadd.f32 %v7677_v24, %v2443_v44  ;;  %v2429_v20 = vmul.f32 %v6126_v42, %v7662_v59 }
 0xdde   :  { %5611 = vmatmul.mubr.msk.f32.gmra.mxu1 %vm236_vm2, %v2458_v41  ;;  %v2444_v30 = vmul.f32 %v7671_v8, %v2429_v20  ;;  %v7854_v20 = vld [vmem:[%s8732_s24 + $0x8] sm:$0xff] }
 0xddf   :  { %5613 = vmatprep.mubr.msk.f32.mxu1 %vm6285_vm0, %v6284_v1 }
 0xde0   :  { %v2459_v25 = vadd.f32 %v7677_v24, %v2444_v30  ;;  %v4756_v24 = vld [vmem:[%s8709_s8 + $0x1] ss:$0 sm:$0xff] }
 0xde2   :  { %5614 = vmatmul.mubr.msk.f32.gmra.mxu1 %vm236_vm2, %v2459_v25 }
 0xde3   :  { %5679 = vmatprep.mubr.msk.f32.mxu1 %vm6285_vm0, %v6284_v1 }
 0xe5e   :  { %v2566_v2 = vpop.f32.mrf.mxu1 }
 0xe5f   :  { %v7763_v54 = vadd.f32 %v4756_v24, %v2566_v2 }
 0xe60   :  { %v5591_v3 = vpop.f32.mrf.mxu1 }
 0xe62   :  { %v2571_v13 = vpop.f32.mrf.mxu1 }
 0xe63   :  { %v7765_v4 = vadd.f32 %v4756_v24, %v2571_v13 }
 0xe64   :  { %v5594_v14 = vpop.f32.mrf.mxu1 }
 0xe65   :  { %v7861_v14 = vld [vmem:[%s8732_s24 + $0x10] sm:$0xff] }
 0xe66   :  { %v2576_v11 = vpop.f32.mrf.mxu1 }
 0xe67   :  { %v7755_v38 = vadd.f32 %v4756_v24, %v2576_v11 }
 0xe68   :  { %v5597_v59 = vpop.f32.mrf.mxu1 }
 0xe6a   :  { %v2581_v18 = vpop.f32.mrf.mxu1 }
 0xe6b   :  { %v7757_v15 = vadd.f32 %v4756_v24, %v2581_v18 }
 0xe6c   :  { %v5600_v22 = vpop.f32.mrf.mxu1 }
 0xe6e   :  { %v2586_v17 = vpop.f32.mrf.mxu1 }
 0xe6f   :  { %v7747_v19 = vadd.f32 %v4756_v24, %v2586_v17 }
 0xe70   :  { %v5603_v8 = vpop.f32.mrf.mxu1 }
 0xe71   :  { %v7871_v8 = vld [vmem:[%s8732_s24 + $0x18] sm:$0xff] }
 0xe72   :  { %v2591_v39 = vpop.f32.mrf.mxu1 }
 0xe73   :  { %v7749_v10 = vadd.f32 %v4756_v24, %v2591_v39 }
 0xe74   :  { %v5606_v45 = vpop.f32.mrf.mxu1 }
 0xe76   :  { %v2596_v62 = vpop.f32.mrf.mxu1 }
 0xe77   :  { %v7739_v33 = vadd.f32 %v4756_v24, %v2596_v62 }
 0xe78   :  { %v5609_v9 = vpop.f32.mrf.mxu1 }
 0xe9e   :  { %v2601_v37 = vpop.f32.mrf.mxu1 }
 0xe9f   :  { %v7735_v58 = vadd.f32 %v4756_v24, %v2601_v37  ;;  %v7881_v37 = vld [vmem:[%s8732_s24 + $0x20] sm:$0xff] }
 0xea0   :  { %v5612_v21 = vpop.f32.mrf.mxu1 }
 0xea1   :  { %2640 = vrot.lane.b32.xlu1 %v7735_v58, %s6286_s23 }
 0xea2   :  { %v2606_v23 = vpop.f32.mrf.mxu1 }
 0xea3   :  { %v7741_v55 = vadd.f32 %v4756_v24, %v2606_v23 }
 0xea4   :  { %v5615_v26 = vpop.f32.mrf.mxu1 }
 0xea5   :  { %2638 = vrot.lane.b32.xlu1 %v7739_v33, %s6286_s23  ;;  %2642 = vrot.lane.b32.xlu0 %v7741_v55, %s6286_s23 }
 0xea9   :  { %2634 = vrot.lane.b32.xlu1 %v7747_v19, %s6286_s23  ;;  %2636 = vrot.lane.b32.xlu0 %v7749_v10, %s6286_s23 }
 0xead   :  { %2630 = vrot.lane.b32.xlu1 %v7755_v38, %s6286_s23  ;;  %2632 = vrot.lane.b32.xlu0 %v7757_v15, %s6286_s23 }
 0xeb1   :  { %2626 = vrot.lane.b32.xlu1 %v7763_v54, %s6286_s23  ;;  %2628 = vrot.lane.b32.xlu0 %v7765_v4, %s6286_s23  ;;  %s6291_s23 = smov [#allocation2]  }
 0xeb2   :  { %s4621_s27 = sshll.u32 %s6291_s23, 4  ;;  %s4622_s27 = int_to_ptr.vmem [resolvable:$true] %s4621_s27 }
 0xeb3   :  { %s6262_s21 = scalar_lea.vmem %s4622_s27, 64  ;;  %p6267_p1 = scmp.lt.s32.totalorder %s4622_s27, %s4622_s27 }
 0xeb4   :  { %p6263_p0 = scmp.ne.s32.totalorder %s4622_s27, %s6262_s21  ;;  %p6268_p2 = scmp.lt.s32.totalorder %s6262_s21, %s6262_s21 }
 0xeb5   :  { %2919 = vrot.lane.b32.xlu1 %v7739_v33, %s6287_s0  ;;  %2921 = vrot.lane.b32.xlu0 %v7735_v58, %s6287_s0 }
 0xeb6   :  { %p6269_p3 = por %p6268_p2, %p6267_p1 }
 0xeb8   :  { %p6270_p4 = pnand %p6269_p3, %p6263_p0 }
 0xeb9   :  { %2923 = vrot.lane.b32.xlu1 %v7741_v55, %s6287_s0  ;;  %2917 = vrot.lane.b32.xlu0 %v7749_v10, %s6287_s0 }
 0xebd   :  { %2915 = vrot.lane.b32.xlu0 %v7747_v19, %s6287_s0 }
 0xf13   :  { %v2641_v6 = vpop.permute.xlu1 %2640 }
 0xf17   :  { %v2643_v63 = vpop.permute.xlu0 %2642  ;;  %v2639_v34 = vpop.permute.xlu1 %2638 }
 0xf18   :  { %5617 = vmatpush3.xpose.msk.msra.mxu0 %vm566_vm4, %v2643_v63 }
 0xf19   :  { %5618 = vmatprep.subr.mxu0 %v6284_v1 }
 0xf1b   :  { %v2637_v43 = vpop.permute.xlu0 %2636  ;;  %v2635_v57 = vpop.permute.xlu1 %2634 }
 0xf1c   :  { %5619 = vmatpush3.xpose.msk.msra.mxu0 %vm566_vm4, %v2641_v6 }
 0xf1d   :  { %5620 = vmatprep.subr.mxu0 %v6284_v1 }
 0xf1f   :  { %v2633_v35 = vpop.permute.xlu0 %2632  ;;  %v2631_v50 = vpop.permute.xlu1 %2630 }
 0xf20   :  { %5621 = vmatpush3.xpose.msk.msra.mxu0 %vm566_vm4, %v2639_v34  ;;  %v7891_v34 = vld [vmem:[%s8732_s24 + $0x28] sm:$0xff] }
 0xf21   :  { %5622 = vmatprep.subr.mxu0 %v6284_v1 }
 0xf23   :  { %v2629_v49 = vpop.permute.xlu0 %2628  ;;  %v2627_v56 = vpop.permute.xlu1 %2626 }
 0xf24   :  { %5623 = vmatpush3.xpose.msk.msra.mxu0 %vm566_vm4, %v2637_v43 }
 0xf25   :  { %5624 = vmatprep.subr.mxu0 %v6284_v1 }
 0xf27   :  { %v2922_v48 = vpop.permute.xlu0 %2921  ;;  %v2920_v29 = vpop.permute.xlu1 %2919 }
 0xf28   :  { %5625 = vmatpush3.xpose.msk.msra.mxu0 %vm566_vm4, %v2635_v57 }
 0xf29   :  { %5626 = vmatprep.subr.mxu0 %v6284_v1 }
 0xf2b   :  { %v2924_v51 = vpop.permute.xlu1 %2923  ;;  %v2918_v46 = vpop.permute.xlu0 %2917 }
 0xf2c   :  { %5627 = vmatpush3.xpose.msk.msra.mxu0 %vm566_vm4, %v2633_v35  ;;  %5662 = vmatpush3.msk.msra.mxu1 %vm885_vm7, %v2924_v51 }
 0xf2d   :  { %5663 = vmatprep.subr.mxu1 %v6284_v1  ;;  %5628 = vmatprep.subr.mxu0 %v6284_v1 }
 0xf2e   :  { %5664 = vmatpush3.msra.mxu1 %v2922_v48 }
 0xf2f   :  { %5665 = vmatprep.subr.mxu1 %v6284_v1  ;;  %v2916_v27 = vpop.permute.xlu0 %2915 }
 0xf30   :  { %5629 = vmatpush3.xpose.msk.msra.mxu0 %vm566_vm4, %v2631_v50  ;;  %5666 = vmatpush3.msra.mxu1 %v2920_v29 }
 0xf31   :  { %5667 = vmatprep.subr.mxu1 %v6284_v1  ;;  %5630 = vmatprep.subr.mxu0 %v6284_v1 }
 0xf32   :  { %5668 = vmatpush3.msra.mxu1 %v2918_v46 }
 0xf33   :  { %5669 = vmatprep.subr.mxu1 %v6284_v1 }
 0xf34   :  { %5631 = vmatpush3.xpose.msk.msra.mxu0 %vm566_vm4, %v2629_v49  ;;  %5670 = vmatpush3.msra.mxu1 %v2916_v27 }
 0xf35   :  { %5632 = vmatprep.subr.mxu0 %v6284_v1  ;;  %5671 = vmatprep.subr.mxu1 %v6284_v1 }
 0xf38   :  { %5633 = vmatpush3.xpose.msk.msra.mxu0 %vm566_vm4, %v2627_v56  ;;  %v7901_v56 = vld [vmem:[%s8732_s24 + $0x30] sm:$0xff] }
 0xf39   :  { %5706 = vmatprep.subr.mxu0 %v6284_v1 }
 0xf3b   :  { %5635 = vmatmul.mubr.msk.f32.vlgmr.msra.gmra.mxu0 %vm566_vm4, %v7763_v54 }
 0xf3c   :  { %5637 = vmatprep.mubr.msk.f32.mxu0 %vm6285_vm0, %v6284_v1 }
 0xf3f   :  { %5638 = vmatmul.mubr.msk.f32.gmra.mxu0 %vm566_vm4, %v7765_v4 }
 0xf40   :  { %5640 = vmatprep.mubr.msk.f32.mxu0 %vm6285_vm0, %v6284_v1 }
 0xf43   :  { %5641 = vmatmul.mubr.msk.f32.gmra.mxu0 %vm566_vm4, %v7755_v38 }
 0xf44   :  { %5643 = vmatprep.mubr.msk.f32.mxu0 %vm6285_vm0, %v6284_v1 }
 0xf47   :  { %5644 = vmatmul.mubr.msk.f32.gmra.mxu0 %vm566_vm4, %v7757_v15 }
 0xf48   :  { %5646 = vmatprep.mubr.msk.f32.mxu0 %vm6285_vm0, %v6284_v1 }
 0xf4b   :  { %5647 = vmatmul.mubr.msk.f32.gmra.mxu0 %vm566_vm4, %v7747_v19 }
 0xf4c   :  { %5649 = vmatprep.mubr.msk.f32.mxu0 %vm6285_vm0, %v6284_v1 }
 0xf4f   :  { %5650 = vmatmul.mubr.msk.f32.gmra.mxu0 %vm566_vm4, %v7749_v10 }
 0xf50   :  { %5652 = vmatprep.mubr.msk.f32.mxu0 %vm6285_vm0, %v6284_v1 }
 0xf53   :  { %5653 = vmatmul.mubr.msk.f32.gmra.mxu0 %vm566_vm4, %v7739_v33 }
 0xf54   :  { %5655 = vmatprep.mubr.msk.f32.mxu0 %vm6285_vm0, %v6284_v1 }
 0xf57   :  { %5656 = vmatmul.mubr.msk.f32.gmra.mxu0 %vm566_vm4, %v7735_v58 }
 0xf58   :  { %5658 = vmatprep.mubr.msk.f32.mxu0 %vm6285_vm0, %v6284_v1 }
 0xf5b   :  { %5659 = vmatmul.mubr.msk.f32.gmra.mxu0 %vm566_vm4, %v7741_v55 }
 0xf5c   :  { %5710 = vmatprep.mubr.msk.f32.mxu0 %vm6285_vm0, %v6284_v1 }
 0xffb   :  { %v2746_v60 = vpop.f32.mrf.mxu0 }
 0xffc   :  { %v2790_v32 = vmul.f32 0.25, %v2746_v60  ;;  %v7911_v60 = vld [vmem:[%s8732_s24 + $0x38] sm:$0xff] }
 0xffd   :  { %v5636_v52 = vpop.f32.mrf.mxu0 }
 0xffe   :  { %v7847_v5 = vadd.f32 %v7844_v53, %v2790_v32 }
 0xfff   :  { %v2751_v0 = vpop.f32.mrf.mxu0 }
0x1000   :  { %v2791_v44 = vmul.f32 0.25, %v2751_v0  ;;  %v2808_v42 = vsel %vm731_vm5, %v7847_v5, -inf }
0x1001   :  { %2809 = vmax.xlane.f32.xlu0 %v2808_v42  ;;  %v5639_v41 = vpop.f32.mrf.mxu0 }
0x1002   :  { %v2800_v30 = vadd.f32 %v7854_v20, %v2791_v44  ;;  %v7921_v41 = vld [vmem:[%s8732_s24 + $0x40] sm:$0xf] }
0x1003   :  { %v2756_v25 = vpop.f32.mrf.mxu0 }
0x1004   :  { %v2792_v2 = vmul.f32 0.25, %v2756_v25  ;;  %v2811_v3 = vsel %vm731_vm5, %v2800_v30, -inf }
0x1005   :  { %2812 = vmax.xlane.f32.xlu1 %v2811_v3  ;;  %v5642_v13 = vpop.f32.mrf.mxu0 }
0x1006   :  { %v7864_v11 = vadd.f32 %v7861_v14, %v2792_v2 }
0x1007   :  { %v2761_v59 = vpop.f32.mrf.mxu0 }
0x1008   :  { %v2793_v18 = vmul.f32 0.25, %v2761_v59  ;;  %v2814_v22 = vsel %vm731_vm5, %v7864_v11, -inf }
0x1009   :  { %2815 = vmax.xlane.f32.xlu0 %v2814_v22  ;;  %v5645_v17 = vpop.f32.mrf.mxu0 }
0x100a   :  { %v7874_v39 = vadd.f32 %v7871_v8, %v2793_v18 }
0x100b   :  { %v2766_v45 = vpop.f32.mrf.mxu0 }
0x100c   :  { %v2794_v62 = vmul.f32 0.25, %v2766_v45  ;;  %v2817_v9 = vsel %vm731_vm5, %v7874_v39, -inf }
0x100d   :  { %2818 = vmax.xlane.f32.xlu0 %v2817_v9  ;;  %v5648_v24 = vpop.f32.mrf.mxu0 }
0x100e   :  { %v7884_v21 = vadd.f32 %v7881_v37, %v2794_v62 }
0x100f   :  { %v2771_v23 = vpop.f32.mrf.mxu0 }
0x1010   :  { %v2795_v26 = vmul.f32 0.25, %v2771_v23  ;;  %v2820_v6 = vsel %vm731_vm5, %v7884_v21, -inf }
0x1011   :  { %2821 = vmax.xlane.f32.xlu1 %v2820_v6  ;;  %v5651_v63 = vpop.f32.mrf.mxu0 }
0x1012   :  { %v7894_v43 = vadd.f32 %v7891_v34, %v2795_v26 }
0x1013   :  { %v2776_v57 = vpop.f32.mrf.mxu0 }
0x1014   :  { %v2796_v35 = vmul.f32 0.25, %v2776_v57  ;;  %v2823_v50 = vsel %vm731_vm5, %v7894_v43, -inf }
0x1015   :  { %2824 = vmax.xlane.f32.xlu0 %v2823_v50  ;;  %v5654_v49 = vpop.f32.mrf.mxu0 }
0x1016   :  { %v7904_v48 = vadd.f32 %v7901_v56, %v2796_v35 }
0x1017   :  { %v2781_v29 = vpop.f32.mrf.mxu0 }
0x1018   :  { %v2797_v51 = vmul.f32 0.25, %v2781_v29  ;;  %v2826_v46 = vsel %vm731_vm5, %v7904_v48, -inf }
0x1019   :  { %2827 = vmax.xlane.f32.xlu1 %v2826_v46  ;;  %v5657_v27 = vpop.f32.mrf.mxu0 }
0x101a   :  { %v7914_v32 = vadd.f32 %v7911_v60, %v2797_v51 }
0x101b   :  { %v2786_v52 = vpop.f32.mrf.mxu0 }
0x101c   :  { %v2798_v0 = vmul.f32 0.25, %v2786_v52  ;;  %v2829_v44 = vsel %vm731_vm5, %v7914_v32, -inf }
0x101d   :  { %2830 = vmax.xlane.f32.xlu0 %v2829_v44  ;;  %v5660_v42 = vpop.f32.mrf.mxu0 }
0x101e   :  { %v2807_v25 = vadd.f32 %v7921_v41, %v2798_v0 }
0x1020   :  { %v2832_v2 = vsel %vm756_vm6, %v2807_v25, -inf }
0x1021   :  { %2833 = vmax.xlane.f32.xlu1 %v2832_v2 }
0x1032   :  { %2913 = vrot.lane.b32.xlu1 %v7757_v15, %s6287_s0 }
0x1033   :  { %2911 = vrot.lane.b32.xlu0 %v7755_v38, %s6287_s0 }
0x1037   :  { %2909 = vrot.lane.b32.xlu0 %v7765_v4, %s6287_s0 }
0x103b   :  { %2907 = vrot.lane.b32.xlu0 %v7763_v54, %s6287_s0 }
0x108a   :  { %v2810_v3 = vpop.xlane.xlu0 %2809 }
0x108b   :  { %v2835_v13 = vsub.f32 %v7847_v5, %v2810_v3 }
0x108d   :  { %v2844_v59 = vmul.f32 1.442695, %v2835_v13 }
0x108e   :  { %v2813_v18 = vpop.xlane.xlu1 %2812 }
0x108f   :  { %6127 = vpow2.f32 %v2844_v59  ;;  %v2836_v22 = vsub.f32 %v2800_v30, %v2813_v18 }
0x1091   :  { %v2846_v17 = vmul.f32 1.442695, %v2836_v22 }
0x1092   :  { %v2816_v45 = vpop.xlane.xlu0 %2815 }
0x1093   :  { %6129 = vpow2.f32 %v2846_v17  ;;  %v2837_v52 = vsub.f32 %v7864_v11, %v2816_v45 }
0x1095   :  { %v2848_v42 = vmul.f32 1.442695, %v2837_v52  ;;  %v4766_v52 = vld [vmem:[%s8710_s9 + $0x20] sm:$0xff] }
0x1096   :  { %v2819_v24 = vpop.xlane.xlu0 %2818 }
0x1097   :  { %v2838_v2 = vsub.f32 %v7874_v39, %v2819_v24 }
0x1099   :  { %v2850_v13 = vmul.f32 1.442695, %v2838_v2 }
0x109a   :  { %v2822_v5 = vpop.xlane.xlu1 %2821 }
0x109b   :  { %v2839_v51 = vsub.f32 %v7884_v21, %v2822_v5 }
0x109c   :  { %v7934_v62 = vpop.eup %6127 }
0x109d   :  { %v2862_v9 = vsel %vm731_vm5, %v7934_v62, 0.0  ;;  %v2852_v46 = vmul.f32 1.442695, %v2839_v51 }
0x109e   :  { %2863 = vadd.xlane.f32.xlu0 %v2862_v9  ;;  %v2825_v6 = vpop.xlane.xlu0 %2824 }
0x109f   :  { %6131 = vpow2.f32 %v2852_v46  ;;  %v2840_v21 = vsub.f32 %v7894_v43, %v2825_v6 }
0x10a0   :  { %v7938_v23 = vpop.eup %6129 }
0x10a1   :  { %v2865_v26 = vsel %vm731_vm5, %v7938_v23, 0.0  ;;  %v2854_v59 = vmul.f32 1.442695, %v2840_v21 }
0x10a2   :  { %2866 = vadd.xlane.f32.xlu1 %v2865_v26  ;;  %v2828_v63 = vpop.xlane.xlu1 %2827 }
0x10a3   :  { %v2841_v27 = vsub.f32 %v7904_v48, %v2828_v63 }
0x10a5   :  { %v2856_v0 = vmul.f32 1.442695, %v2841_v27  ;;  %v4767_v27 = vld [vmem:[%s8710_s9 + $0x28] sm:$0xff] }
0x10a6   :  { %v7942_v30 = vpop.xlane.xlu0 %2830  ;;  %5707 = vmatpush3.msra.mxu0 %v4767_v27 }
0x10a7   :  { %6133 = vpow2.f32 %v2856_v0  ;;  %v2842_v5 = vsub.f32 %v7914_v32, %v7942_v30  ;;  %5708 = vmatprep.subr.mxu0 %v6284_v1 }
0x10a8   :  { %6135 = vpow2.f32 %v2848_v42  ;;  %5709 = vmatpush3.msra.mxu0 %v4766_v52 }
0x10a9   :  { %v2858_v6 = vmul.f32 1.442695, %v2842_v5  ;;  %5782 = vmatprep.subr.mxu0 %v6284_v1 }
0x10aa   :  { %v2912_v57 = vpop.permute.xlu0 %2911  ;;  %v2834_v35 = vpop.xlane.xlu1 %2833 }
0x10ab   :  { %v2843_v44 = vsub.f32 %v2807_v25, %v2834_v35 }
0x10ac   :  { %v7963_v18 = vpop.eup %6131 }
0x10ad   :  { %v2860_v3 = vmul.f32 1.442695, %v2843_v44  ;;  %v2874_v11 = vsel %vm731_vm5, %v7963_v18, 0.0 }
0x10ae   :  { %v2910_v50 = vpop.permute.xlu0 %2909  ;;  %v2914_v49 = vpop.permute.xlu1 %2913 }
0x10af   :  { %5672 = vmatpush3.msra.mxu1 %v2914_v49  ;;  %6137 = vpow2.f32 %v2860_v3 }
0x10b0   :  { %5673 = vmatprep.subr.mxu1 %v6284_v1  ;;  %6139 = vpow2.f32 %v2850_v13 }
0x10b1   :  { %5674 = vmatpush3.msra.mxu1 %v2912_v57  ;;  %6141 = vpow2.f32 %v2854_v59 }
0x10b2   :  { %5675 = vmatprep.subr.mxu1 %v6284_v1  ;;  %v2908_v29 = vpop.permute.xlu0 %2907  ;;  %6143 = vpow2.f32 %v2858_v6 }
0x10b3   :  { %3258 = vrot.lane.b32.xlu1 %v7741_v55, %s6288_s28  ;;  %5676 = vmatpush3.msra.mxu1 %v2910_v50 }
0x10b4   :  { %3256 = vrot.lane.b32.xlu0 %v7735_v58, %s6288_s28  ;;  %5677 = vmatprep.subr.mxu1 %v6284_v1  ;;  %v7967_v48 = vpop.eup %6133 }
0x10b5   :  { %5678 = vmatpush3.msra.mxu1 %v2908_v29  ;;  %v7969_v25 = vpop.eup %6135  ;;  %v2880_v39 = vsel %vm731_vm5, %v7967_v48, 0.0 }
0x10b6   :  { %5737 = vmatprep.subr.mxu1 %v6284_v1  ;;  %v2868_v43 = vsel %vm731_vm5, %v7969_v25, 0.0 }
0x10b8   :  { %3254 = vrot.lane.b32.xlu0 %v7739_v33, %s6288_s28 }
0x10bc   :  { %3252 = vrot.lane.b32.xlu0 %v7749_v10, %s6288_s28  ;;  %v7973_v22 = vpop.eup %6137 }
0x10bd   :  { %v2886_v17 = vsel %vm756_vm6, %v7973_v22, 0.0  ;;  %v7979_v45 = vpop.eup %6139 }
0x10be   :  { %v2871_v9 = vsel %vm731_vm5, %v7979_v45, 0.0  ;;  %v7983_v24 = vpop.eup %6141 }
0x10bf   :  { %v2877_v26 = vsel %vm731_vm5, %v7983_v24, 0.0  ;;  %v8003_v63 = vpop.eup %6143 }
0x10c0   :  { %3250 = vrot.lane.b32.xlu0 %v7747_v19, %s6288_s28  ;;  %v2883_v57 = vsel %vm731_vm5, %v8003_v63, 0.0 }
0x10d7   :  { %2875 = vadd.xlane.f32.xlu1 %v2874_v11 }
0x10db   :  { %2881 = vadd.xlane.f32.xlu1 %v2880_v39 }
0x10df   :  { %2869 = vadd.xlane.f32.xlu0 %v2868_v43  ;;  %2887 = vadd.xlane.f32.xlu1 %v2886_v17 }
0x10e3   :  { %2872 = vadd.xlane.f32.xlu0 %v2871_v9 }
0x10e7   :  { %2878 = vadd.xlane.f32.xlu0 %v2877_v26 }
0x10f0   :  { %3246 = vrot.lane.b32.xlu1 %v7755_v38, %s6288_s28 }
0x10f4   :  { %3228 = vrot.lane.b32.xlu1 %v7755_v38, %s6289_s29 }
0x10f8   :  { %3232 = vrot.lane.b32.xlu1 %v7747_v19, %s6289_s29 }
0x10fc   :  { %3236 = vrot.lane.b32.xlu1 %v7739_v33, %s6289_s29 }
0x10fd   :  { %3248 = vrot.lane.b32.xlu0 %v7757_v15, %s6288_s28 }
0x1100   :  { %3240 = vrot.lane.b32.xlu1 %v7741_v55, %s6289_s29 }
0x1104   :  { %3539 = vrot.lane.b32.xlu1 %v7741_v55, %s6290_s30 }
0x111c   :  { %2884 = vadd.xlane.f32.xlu0 %v2883_v57 }
0x1127   :  { %v2864_v35 = vpop.xlane.xlu0 %2863 }
0x1128   :  { %6145 = vrcp.f32 %v2864_v35 }
0x112b   :  { %v2867_v50 = vpop.xlane.xlu1 %2866  ;;  %v3257_v30 = vpop.permute.xlu0 %3256 }
0x112c   :  { %6147 = vrcp.f32 %v2867_v50 }
0x112f   :  { %v3259_v55 = vpop.permute.xlu1 %3258  ;;  %v3255_v51 = vpop.permute.xlu0 %3254 }
0x1132   :  { %3244 = vrot.lane.b32.xlu0 %v7765_v4, %s6288_s28 }
0x1133   :  { %v3253_v46 = vpop.permute.xlu0 %3252 }
0x1135   :  { %v6146_v49 = vpop.eup %6145 }
0x1136   :  { %v2898_v32 = vmul.f32 %v6146_v49, %v7934_v62  ;;  %3242 = vrot.lane.b32.xlu0 %v7763_v54, %s6288_s28 }
0x1138   :  { %5680 = vmatmul.mubr.msk.f32.vlgmr.msra.gmra.mxu1 %vm731_vm5, %v2898_v32 }
0x1139   :  { %v6148_v29 = vpop.eup %6147  ;;  %5738 = vmatpush3.xpose.msk.msra.mxu1 %vm566_vm4, %v3259_v55  ;;  %5682 = vmatprep.mubr.msk.f32.mxu1 %vm6285_vm0, %v6284_v1 }
0x113a   :  { %3224 = vrot.lane.b32.xlu0 %v7763_v54, %s6289_s29  ;;  %5739 = vmatprep.subr.mxu1 %v6284_v1  ;;  %v2899_v62 = vmul.f32 %v6148_v29, %v7938_v23  ;;  %v3251_v23 = vpop.permute.xlu0 %3250 }
0x113c   :  { %5683 = vmatmul.mubr.msk.f32.gmra.mxu1 %vm731_vm5, %v2899_v62 }
0x113d   :  { %5740 = vmatpush3.xpose.msk.msra.mxu1 %vm566_vm4, %v3257_v30  ;;  %5685 = vmatprep.mubr.msk.f32.mxu1 %vm6285_vm0, %v6284_v1 }
0x113e   :  { %3226 = vrot.lane.b32.xlu0 %v7765_v4, %s6289_s29  ;;  %5741 = vmatprep.subr.mxu1 %v6284_v1 }
0x1141   :  { %5742 = vmatpush3.xpose.msk.msra.mxu1 %vm566_vm4, %v3255_v51 }
0x1142   :  { %3230 = vrot.lane.b32.xlu0 %v7757_v15, %s6289_s29  ;;  %5743 = vmatprep.subr.mxu1 %v6284_v1 }
0x1145   :  { %5744 = vmatpush3.xpose.msk.msra.mxu1 %vm566_vm4, %v3253_v46 }
0x1146   :  { %3234 = vrot.lane.b32.xlu0 %v7749_v10, %s6289_s29  ;;  %5745 = vmatprep.subr.mxu1 %v6284_v1 }
0x1149   :  { %5746 = vmatpush3.xpose.msk.msra.mxu1 %vm566_vm4, %v3251_v23 }
0x114a   :  { %3238 = vrot.lane.b32.xlu0 %v7735_v58, %s6289_s29  ;;  %5747 = vmatprep.subr.mxu1 %v6284_v1 }
0x114e   :  { %3537 = vrot.lane.b32.xlu0 %v7735_v58, %s6290_s30 }
0x1160   :  { %v2876_v0 = vpop.xlane.xlu1 %2875 }
0x1164   :  { %v2882_v2 = vpop.xlane.xlu1 %2881 }
0x1168   :  { %v2870_v44 = vpop.xlane.xlu0 %2869  ;;  %v2888_v3 = vpop.xlane.xlu1 %2887 }
0x1169   :  { %6149 = vrcp.f32 %v2870_v44 }
0x116c   :  { %v2873_v42 = vpop.xlane.xlu0 %2872  ;;  %v3247_v11 = vpop.permute.xlu1 %3246 }
0x116d   :  { %6151 = vrcp.f32 %v2873_v42 }
0x116e   :  { %6153 = vrcp.f32 %v2876_v0 }
0x1170   :  { %v2879_v58 = vpop.xlane.xlu0 %2878  ;;  %v3229_v32 = vpop.permute.xlu1 %3228 }
0x1171   :  { %6155 = vrcp.f32 %v2879_v58 }
0x1172   :  { %6157 = vrcp.f32 %v2882_v2 }
0x1174   :  { %v3249_v13 = vpop.permute.xlu0 %3248  ;;  %v3233_v30 = vpop.permute.xlu1 %3232 }
0x1175   :  { %5748 = vmatpush3.xpose.msk.msra.mxu1 %vm566_vm4, %v3249_v13 }
0x1176   :  { %v6150_v21 = vpop.eup %6149  ;;  %5749 = vmatprep.subr.mxu1 %v6284_v1 }
0x1177   :  { %v2900_v59 = vmul.f32 %v6150_v21, %v7969_v25 }
0x1178   :  { %v3237_v29 = vpop.permute.xlu1 %3236 }
0x1179   :  { %5686 = vmatmul.mubr.msk.f32.gmra.mxu1 %vm731_vm5, %v2900_v59 }
0x117a   :  { %v6152_v39 = vpop.eup %6151  ;;  %5750 = vmatpush3.xpose.msk.msra.mxu1 %vm566_vm4, %v3247_v11  ;;  %5688 = vmatprep.mubr.msk.f32.mxu1 %vm6285_vm0, %v6284_v1 }
0x117b   :  { %v2901_v43 = vmul.f32 %v6152_v39, %v7979_v45  ;;  %5751 = vmatprep.subr.mxu1 %v6284_v1  ;;  %v6154_v17 = vpop.eup %6153 }
0x117c   :  { %v2902_v25 = vmul.f32 %v6154_v17, %v7963_v18  ;;  %v3241_v51 = vpop.permute.xlu1 %3240 }
0x117d   :  { %5689 = vmatmul.mubr.msk.f32.gmra.mxu1 %vm731_vm5, %v2901_v43 }
0x117e   :  { %5691 = vmatprep.mubr.msk.f32.mxu1 %vm6285_vm0, %v6284_v1  ;;  %v6156_v9 = vpop.eup %6155 }
0x117f   :  { %v2903_v26 = vmul.f32 %v6156_v9, %v7983_v24  ;;  %v6158_v5 = vpop.eup %6157 }
0x1180   :  { %v2904_v45 = vmul.f32 %v6158_v5, %v7967_v48  ;;  %v3540_v23 = vpop.permute.xlu1 %3539 }
0x1181   :  { %5692 = vmatmul.mubr.msk.f32.gmra.mxu1 %vm731_vm5, %v2902_v25 }
0x1182   :  { %5694 = vmatprep.mubr.msk.f32.mxu1 %vm6285_vm0, %v6284_v1 }
0x1185   :  { %5695 = vmatmul.mubr.msk.f32.gmra.mxu1 %vm731_vm5, %v2903_v26 }
0x1186   :  { %5697 = vmatprep.mubr.msk.f32.mxu1 %vm6285_vm0, %v6284_v1 }
0x1189   :  { %5698 = vmatmul.mubr.msk.f32.gmra.mxu1 %vm731_vm5, %v2904_v45 }
0x118a   :  { %5700 = vmatprep.mubr.msk.f32.mxu1 %vm6285_vm0, %v6284_v1 }
0x11a5   :  { %v2885_v18 = vpop.xlane.xlu0 %2884 }
0x11a6   :  { %6159 = vrcp.f32 %v2885_v18 }
0x11a7   :  { %6161 = vrcp.f32 %v2888_v3 }
0x11a9   :  { %v3245_v6 = vpop.permute.xlu0 %3244 }
0x11aa   :  { %5752 = vmatpush3.xpose.msk.msra.mxu1 %vm566_vm4, %v3245_v6 }
0x11ab   :  { %5753 = vmatprep.subr.mxu1 %v6284_v1 }
0x11ad   :  { %v3243_v24 = vpop.permute.xlu0 %3242 }
0x11ae   :  { %5754 = vmatpush3.xpose.msk.msra.mxu1 %vm566_vm4, %v3243_v24 }
0x11af   :  { %5827 = vmatprep.subr.mxu1 %v6284_v1 }
0x11b1   :  { %v3225_v49 = vpop.permute.xlu0 %3224 }
0x11b3   :  { %v6160_v57 = vpop.eup %6159 }
0x11b4   :  { %v2905_v48 = vmul.f32 %v6160_v57, %v8003_v63  ;;  %v6162_v35 = vpop.eup %6161 }
0x11b5   :  { %v2906_v50 = vmul.f32 %v6162_v35, %v7973_v22  ;;  %v3227_v63 = vpop.permute.xlu0 %3226 }
0x11b6   :  { %5701 = vmatmul.mubr.msk.f32.gmra.mxu1 %vm731_vm5, %v2905_v48 }
0x11b7   :  { %5703 = vmatprep.mubr.msk.f32.mxu1 %vm6285_vm0, %v6284_v1 }
0x11b9   :  { %v3231_v22 = vpop.permute.xlu0 %3230 }
0x11ba   :  { %5704 = vmatmul.mubr.msk.f32.gmra.mxu1 %vm731_vm5, %v2906_v50 }
0x11bb   :  { %5755 = vmatprep.mubr.msk.f32.mxu1 %vm6285_vm0, %v6284_v1 }
0x11bd   :  { %v3235_v55 = vpop.permute.xlu0 %3234 }
0x11be   :  { %5756 = vmatmul.mubr.msk.f32.vlgmr.msra.gmra.mxu1 %vm566_vm4, %v3225_v49 }
0x11bf   :  { %5758 = vmatprep.mubr.msk.f32.mxu1 %vm6285_vm0, %v6284_v1 }
0x11c1   :  { %v3239_v62 = vpop.permute.xlu0 %3238 }
0x11c2   :  { %5759 = vmatmul.mubr.msk.f32.gmra.mxu1 %vm566_vm4, %v3227_v63 }
0x11c3   :  { %5761 = vmatprep.mubr.msk.f32.mxu1 %vm6285_vm0, %v6284_v1 }
0x11c5   :  { %v3538_v52 = vpop.permute.xlu0 %3537 }
0x11c6   :  { %5762 = vmatmul.mubr.msk.f32.gmra.mxu1 %vm566_vm4, %v3229_v32 }
0x11c7   :  { %5764 = vmatprep.mubr.msk.f32.mxu1 %vm6285_vm0, %v6284_v1 }
0x11ca   :  { %5765 = vmatmul.mubr.msk.f32.gmra.mxu1 %vm566_vm4, %v3231_v22 }
0x11cb   :  { %5767 = vmatprep.mubr.msk.f32.mxu1 %vm6285_vm0, %v6284_v1 }
0x11ce   :  { %5768 = vmatmul.mubr.msk.f32.gmra.mxu1 %vm566_vm4, %v3233_v30 }
0x11cf   :  { %5770 = vmatprep.mubr.msk.f32.mxu1 %vm6285_vm0, %v6284_v1 }
0x11d2   :  { %5771 = vmatmul.mubr.msk.f32.gmra.mxu1 %vm566_vm4, %v3235_v55 }
0x11d3   :  { %5773 = vmatprep.mubr.msk.f32.mxu1 %vm6285_vm0, %v6284_v1 }
0x11d6   :  { %5774 = vmatmul.mubr.msk.f32.gmra.mxu1 %vm566_vm4, %v3237_v29 }
0x11d7   :  { %5776 = vmatprep.mubr.msk.f32.mxu1 %vm6285_vm0, %v6284_v1 }
0x11da   :  { %5777 = vmatmul.mubr.msk.f32.gmra.mxu1 %vm566_vm4, %v3239_v62 }
0x11db   :  { %5779 = vmatprep.mubr.msk.f32.mxu1 %vm6285_vm0, %v6284_v1 }
0x11de   :  { %5780 = vmatmul.mubr.msk.f32.gmra.mxu1 %vm566_vm4, %v3241_v51 }
0x11df   :  { %5831 = vmatprep.mubr.msk.f32.mxu1 %vm6285_vm0, %v6284_v1 }
0x11f8   :  { %v3028_v46 = vpop.f32.mrf.mxu1 }
0x11f9   :  { %5711 = vmatmul.mubr.msk.f32.vlgmr.msra.gmra.mxu0 %vm566_vm4, %v3028_v46 }
0x11fa   :  { %5783 = vmatpush3.msk.msra.mxu0 %vm885_vm7, %v3540_v23  ;;  %v5681_v27 = vpop.f32.mrf.mxu1  ;;  %5713 = vmatprep.mubr.msk.f32.mxu0 %vm6285_vm0, %v6284_v1 }
0x11fb   :  { %5784 = vmatprep.subr.mxu0 %v6284_v1 }
0x11fc   :  { %5785 = vmatpush3.msra.mxu0 %v3538_v52  ;;  %v3033_v0 = vpop.f32.mrf.mxu1 }
0x11fd   :  { %5714 = vmatmul.mubr.msk.f32.gmra.mxu0 %vm566_vm4, %v3033_v0  ;;  %5786 = vmatprep.subr.mxu0 %v6284_v1 }
0x11fe   :  { %v5684_v44 = vpop.f32.mrf.mxu1  ;;  %5716 = vmatprep.mubr.msk.f32.mxu0 %vm6285_vm0, %v6284_v1 }
0x1239   :  { %v3038_v42 = vpop.f32.mrf.mxu1 }
0x123a   :  { %5717 = vmatmul.mubr.msk.f32.gmra.mxu0 %vm566_vm4, %v3038_v42 }
0x123b   :  { %v5687_v2 = vpop.f32.mrf.mxu1  ;;  %5719 = vmatprep.mubr.msk.f32.mxu0 %vm6285_vm0, %v6284_v1 }
0x123d   :  { %v3043_v58 = vpop.f32.mrf.mxu1 }
0x123e   :  { %5720 = vmatmul.mubr.msk.f32.gmra.mxu0 %vm566_vm4, %v3043_v58 }
0x123f   :  { %v5690_v3 = vpop.f32.mrf.mxu1  ;;  %5722 = vmatprep.mubr.msk.f32.mxu0 %vm6285_vm0, %v6284_v1 }
0x1241   :  { %v3048_v13 = vpop.f32.mrf.mxu1 }
0x1242   :  { %5723 = vmatmul.mubr.msk.f32.gmra.mxu0 %vm566_vm4, %v3048_v13 }
0x1243   :  { %v5693_v21 = vpop.f32.mrf.mxu1  ;;  %5725 = vmatprep.mubr.msk.f32.mxu0 %vm6285_vm0, %v6284_v1 }
0x1245   :  { %v3053_v59 = vpop.f32.mrf.mxu1 }
0x1246   :  { %5726 = vmatmul.mubr.msk.f32.gmra.mxu0 %vm566_vm4, %v3053_v59 }
0x1247   :  { %v5696_v11 = vpop.f32.mrf.mxu1  ;;  %5728 = vmatprep.mubr.msk.f32.mxu0 %vm6285_vm0, %v6284_v1 }
0x1249   :  { %v3058_v39 = vpop.f32.mrf.mxu1 }
0x124a   :  { %5729 = vmatmul.mubr.msk.f32.gmra.mxu0 %vm566_vm4, %v3058_v39 }
0x124b   :  { %v5699_v43 = vpop.f32.mrf.mxu1  ;;  %5731 = vmatprep.mubr.msk.f32.mxu0 %vm6285_vm0, %v6284_v1 }
0x1276   :  { %v3063_v17 = vpop.f32.mrf.mxu1 }
0x1277   :  { %5732 = vmatmul.mubr.msk.f32.gmra.mxu0 %vm566_vm4, %v3063_v17 }
0x1278   :  { %v5702_v25 = vpop.f32.mrf.mxu1  ;;  %5734 = vmatprep.mubr.msk.f32.mxu0 %vm6285_vm0, %v6284_v1 }
0x127a   :  { %v3068_v9 = vpop.f32.mrf.mxu1 }
0x127b   :  { %5735 = vmatmul.mubr.msk.f32.gmra.mxu0 %vm566_vm4, %v3068_v9 }
0x127c   :  { %v5705_v26 = vpop.f32.mrf.mxu1  ;;  %5800 = vmatprep.mubr.msk.f32.mxu0 %vm6285_vm0, %v6284_v1 }
0x127e   :  { %v3362_v5 = vpop.f32.mrf.mxu1 }
0x127f   :  { %v3406_v45 = vmul.f32 0.25, %v3362_v5 }
0x1280   :  { %v5757_v18 = vpop.f32.mrf.mxu1 }
0x1281   :  { %v8143_v6 = vadd.f32 %v7844_v53, %v3406_v45 }
0x1282   :  { %v3367_v24 = vpop.f32.mrf.mxu1 }
0x1283   :  { %v3407_v57 = vmul.f32 0.25, %v3367_v24  ;;  %v3424_v48 = vsel %vm731_vm5, %v8143_v6, -inf }
0x1284   :  { %3425 = vmax.xlane.f32.xlu0 %v3424_v48  ;;  %v5760_v35 = vpop.f32.mrf.mxu1 }
0x1285   :  { %v8148_v50 = vadd.f32 %v7854_v20, %v3407_v57 }
0x1286   :  { %v3372_v49 = vpop.f32.mrf.mxu1 }
0x1287   :  { %v3408_v63 = vmul.f32 0.25, %v3372_v49  ;;  %v3427_v32 = vsel %vm731_vm5, %v8148_v50, -inf }
0x1288   :  { %3428 = vmax.xlane.f32.xlu1 %v3427_v32  ;;  %v5763_v22 = vpop.f32.mrf.mxu1 }
0x1289   :  { %v8153_v53 = vadd.f32 %v7861_v14, %v3408_v63 }
0x128a   :  { %v3377_v30 = vpop.f32.mrf.mxu1 }
0x128b   :  { %v3409_v55 = vmul.f32 0.25, %v3377_v30  ;;  %v3430_v29 = vsel %vm731_vm5, %v8153_v53, -inf }
0x128c   :  { %3431 = vmax.xlane.f32.xlu0 %v3430_v29  ;;  %v5766_v62 = vpop.f32.mrf.mxu1 }
0x128d   :  { %v8158_v20 = vadd.f32 %v7871_v8, %v3409_v55 }
0x128e   :  { %v3382_v51 = vpop.f32.mrf.mxu1 }
0x128f   :  { %v3410_v46 = vmul.f32 0.25, %v3382_v51  ;;  %v3433_v23 = vsel %vm731_vm5, %v8158_v20, -inf }
0x1290   :  { %3434 = vmax.xlane.f32.xlu0 %v3433_v23  ;;  %v5769_v27 = vpop.f32.mrf.mxu1 }
0x1291   :  { %v8163_v14 = vadd.f32 %v7881_v37, %v3410_v46 }
0x1292   :  { %v3387_v52 = vpop.f32.mrf.mxu1 }
0x1293   :  { %v3411_v0 = vmul.f32 0.25, %v3387_v52  ;;  %v3436_v44 = vsel %vm731_vm5, %v8163_v14, -inf }
0x1294   :  { %3437 = vmax.xlane.f32.xlu1 %v3436_v44  ;;  %v5772_v42 = vpop.f32.mrf.mxu1 }
0x1295   :  { %v8168_v8 = vadd.f32 %v7891_v34, %v3411_v0 }
0x1296   :  { %v3392_v2 = vpop.f32.mrf.mxu1 }
0x1297   :  { %v3412_v58 = vmul.f32 0.25, %v3392_v2  ;;  %v3439_v3 = vsel %vm731_vm5, %v8168_v8, -inf }
0x1298   :  { %3440 = vmax.xlane.f32.xlu0 %v3439_v3  ;;  %v5775_v13 = vpop.f32.mrf.mxu1 }
0x1299   :  { %v8173_v37 = vadd.f32 %v7901_v56, %v3412_v58 }
0x129a   :  { %v3397_v21 = vpop.f32.mrf.mxu1 }
0x129b   :  { %v3413_v59 = vmul.f32 0.25, %v3397_v21  ;;  %v3442_v11 = vsel %vm731_vm5, %v8173_v37, -inf }
0x129c   :  { %3443 = vmax.xlane.f32.xlu1 %v3442_v11  ;;  %v5778_v39 = vpop.f32.mrf.mxu1 }
0x129d   :  { %v8178_v34 = vadd.f32 %v7911_v60, %v3413_v59 }
0x129e   :  { %v3402_v43 = vpop.f32.mrf.mxu1 }
0x129f   :  { %v3414_v17 = vmul.f32 0.25, %v3402_v43  ;;  %v3445_v25 = vsel %vm731_vm5, %v8178_v34, -inf }
0x12a0   :  { %3446 = vmax.xlane.f32.xlu0 %v3445_v25  ;;  %v5781_v9 = vpop.f32.mrf.mxu1 }
0x12a1   :  { %v8183_v56 = vadd.f32 %v7921_v41, %v3414_v17 }
0x12a3   :  { %v3448_v26 = vsel %vm756_vm6, %v8183_v56, -inf }
0x12a4   :  { %3449 = vmax.xlane.f32.xlu1 %v3448_v26 }
0x12b5   :  { %3535 = vrot.lane.b32.xlu1 %v7739_v33, %s6290_s30 }
0x12b6   :  { %3533 = vrot.lane.b32.xlu0 %v7749_v10, %s6290_s30 }
0x12b9   :  { %v8191_v60 = vpop.f32.mrf.mxu0 }
0x12ba   :  { %3531 = vrot.lane.b32.xlu0 %v7747_v19, %s6290_s30 }
0x12bb   :  { %v5712_v5 = vpop.f32.mrf.mxu0 }
0x12bd   :  { %v8195_v45 = vpop.f32.mrf.mxu0 }
0x12bf   :  { %v5715_v41 = vpop.f32.mrf.mxu0 }
0x12fa   :  { %v8197_v18 = vpop.f32.mrf.mxu0 }
0x12fc   :  { %v5718_v24 = vpop.f32.mrf.mxu0 }
0x12fe   :  { %v8199_v57 = vpop.f32.mrf.mxu0 }
0x1300   :  { %v5721_v48 = vpop.f32.mrf.mxu0 }
0x1302   :  { %v8201_v35 = vpop.f32.mrf.mxu0 }
0x1304   :  { %v5724_v33 = vpop.f32.mrf.mxu0 }
0x1306   :  { %v8203_v49 = vpop.f32.mrf.mxu0 }
0x1308   :  { %v5727_v10 = vpop.f32.mrf.mxu0 }
0x130a   :  { %v8205_v63 = vpop.f32.mrf.mxu0 }
0x130c   :  { %v5730_v32 = vpop.f32.mrf.mxu0 }
0x130d   :  { %v3426_v19 = vpop.xlane.xlu0 %3425 }
0x130e   :  { %v3451_v22 = vsub.f32 %v8143_v6, %v3426_v19 }
0x1310   :  { %v3460_v30 = vmul.f32 1.442695, %v3451_v22 }
0x1311   :  { %v3429_v55 = vpop.xlane.xlu1 %3428 }
0x1312   :  { %6163 = vpow2.f32 %v3460_v30  ;;  %v3452_v29 = vsub.f32 %v8148_v50, %v3429_v55 }
0x1314   :  { %v3462_v62 = vmul.f32 1.442695, %v3452_v29 }
0x1315   :  { %v3432_v51 = vpop.xlane.xlu0 %3431 }
0x1316   :  { %6165 = vpow2.f32 %v3462_v62  ;;  %v3453_v46 = vsub.f32 %v8153_v53, %v3432_v51 }
0x1318   :  { %v3464_v23 = vmul.f32 1.442695, %v3453_v46 }
0x1319   :  { %v3435_v27 = vpop.xlane.xlu0 %3434 }
0x131a   :  { %6167 = vpow2.f32 %v3464_v23  ;;  %v3454_v52 = vsub.f32 %v8158_v20, %v3435_v27 }
0x131c   :  { %v3466_v0 = vmul.f32 1.442695, %v3454_v52 }
0x131d   :  { %v3438_v44 = vpop.xlane.xlu1 %3437 }
0x131e   :  { %6169 = vpow2.f32 %v3466_v0  ;;  %v3455_v6 = vsub.f32 %v8163_v14, %v3438_v44 }
0x131f   :  { %v8212_v42 = vpop.eup %6163 }
0x1320   :  { %v3468_v2 = vmul.f32 1.442695, %v3455_v6  ;;  %v3478_v50 = vsel %vm731_vm5, %v8212_v42, 0.0 }
0x1321   :  { %3479 = vadd.xlane.f32.xlu0 %v3478_v50  ;;  %v3441_v3 = vpop.xlane.xlu0 %3440 }
0x1322   :  { %6171 = vpow2.f32 %v3468_v2  ;;  %v3456_v33 = vsub.f32 %v8168_v8, %v3441_v3 }
0x1323   :  { %v8216_v58 = vpop.eup %6165 }
0x1324   :  { %v3481_v53 = vsel %vm731_vm5, %v8216_v58, 0.0  ;;  %v3470_v10 = vmul.f32 1.442695, %v3456_v33 }
0x1325   :  { %3482 = vadd.xlane.f32.xlu1 %v3481_v53  ;;  %v3444_v13 = vpop.xlane.xlu1 %3443 }
0x1326   :  { %v3457_v32 = vsub.f32 %v8173_v37, %v3444_v13  ;;  %6173 = vpow2.f32 %v3470_v10 }
0x1327   :  { %v8220_v20 = vpop.eup %6167 }
0x1328   :  { %v3484_v14 = vsel %vm731_vm5, %v8220_v20, 0.0  ;;  %v3472_v19 = vmul.f32 1.442695, %v3457_v32  ;;  %v4768_v32 = vld [vmem:[%s8710_s9 + $0x30] sm:$0xff] }
0x1329   :  { %3485 = vadd.xlane.f32.xlu0 %v3484_v14  ;;  %v3447_v21 = vpop.xlane.xlu0 %3446 }
0x132a   :  { %6175 = vpow2.f32 %v3472_v19 }
0x132b   :  { %v8224_v59 = vpop.eup %6169 }
0x132c   :  { %v3487_v11 = vsel %vm731_vm5, %v8224_v59, 0.0 }
0x132d   :  { %3488 = vadd.xlane.f32.xlu0 %v3487_v11  ;;  %v3450_v39 = vpop.xlane.xlu1 %3449  ;;  %v3534_v17 = vpop.permute.xlu0 %3533 }
0x132e   :  { %v3459_v22 = vsub.f32 %v8183_v56, %v3450_v39  ;;  %v3458_v56 = vsub.f32 %v8178_v34, %v3447_v21 }
0x132f   :  { %v8228_v43 = vpop.eup %6171 }
0x1330   :  { %v3490_v25 = vsel %vm731_vm5, %v8228_v43, 0.0  ;;  %v3476_v30 = vmul.f32 1.442695, %v3459_v22  ;;  %v3474_v62 = vmul.f32 1.442695, %v3458_v56 }
0x1331   :  { %3491 = vadd.xlane.f32.xlu1 %v3490_v25  ;;  %v3536_v9 = vpop.permute.xlu1 %3535  ;;  %v3532_v26 = vpop.permute.xlu0 %3531 }
0x1332   :  { %5787 = vmatpush3.msra.mxu0 %v3536_v9  ;;  %6177 = vpow2.f32 %v3476_v30 }
0x1333   :  { %5788 = vmatprep.subr.mxu0 %v6284_v1  ;;  %v8246_v55 = vpop.eup %6173  ;;  %6179 = vpow2.f32 %v3474_v62 }
0x1334   :  { %5789 = vmatpush3.msra.mxu0 %v3534_v17 }
0x1335   :  { %5790 = vmatprep.subr.mxu0 %v6284_v1 }
0x1336   :  { %5791 = vmatpush3.msra.mxu0 %v3532_v26 }
0x1337   :  { %v8234_v5 = vpop.f32.mrf.mxu0  ;;  %5792 = vmatprep.subr.mxu0 %v6284_v1  ;;  %v8250_v29 = vpop.eup %6175 }
0x1339   :  { %v5733_v41 = vpop.f32.mrf.mxu0 }
0x133b   :  { %v8237_v24 = vpop.f32.mrf.mxu0 }
0x133d   :  { %v5736_v48 = vpop.f32.mrf.mxu0 }
0x133f   :  { %v8254_v8 = vpop.eup %6177 }
0x1340   :  { %v3502_v37 = vsel %vm756_vm6, %v8254_v8, 0.0  ;;  %v8263_v51 = vpop.eup %6179 }
0x1341   :  { %v3499_v46 = vsel %vm731_vm5, %v8263_v51, 0.0 }
0x1342   :  { %3529 = vrot.lane.b32.xlu1 %v7757_v15, %s6290_s30  ;;  %v3493_v15 = vsel %vm731_vm5, %v8246_v55, 0.0 }
0x1343   :  { %3527 = vrot.lane.b32.xlu0 %v7755_v38, %s6290_s30  ;;  %v3496_v38 = vsel %vm731_vm5, %v8250_v29, 0.0 }
0x1362   :  { %3494 = vadd.xlane.f32.xlu0 %v3493_v15 }
0x1366   :  { %3497 = vadd.xlane.f32.xlu1 %v3496_v38 }
0x136a   :  { %3503 = vadd.xlane.f32.xlu1 %v3502_v37 }
0x1378   :  { %3525 = vrot.lane.b32.xlu0 %v7765_v4, %s6290_s30  ;;  %v4769_v4 = vld [vmem:[%s8710_s9 + $0x38] sm:$0xff] }
0x1379   :  { %5828 = vmatpush3.msra.mxu1 %v4769_v4 }
0x137a   :  { %5829 = vmatprep.subr.mxu1 %v6284_v1 }
0x137b   :  { %5830 = vmatpush3.msra.mxu1 %v4768_v32 }
0x137c   :  { %3523 = vrot.lane.b32.xlu0 %v7763_v54, %s6290_s30  ;;  %5893 = vmatprep.subr.mxu1 %v6284_v1 }
0x139b   :  { %3500 = vadd.xlane.f32.xlu0 %v3499_v46 }
0x13aa   :  { %v3480_v23 = vpop.xlane.xlu0 %3479 }
0x13ab   :  { %6181 = vrcp.f32 %v3480_v23 }
0x13ae   :  { %v3483_v52 = vpop.xlane.xlu1 %3482 }
0x13af   :  { %6183 = vrcp.f32 %v3483_v52 }
0x13b2   :  { %v3486_v27 = vpop.xlane.xlu0 %3485 }
0x13b3   :  { %6185 = vrcp.f32 %v3486_v27 }
0x13b6   :  { %v3489_v0 = vpop.xlane.xlu0 %3488 }
0x13b7   :  { %6187 = vrcp.f32 %v3489_v0 }
0x13b8   :  { %v6182_v50 = vpop.eup %6181 }
0x13b9   :  { %v3514_v53 = vmul.f32 %v6182_v50, %v8212_v42 }
0x13ba   :  { %v3492_v44 = vpop.xlane.xlu1 %3491  ;;  %v3528_v34 = vpop.permute.xlu0 %3527 }
0x13bb   :  { %6189 = vrcp.f32 %v3492_v44 }
0x13bc   :  { %v6184_v14 = vpop.eup %6183 }
0x13bd   :  { %v3515_v13 = vmul.f32 %v6184_v14, %v8216_v58 }
0x13be   :  { %v3530_v54 = vpop.permute.xlu1 %3529 }
0x13bf   :  { %5793 = vmatpush3.msra.mxu0 %v3530_v54  ;;  %v4808_v54 = vld [vmem:[%s8711_s10 + $0x1] ss:$0 sm:$0xff] }
0x13c0   :  { %5794 = vmatprep.subr.mxu0 %v6284_v1  ;;  %v6186_v21 = vpop.eup %6185 }
0x13c1   :  { %5795 = vmatpush3.msra.mxu0 %v3528_v34  ;;  %v3516_v42 = vmul.f32 %v6186_v21, %v8220_v20  ;;  %v3215_v34 = vadd.f32 %v4808_v54, %v8191_v60 }
0x13c2   :  { %5796 = vmatprep.subr.mxu0 %v6284_v1 }
0x13c4   :  { %v6188_v39 = vpop.eup %6187 }
0x13c5   :  { %v3517_v17 = vmul.f32 %v6188_v39, %v8224_v59 }
0x13c8   :  { %v6190_v25 = vpop.eup %6189 }
0x13c9   :  { %v3518_v58 = vmul.f32 %v6190_v25, %v8228_v43  ;;  %v3218_v25 = vadd.f32 %v4808_v54, %v8199_v57 }
0x13eb   :  { %v3495_v6 = vpop.xlane.xlu0 %3494 }
0x13ec   :  { %6191 = vrcp.f32 %v3495_v6 }
0x13ef   :  { %v3526_v2 = vpop.permute.xlu0 %3525  ;;  %v3498_v11 = vpop.xlane.xlu1 %3497 }
0x13f0   :  { %5797 = vmatpush3.msra.mxu0 %v3526_v2  ;;  %6193 = vrcp.f32 %v3498_v11 }
0x13f1   :  { %5798 = vmatprep.subr.mxu0 %v6284_v1 }
0x13f3   :  { %v3524_v3 = vpop.permute.xlu0 %3523  ;;  %v3504_v43 = vpop.xlane.xlu1 %3503 }
0x13f4   :  { %5799 = vmatpush3.msra.mxu0 %v3524_v3 }
0x13f5   :  { %5801 = vmatmul.mubr.msk.f32.vlgmr.msra.gmra.mxu0 %vm731_vm5, %v3514_v53  ;;  %5858 = vmatprep.subr.mxu0 %v6284_v1  ;;  %v3216_v53 = vadd.f32 %v4808_v54, %v8195_v45 }
0x13f6   :  { %5803 = vmatprep.mubr.msk.f32.mxu0 %vm6285_vm0, %v6284_v1 }
0x13f9   :  { %5804 = vmatmul.mubr.msk.f32.gmra.mxu0 %vm731_vm5, %v3515_v13  ;;  %v6192_v9 = vpop.eup %6191 }
0x13fa   :  { %5806 = vmatprep.mubr.msk.f32.mxu0 %vm6285_vm0, %v6284_v1  ;;  %v3519_v20 = vmul.f32 %v6192_v9, %v8246_v55 }
0x13fd   :  { %5807 = vmatmul.mubr.msk.f32.gmra.mxu0 %vm731_vm5, %v3516_v42  ;;  %v6194_v26 = vpop.eup %6193  ;;  %v3217_v42 = vadd.f32 %v4808_v54, %v8197_v18 }
0x13fe   :  { %5809 = vmatprep.mubr.msk.f32.mxu0 %vm6285_vm0, %v6284_v1  ;;  %v3520_v59 = vmul.f32 %v6194_v26, %v8250_v29  ;;  %v3219_v26 = vadd.f32 %v4808_v54, %v8201_v35 }
0x1401   :  { %5810 = vmatmul.mubr.msk.f32.gmra.mxu0 %vm731_vm5, %v3517_v17 }
0x1402   :  { %5812 = vmatprep.mubr.msk.f32.mxu0 %vm6285_vm0, %v6284_v1 }
0x1405   :  { %5813 = vmatmul.mubr.msk.f32.gmra.mxu0 %vm731_vm5, %v3518_v58 }
0x1406   :  { %5815 = vmatprep.mubr.msk.f32.mxu0 %vm6285_vm0, %v6284_v1 }
0x1409   :  { %5816 = vmatmul.mubr.msk.f32.gmra.mxu0 %vm731_vm5, %v3519_v20 }
0x140a   :  { %5818 = vmatprep.mubr.msk.f32.mxu0 %vm6285_vm0, %v6284_v1 }
0x140d   :  { %5819 = vmatmul.mubr.msk.f32.gmra.mxu0 %vm731_vm5, %v3520_v59 }
0x140e   :  { %5821 = vmatprep.mubr.msk.f32.mxu0 %vm6285_vm0, %v6284_v1 }
0x1424   :  { %v3501_v41 = vpop.xlane.xlu0 %3500 }
0x1425   :  { %6195 = vrcp.f32 %v3501_v41 }
0x1426   :  { %6197 = vrcp.f32 %v3504_v43 }
0x1432   :  { %v6196_v48 = vpop.eup %6195 }
0x1433   :  { %v3521_v33 = vmul.f32 %v6196_v48, %v8263_v51  ;;  %v6198_v10 = vpop.eup %6197  ;;  %v3220_v48 = vadd.f32 %v4808_v54, %v8203_v49 }
0x1434   :  { %v3522_v19 = vmul.f32 %v6198_v10, %v8254_v8 }
0x1435   :  { %5822 = vmatmul.mubr.msk.f32.gmra.mxu0 %vm731_vm5, %v3521_v33 }
0x1436   :  { %5824 = vmatprep.mubr.msk.f32.mxu0 %vm6285_vm0, %v6284_v1 }
0x1439   :  { %5825 = vmatmul.mubr.msk.f32.gmra.mxu0 %vm731_vm5, %v3522_v19  ;;  %v3221_v19 = vadd.f32 %v4808_v54, %v8205_v63 }
0x143a   :  { %5866 = vmatprep.mubr.msk.f32.mxu0 %vm6285_vm0, %v6284_v1 }
0x14b5   :  { %v3644_v22 = vpop.f32.mrf.mxu0 }
0x14b6   :  { %5832 = vmatmul.mubr.msk.f32.vlgmr.msra.gmra.mxu1 %vm566_vm4, %v3644_v22 }
0x14b7   :  { %v5802_v30 = vpop.f32.mrf.mxu0  ;;  %5834 = vmatprep.mubr.msk.f32.mxu1 %vm6285_vm0, %v6284_v1 }
0x14b9   :  { %v3649_v55 = vpop.f32.mrf.mxu0 }
0x14ba   :  { %5835 = vmatmul.mubr.msk.f32.gmra.mxu1 %vm566_vm4, %v3649_v55 }
0x14bb   :  { %v5805_v15 = vpop.f32.mrf.mxu0  ;;  %5837 = vmatprep.mubr.msk.f32.mxu1 %vm6285_vm0, %v6284_v1 }
0x14bd   :  { %v3654_v29 = vpop.f32.mrf.mxu0 }
0x14be   :  { %5838 = vmatmul.mubr.msk.f32.gmra.mxu1 %vm566_vm4, %v3654_v29 }
0x14bf   :  { %v5808_v38 = vpop.f32.mrf.mxu0  ;;  %5840 = vmatprep.mubr.msk.f32.mxu1 %vm6285_vm0, %v6284_v1 }
0x14c0   :  { %v3222_v38 = vadd.f32 %v4808_v54, %v8234_v5 }
0x14c1   :  { %v3659_v8 = vpop.f32.mrf.mxu0 }
0x14c2   :  { %5841 = vmatmul.mubr.msk.f32.gmra.mxu1 %vm566_vm4, %v3659_v8 }
0x14c3   :  { %v5811_v37 = vpop.f32.mrf.mxu0  ;;  %5843 = vmatprep.mubr.msk.f32.mxu1 %vm6285_vm0, %v6284_v1 }
0x14c4   :  { %v3223_v37 = vadd.f32 %v4808_v54, %v8237_v24 }
0x14c5   :  { %v3664_v56 = vpop.f32.mrf.mxu0 }
0x14c6   :  { %5844 = vmatmul.mubr.msk.f32.gmra.mxu1 %vm566_vm4, %v3664_v56 }
0x14c7   :  { %v5814_v62 = vpop.f32.mrf.mxu0  ;;  %5846 = vmatprep.mubr.msk.f32.mxu1 %vm6285_vm0, %v6284_v1 }
0x14c9   :  { %v3669_v51 = vpop.f32.mrf.mxu0 }
0x14ca   :  { %5847 = vmatmul.mubr.msk.f32.gmra.mxu1 %vm566_vm4, %v3669_v51 }
0x14cb   :  { %v5817_v46 = vpop.f32.mrf.mxu0  ;;  %5849 = vmatprep.mubr.msk.f32.mxu1 %vm6285_vm0, %v6284_v1 }
0x14cd   :  { %v3674_v23 = vpop.f32.mrf.mxu0 }
0x14ce   :  { %5850 = vmatmul.mubr.msk.f32.gmra.mxu1 %vm566_vm4, %v3674_v23 }
0x14cf   :  { %v5820_v27 = vpop.f32.mrf.mxu0  ;;  %5852 = vmatprep.mubr.msk.f32.mxu1 %vm6285_vm0, %v6284_v1 }
0x14f5   :  { %v3679_v52 = vpop.f32.mrf.mxu0 }
0x14f6   :  { %5853 = vmatmul.mubr.msk.f32.gmra.mxu1 %vm566_vm4, %v3679_v52 }
0x14f7   :  { %v5823_v4 = vpop.f32.mrf.mxu0  ;;  %5855 = vmatprep.mubr.msk.f32.mxu1 %vm6285_vm0, %v6284_v1 }
0x14f9   :  { %v3684_v0 = vpop.f32.mrf.mxu0 }
0x14fa   :  { %5856 = vmatmul.mubr.msk.f32.gmra.mxu1 %vm566_vm4, %v3684_v0 }
0x14fb   :  { %v5826_v44 = vpop.f32.mrf.mxu0  ;;  %5909 = vmatprep.mubr.msk.f32.mxu1 %vm6285_vm0, %v6284_v1 }
0x1576   :  { %v3781_v6 = vpop.f32.mrf.mxu1 }
0x1577   :  { %v3825_v2 = vadd.f32 %v3781_v6, %v3215_v34 }
0x1578   :  { %v5833_v50 = vpop.f32.mrf.mxu1 }
0x1579   :  { %v8348_v3 = vadd.f32 %v3825_v2, %v7554_v47 }
0x157a   :  { %v3786_v14 = vpop.f32.mrf.mxu1 }
0x157b   :  { %v3826_v13 = vadd.f32 %v3786_v14, %v3216_v53  ;;  %v3847_v21 = vsel %vm236_vm2, %v8348_v3, 0.0 }
0x157c   :  { %3848 = vadd.xlane.f32.xlu1 %v3847_v21  ;;  %v5836_v11 = vpop.f32.mrf.mxu1 }
0x157d   :  { %v8354_v39 = vadd.f32 %v3826_v13, %v7559_v28 }
0x157e   :  { %v3791_v60 = vpop.f32.mrf.mxu1 }
0x157f   :  { %v3827_v17 = vadd.f32 %v3791_v60, %v3217_v42  ;;  %v3850_v45 = vsel %vm236_vm2, %v8354_v39, 0.0 }
0x1580   :  { %3851 = vadd.xlane.f32.xlu1 %v3850_v45  ;;  %v5839_v47 = vpop.f32.mrf.mxu1 }
0x1581   :  { %v8360_v58 = vadd.f32 %v3827_v17, %v7564_v12 }
0x1582   :  { %v3796_v9 = vpop.f32.mrf.mxu1 }
0x1583   :  { %v3828_v20 = vadd.f32 %v3796_v9, %v3218_v25  ;;  %v3853_v18 = vsel %vm236_vm2, %v8360_v58, 0.0 }
0x1584   :  { %3854 = vadd.xlane.f32.xlu1 %v3853_v18  ;;  %v5842_v28 = vpop.f32.mrf.mxu1 }
0x1585   :  { %v8366_v59 = vadd.f32 %v3828_v20, %v7569_v7 }
0x1586   :  { %v3801_v43 = vpop.f32.mrf.mxu1 }
0x1587   :  { %v3829_v41 = vadd.f32 %v3801_v43, %v3219_v26  ;;  %v3856_v57 = vsel %vm236_vm2, %v8366_v59, 0.0 }
0x1588   :  { %3857 = vadd.xlane.f32.xlu1 %v3856_v57  ;;  %v5845_v12 = vpop.f32.mrf.mxu1 }
0x1589   :  { %v8372_v33 = vadd.f32 %v3829_v41, %v7574_v16 }
0x158a   :  { %v3806_v10 = vpop.f32.mrf.mxu1 }
0x158b   :  { %v3830_v32 = vadd.f32 %v3806_v10, %v3220_v48  ;;  %v3859_v35 = vsel %vm236_vm2, %v8372_v33, 0.0 }
0x158c   :  { %3860 = vadd.xlane.f32.xlu0 %v3859_v35  ;;  %v5848_v7 = vpop.f32.mrf.mxu1  ;;  %v4852_v35 = vld [vmem:[%s8714_s13 + $0x30] sm:$0xff] }
0x158d   :  { %v8378_v22 = vadd.f32 %v3830_v32, %v7579_v61  ;;  %v4853_v32 = vld [vmem:[%s8714_s13 + $0x38] sm:$0xff]  ;;  %v4851_v7 = vld [vmem:[%s8714_s13 + $0x28] sm:$0xff] }
0x158e   :  { %v3811_v30 = vpop.f32.mrf.mxu1  ;;  %5859 = vmatpush3.msra.mxu0 %v4853_v32 }
0x158f   :  { %v3831_v55 = vadd.f32 %v3811_v30, %v3221_v19  ;;  %v3862_v49 = vsel %vm236_vm2, %v8378_v22, 0.0  ;;  %5860 = vmatprep.subr.mxu0 %v6284_v1  ;;  %v4850_v19 = vld [vmem:[%s8714_s13 + $0x20] sm:$0xff] }
0x1590   :  { %3863 = vadd.xlane.f32.xlu1 %v3862_v49  ;;  %v5851_v16 = vpop.f32.mrf.mxu1  ;;  %5861 = vmatpush3.msra.mxu0 %v4852_v35 }
0x1591   :  { %v8383_v15 = vadd.f32 %v3831_v55, %v7584_v31  ;;  %5862 = vmatprep.subr.mxu0 %v6284_v1 }
0x1592   :  { %5863 = vmatpush3.msra.mxu0 %v4851_v7 }
0x1593   :  { %v3865_v29 = vsel %vm236_vm2, %v8383_v15, 0.0  ;;  %5864 = vmatprep.subr.mxu0 %v6284_v1 }
0x1594   :  { %3866 = vadd.xlane.f32.xlu0 %v3865_v29  ;;  %5865 = vmatpush3.msra.mxu0 %v4850_v19 }
0x1595   :  { %5936 = vmatprep.subr.mxu0 %v6284_v1 }
0x15b6   :  { %v3816_v63 = vpop.f32.mrf.mxu1 }
0x15b7   :  { %v3832_v8 = vadd.f32 %v3816_v63, %v3222_v38 }
0x15b8   :  { %v5854_v61 = vpop.f32.mrf.mxu1 }
0x15b9   :  { %v8390_v56 = vadd.f32 %v3832_v8, %v7589_v36 }
0x15ba   :  { %v3821_v62 = vpop.f32.mrf.mxu1 }
0x15bb   :  { %v3833_v51 = vadd.f32 %v3821_v62, %v3223_v37  ;;  %v3868_v31 = vsel %vm236_vm2, %v8390_v56, 0.0 }
0x15bc   :  { %3869 = vadd.xlane.f32.xlu1 %v3868_v31  ;;  %v5857_v46 = vpop.f32.mrf.mxu1 }
0x15bd   :  { %v8395_v23 = vadd.f32 %v3833_v51, %v7594_v40 }
0x15bf   :  { %v3871_v5 = vsel %vm261_vm3, %v8395_v23, 0.0 }
0x15c0   :  { %3872 = vadd.xlane.f32.xlu0 %v3871_v5 }
0x1605   :  { %v3849_v27 = vpop.xlane.xlu1 %3848 }
0x1606   :  { %v3874_v52 = vmul.f32 0.03125, %v3849_v27 }
0x1608   :  { %v8400_v24 = vsub.f32 %v8348_v3, %v3874_v52 }
0x1609   :  { %v3852_v36 = vpop.xlane.xlu1 %3851 }
0x160a   :  { %v3875_v4 = vmul.f32 0.03125, %v3852_v36  ;;  %v3892_v0 = vmul.f32 %v8400_v24, %v8400_v24 }
0x160c   :  { %v8405_v44 = vsub.f32 %v8354_v39, %v3875_v4  ;;  %v3901_v40 = vsel %vm236_vm2, %v3892_v0, 0.0 }
0x160d   :  { %3902 = vadd.xlane.f32.xlu1 %v3901_v40  ;;  %v3855_v54 = vpop.xlane.xlu1 %3854 }
0x160e   :  { %v3876_v34 = vmul.f32 0.03125, %v3855_v54  ;;  %v3893_v6 = vmul.f32 %v8405_v44, %v8405_v44 }
0x1610   :  { %v8411_v2 = vsub.f32 %v8360_v58, %v3876_v34  ;;  %v3904_v50 = vsel %vm236_vm2, %v3893_v6, 0.0 }
0x1611   :  { %3905 = vadd.xlane.f32.xlu0 %v3904_v50  ;;  %v3858_v53 = vpop.xlane.xlu1 %3857 }
0x1612   :  { %v3877_v14 = vmul.f32 0.03125, %v3858_v53  ;;  %v3894_v13 = vmul.f32 %v8411_v2, %v8411_v2  ;;  %v8472_v53 = vld [vmem:[%s8712_s11 + $0x1] ss:$0 sm:$0xff] }
0x1614   :  { %v8417_v21 = vsub.f32 %v8366_v59, %v3877_v14  ;;  %v3907_v11 = vsel %vm236_vm2, %v3894_v13, 0.0 }
0x1615   :  { %v3861_v42 = vpop.xlane.xlu0 %3860  ;;  %3908 = vadd.xlane.f32.xlu1 %v3907_v11  ;;  %v8478_v11 = vld [vmem:[%s8713_s12 + $0x1] ss:$0 sm:$0xff] }
0x1616   :  { %v3878_v60 = vmul.f32 0.03125, %v3861_v42  ;;  %v3895_v17 = vmul.f32 %v8417_v21, %v8417_v21 }
0x1618   :  { %v8423_v45 = vsub.f32 %v8372_v33, %v3878_v60  ;;  %v3910_v47 = vsel %vm236_vm2, %v3895_v17, 0.0 }
0x1619   :  { %3911 = vadd.xlane.f32.xlu0 %v3910_v47  ;;  %v3864_v25 = vpop.xlane.xlu1 %3863 }
0x161a   :  { %v3879_v9 = vmul.f32 0.03125, %v3864_v25  ;;  %v3896_v20 = vmul.f32 %v8423_v45, %v8423_v45 }
0x161c   :  { %v8429_v18 = vsub.f32 %v8378_v22, %v3879_v9  ;;  %v3913_v28 = vsel %vm236_vm2, %v3896_v20, 0.0 }
0x161d   :  { %v3867_v26 = vpop.xlane.xlu0 %3866  ;;  %3914 = vadd.xlane.f32.xlu1 %v3913_v28 }
0x161e   :  { %v3880_v43 = vmul.f32 0.03125, %v3867_v26  ;;  %v3897_v41 = vmul.f32 %v8429_v18, %v8429_v18 }
0x1620   :  { %v8435_v57 = vsub.f32 %v8383_v15, %v3880_v43  ;;  %v3916_v12 = vsel %vm236_vm2, %v3897_v41, 0.0 }
0x1621   :  { %3917 = vadd.xlane.f32.xlu0 %v3916_v12 }
0x1622   :  { %v3898_v48 = vmul.f32 %v8435_v57, %v8435_v57 }
0x1624   :  { %v3919_v10 = vsel %vm236_vm2, %v3898_v48, 0.0 }
0x1625   :  { %3920 = vadd.xlane.f32.xlu1 %v3919_v10 }
0x1645   :  { %v3870_v30 = vpop.xlane.xlu1 %3869 }
0x1646   :  { %v3881_v55 = vmul.f32 0.03125, %v3870_v30 }
0x1648   :  { %v8458_v49 = vsub.f32 %v8390_v56, %v3881_v55 }
0x1649   :  { %v3873_v16 = vpop.xlane.xlu0 %3872 }
0x164a   :  { %v3882_v29 = vmul.f32 0.03125, %v3873_v16  ;;  %v3899_v38 = vmul.f32 %v8458_v49, %v8458_v49 }
0x164c   :  { %v8463_v63 = vsub.f32 %v8395_v23, %v3882_v29  ;;  %v3922_v8 = vsel %vm236_vm2, %v3899_v38, 0.0 }
0x164d   :  { %3923 = vadd.xlane.f32.xlu0 %v3922_v8 }
0x164e   :  { %v3900_v61 = vmul.f32 %v8463_v63, %v8463_v63 }
0x1650   :  { %v3925_v37 = vsel %vm261_vm3, %v3900_v61, 0.0 }
0x1651   :  { %3926 = vadd.xlane.f32.xlu1 %v3925_v37 }
0x1696   :  { %v3903_v62 = vpop.xlane.xlu1 %3902 }
0x1697   :  { %v3928_v51 = vmul.f32 0.03125, %v3903_v62 }
0x1699   :  { %v3937_v31 = vadd.f32 1e-12, %v3928_v51 }
0x169a   :  { %v3906_v46 = vpop.xlane.xlu0 %3905 }
0x169b   :  { %6199 = vrsqrt.f32 %v3937_v31  ;;  %v3929_v5 = vmul.f32 0.03125, %v3906_v46 }
0x169d   :  { %v3938_v27 = vadd.f32 1e-12, %v3929_v5 }
0x169e   :  { %v3909_v52 = vpop.xlane.xlu1 %3908 }
0x169f   :  { %6201 = vrsqrt.f32 %v3938_v27  ;;  %v3930_v36 = vmul.f32 0.03125, %v3909_v52 }
0x16a1   :  { %v3939_v4 = vadd.f32 1e-12, %v3930_v36 }
0x16a2   :  { %v3912_v0 = vpop.xlane.xlu0 %3911 }
0x16a3   :  { %6203 = vrsqrt.f32 %v3939_v4  ;;  %v3931_v40 = vmul.f32 0.03125, %v3912_v0 }
0x16a5   :  { %v3940_v54 = vadd.f32 1e-12, %v3931_v40 }
0x16a6   :  { %v3915_v34 = vpop.xlane.xlu1 %3914 }
0x16a7   :  { %6205 = vrsqrt.f32 %v3940_v54  ;;  %v3932_v6 = vmul.f32 0.03125, %v3915_v34 }
0x16a8   :  { %v6200_v50 = vpop.eup %6199 }
0x16a9   :  { %v3955_v14 = vmul.f32 %v6200_v50, %v8400_v24  ;;  %v3941_v13 = vadd.f32 1e-12, %v3932_v6  ;;  %v4870_v6 = vld [vmem:[%s8716_s15 + $0x68] sm:$0xff]  ;;  %v4869_v50 = vld [vmem:[%s8716_s15 + $0x60] sm:$0xff] }
0x16aa   :  { %v3918_v42 = vpop.xlane.xlu0 %3917 }
0x16ab   :  { %v3970_v60 = vmul.f32 %v8472_v53, %v3955_v14  ;;  %6207 = vrsqrt.f32 %v3941_v13  ;;  %v3933_v17 = vmul.f32 0.03125, %v3918_v42  ;;  %v4867_v14 = vld [vmem:[%s8716_s15 + $0x50] sm:$0xff]  ;;  %v4866_v13 = vld [vmem:[%s8716_s15 + $0x48] sm:$0xff]  ;;  %v8567_v42 = vld [vmem:[%s8715_s14 + $0x1] ss:$0 sm:$0xff] }
0x16ac   :  { %v6202_v47 = vpop.eup %6201 }
0x16ad   :  { %v3985_v25 = vadd.f32 %v8478_v11, %v3970_v60  ;;  %v3956_v9 = vmul.f32 %v6202_v47, %v8405_v44  ;;  %v3942_v20 = vadd.f32 1e-12, %v3933_v17 }
0x16ae   :  { %v3921_v28 = vpop.xlane.xlu1 %3920 }
0x16af   :  { %6209 = vrsqrt.f32 %v3942_v20  ;;  %v3934_v24 = vmul.f32 0.03125, %v3921_v28  ;;  %5867 = vmatmul.mubr.msk.f32.vlgmr.msra.gmra.mxu0 %vm236_vm2, %v3985_v25  ;;  %v3971_v26 = vmul.f32 %v8472_v53, %v3956_v9 }
0x16b0   :  { %v6204_v43 = vpop.eup %6203  ;;  %5869 = vmatprep.mubr.msk.f32.mxu0 %vm6285_vm0, %v6284_v1 }
0x16b1   :  { %v3957_v41 = vmul.f32 %v6204_v43, %v8411_v2  ;;  %v3943_v12 = vadd.f32 1e-12, %v3934_v24  ;;  %v3986_v48 = vadd.f32 %v8478_v11, %v3971_v26 }
0x16b3   :  { %6211 = vrsqrt.f32 %v3943_v12  ;;  %5870 = vmatmul.mubr.msk.f32.gmra.mxu0 %vm236_vm2, %v3986_v48  ;;  %v3972_v44 = vmul.f32 %v8472_v53, %v3957_v41 }
0x16b4   :  { %v6206_v10 = vpop.eup %6205  ;;  %5872 = vmatprep.mubr.msk.f32.mxu0 %vm6285_vm0, %v6284_v1 }
0x16b5   :  { %v3958_v32 = vmul.f32 %v6206_v10, %v8417_v21  ;;  %v3987_v35 = vadd.f32 %v8478_v11, %v3972_v44 }
0x16b7   :  { %5873 = vmatmul.mubr.msk.f32.gmra.mxu0 %vm236_vm2, %v3987_v35  ;;  %v3973_v2 = vmul.f32 %v8472_v53, %v3958_v32 }
0x16b8   :  { %v6208_v7 = vpop.eup %6207  ;;  %5875 = vmatprep.mubr.msk.f32.mxu0 %vm6285_vm0, %v6284_v1 }
0x16b9   :  { %v3959_v19 = vmul.f32 %v6208_v7, %v8423_v45  ;;  %v3988_v30 = vadd.f32 %v8478_v11, %v3973_v2 }
0x16bb   :  { %5876 = vmatmul.mubr.msk.f32.gmra.mxu0 %vm236_vm2, %v3988_v30  ;;  %v3974_v55 = vmul.f32 %v8472_v53, %v3959_v19 }
0x16bc   :  { %v6210_v16 = vpop.eup %6209  ;;  %5878 = vmatprep.mubr.msk.f32.mxu0 %vm6285_vm0, %v6284_v1 }
0x16bd   :  { %v3960_v21 = vmul.f32 %v6210_v16, %v8429_v18  ;;  %v3989_v29 = vadd.f32 %v8478_v11, %v3974_v55 }
0x16bf   :  { %5879 = vmatmul.mubr.msk.f32.gmra.mxu0 %vm236_vm2, %v3989_v29  ;;  %v3975_v38 = vmul.f32 %v8472_v53, %v3960_v21 }
0x16c0   :  { %v6212_v8 = vpop.eup %6211  ;;  %5881 = vmatprep.mubr.msk.f32.mxu0 %vm6285_vm0, %v6284_v1 }
0x16c1   :  { %v3961_v45 = vmul.f32 %v6212_v8, %v8435_v57  ;;  %v3990_v61 = vadd.f32 %v8478_v11, %v3975_v38 }
0x16c3   :  { %5882 = vmatmul.mubr.msk.f32.gmra.mxu0 %vm236_vm2, %v3990_v61  ;;  %v3976_v37 = vmul.f32 %v8472_v53, %v3961_v45 }
0x16c4   :  { %5884 = vmatprep.mubr.msk.f32.mxu0 %vm6285_vm0, %v6284_v1 }
0x16c5   :  { %v3991_v18 = vadd.f32 %v8478_v11, %v3976_v37 }
0x16c7   :  { %5885 = vmatmul.mubr.msk.f32.gmra.mxu0 %vm236_vm2, %v3991_v18 }
0x16c8   :  { %5887 = vmatprep.mubr.msk.f32.mxu0 %vm6285_vm0, %v6284_v1 }
0x16d6   :  { %v3924_v62 = vpop.xlane.xlu0 %3923 }
0x16d7   :  { %v3935_v51 = vmul.f32 0.03125, %v3924_v62 }
0x16d9   :  { %v3944_v31 = vadd.f32 1e-12, %v3935_v51 }
0x16da   :  { %v3927_v57 = vpop.xlane.xlu1 %3926 }
0x16db   :  { %6213 = vrsqrt.f32 %v3944_v31  ;;  %v3936_v46 = vmul.f32 0.03125, %v3927_v57 }
0x16dd   :  { %v3945_v5 = vadd.f32 1e-12, %v3936_v46 }
0x16df   :  { %6215 = vrsqrt.f32 %v3945_v5 }
0x16e8   :  { %v6214_v27 = vpop.eup %6213 }
0x16e9   :  { %v3962_v52 = vmul.f32 %v6214_v27, %v8458_v49  ;;  %v4872_v49 = vld [vmem:[%s8716_s15 + $0x78] sm:$0xff] }
0x16ea   :  { %5894 = vmatpush3.msra.mxu1 %v4872_v49 }
0x16eb   :  { %v3977_v36 = vmul.f32 %v8472_v53, %v3962_v52  ;;  %5895 = vmatprep.subr.mxu1 %v6284_v1 }
0x16ec   :  { %v6216_v4 = vpop.eup %6215 }
0x16ed   :  { %v3963_v0 = vmul.f32 %v6216_v4, %v8463_v63  ;;  %v3992_v40 = vadd.f32 %v8478_v11, %v3977_v36  ;;  %v4871_v63 = vld [vmem:[%s8716_s15 + $0x70] sm:$0xff] }
0x16ee   :  { %5896 = vmatpush3.msra.mxu1 %v4871_v63 }
0x16ef   :  { %5888 = vmatmul.mubr.msk.f32.gmra.mxu0 %vm236_vm2, %v3992_v40  ;;  %v3978_v54 = vmul.f32 %v8472_v53, %v3963_v0  ;;  %5897 = vmatprep.subr.mxu1 %v6284_v1  ;;  %v4868_v53 = vld [vmem:[%s8716_s15 + $0x58] sm:$0xff] }
0x16f0   :  { %5890 = vmatprep.mubr.msk.f32.mxu0 %vm6285_vm0, %v6284_v1  ;;  %5898 = vmatpush3.msra.mxu1 %v4870_v6 }
0x16f1   :  { %v3993_v34 = vadd.f32 %v8478_v11, %v3978_v54  ;;  %5899 = vmatprep.subr.mxu1 %v6284_v1  ;;  %v4865_v11 = vld [vmem:[%s8716_s15 + $0x40] sm:$0xff] }
0x16f2   :  { %5900 = vmatpush3.msra.mxu1 %v4869_v50 }
0x16f3   :  { %5891 = vmatmul.mubr.msk.f32.gmra.mxu0 %vm236_vm2, %v3993_v34  ;;  %5901 = vmatprep.subr.mxu1 %v6284_v1 }
0x16f4   :  { %5954 = vmatprep.mubr.msk.f32.mxu0 %vm6285_vm0, %v6284_v1  ;;  %5902 = vmatpush3.msra.mxu1 %v4868_v53 }
0x16f5   :  { %5903 = vmatprep.subr.mxu1 %v6284_v1 }
0x16f6   :  { %5904 = vmatpush3.msra.mxu1 %v4867_v14 }
0x16f7   :  { %5905 = vmatprep.subr.mxu1 %v6284_v1 }
0x16f8   :  { %5906 = vmatpush3.msra.mxu1 %v4866_v13 }
0x16f9   :  { %5907 = vmatprep.subr.mxu1 %v6284_v1 }
0x16fa   :  { %5908 = vmatpush3.msra.mxu1 %v4865_v11 }
0x176f   :  { %v4100_v60 = vpop.f32.mrf.mxu0 }
0x1770   :  { %v4101_v17 = vadd.f32 %v8567_v42, %v4100_v60 }
0x1771   :  { %v5868_v47 = vpop.f32.mrf.mxu0 }
0x1772   :  { %v4153_v25 = vmul.f32 0.044715, %v4101_v17  ;;  %v4144_v50 = vmul.f32 0.5, %v4101_v17 }
0x1773   :  { %v4105_v9 = vpop.f32.mrf.mxu0 }
0x1774   :  { %v4162_v20 = vmul.f32 %v4153_v25, %v4101_v17  ;;  %v4106_v28 = vadd.f32 %v8567_v42, %v4105_v9 }
0x1775   :  { %v5871_v24 = vpop.f32.mrf.mxu0 }
0x1776   :  { %v4171_v26 = vmul.f32 %v4162_v20, %v4101_v17  ;;  %v4154_v43 = vmul.f32 0.044715, %v4106_v28  ;;  %v4145_v20 = vmul.f32 0.5, %v4106_v28 }
0x1777   :  { %v4110_v41 = vpop.f32.mrf.mxu0 }
0x1778   :  { %v4180_v12 = vadd.f32 %v4171_v26, %v4101_v17  ;;  %v4163_v48 = vmul.f32 %v4154_v43, %v4106_v28  ;;  %v4111_v44 = vadd.f32 %v8567_v42, %v4110_v41 }
0x1779   :  { %v5874_v10 = vpop.f32.mrf.mxu0 }
0x177a   :  { %v4189_v32 = vmul.f32 0.7978846, %v4180_v12  ;;  %v4172_v35 = vmul.f32 %v4163_v48, %v4106_v28  ;;  %v4155_v2 = vmul.f32 0.044715, %v4111_v44  ;;  %v4146_v48 = vmul.f32 0.5, %v4111_v44 }
0x177b   :  { %v4115_v7 = vpop.f32.mrf.mxu0 }
0x177c   :  { %6217 = vtanh.f32 %v4189_v32  ;;  %v4181_v19 = vadd.f32 %v4172_v35, %v4106_v28  ;;  %v4164_v30 = vmul.f32 %v4155_v2, %v4111_v44  ;;  %v4116_v55 = vadd.f32 %v8567_v42, %v4115_v7 }
0x177d   :  { %v5877_v16 = vpop.f32.mrf.mxu0 }
0x177e   :  { %v4190_v21 = vmul.f32 0.7978846, %v4181_v19  ;;  %v4173_v29 = vmul.f32 %v4164_v30, %v4111_v44  ;;  %v4156_v38 = vmul.f32 0.044715, %v4116_v55  ;;  %v4147_v2 = vmul.f32 0.5, %v4116_v55 }
0x177f   :  { %v4120_v8 = vpop.f32.mrf.mxu0 }
0x1780   :  { %6219 = vtanh.f32 %v4190_v21  ;;  %v4182_v45 = vadd.f32 %v4173_v29, %v4111_v44  ;;  %v4165_v61 = vmul.f32 %v4156_v38, %v4116_v55  ;;  %v4121_v37 = vadd.f32 %v8567_v42, %v4120_v8 }
0x1781   :  { %v5880_v18 = vpop.f32.mrf.mxu0 }
0x1782   :  { %v4191_v62 = vmul.f32 0.7978846, %v4182_v45  ;;  %v4174_v51 = vmul.f32 %v4165_v61, %v4116_v55  ;;  %v4157_v31 = vmul.f32 0.044715, %v4121_v37  ;;  %v4148_v44 = vmul.f32 0.5, %v4121_v37 }
0x1783   :  { %v4125_v57 = vpop.f32.mrf.mxu0 }
0x1784   :  { %6221 = vtanh.f32 %v4191_v62  ;;  %v4183_v46 = vadd.f32 %v4174_v51, %v4116_v55  ;;  %v4166_v5 = vmul.f32 %v4157_v31, %v4121_v37  ;;  %v4126_v27 = vadd.f32 %v8567_v42, %v4125_v57 }
0x1785   :  { %v5883_v52 = vpop.f32.mrf.mxu0 }
0x1786   :  { %v4192_v36 = vmul.f32 0.7978846, %v4183_v46  ;;  %v4175_v4 = vmul.f32 %v4166_v5, %v4121_v37  ;;  %v4158_v0 = vmul.f32 0.044715, %v4126_v27  ;;  %v4149_v38 = vmul.f32 0.5, %v4126_v27 }
0x1787   :  { %v4130_v40 = vpop.f32.mrf.mxu0 }
0x1788   :  { %6223 = vtanh.f32 %v4192_v36  ;;  %v4184_v54 = vadd.f32 %v4175_v4, %v4121_v37  ;;  %v4167_v34 = vmul.f32 %v4158_v0, %v4126_v27  ;;  %v4131_v49 = vadd.f32 %v8567_v42, %v4130_v40 }
0x1789   :  { %v6218_v63 = vpop.eup %6217  ;;  %v5886_v6 = vpop.f32.mrf.mxu0 }
0x178a   :  { %v4207_v53 = vadd.f32 1.0, %v6218_v63  ;;  %v4193_v14 = vmul.f32 0.7978846, %v4184_v54  ;;  %v4176_v13 = vmul.f32 %v4167_v34, %v4126_v27  ;;  %v4159_v11 = vmul.f32 0.044715, %v4131_v49 }
0x178b   :  { %v4150_v61 = vmul.f32 0.5, %v4131_v49 }
0x178c   :  { %v4216_v60 = vmul.f32 %v4207_v53, %v4144_v50  ;;  %6225 = vtanh.f32 %v4193_v14  ;;  %v4185_v47 = vadd.f32 %v4176_v13, %v4126_v27  ;;  %v4168_v9 = vmul.f32 %v4159_v11, %v4131_v49 }
0x178d   :  { %v6220_v25 = vpop.eup %6219 }
0x178e   :  { %v4194_v24 = vmul.f32 0.7978846, %v4185_v47  ;;  %5910 = vmatmul.mubr.msk.f32.vlgmr.msra.gmra.mxu1 %vm2162_vm8, %v4216_v60  ;;  %v4208_v26 = vadd.f32 1.0, %v6220_v25  ;;  %v4177_v43 = vmul.f32 %v4168_v9, %v4131_v49 }
0x178f   :  { %5912 = vmatprep.mubr.msk.f32.mxu1 %vm6285_vm0, %v6284_v1 }
0x1790   :  { %6227 = vtanh.f32 %v4194_v24  ;;  %v4217_v17 = vmul.f32 %v4208_v26, %v4145_v20  ;;  %v4186_v12 = vadd.f32 %v4177_v43, %v4131_v49 }
0x1791   :  { %v6222_v41 = vpop.eup %6221 }
0x1792   :  { %5913 = vmatmul.mubr.msk.f32.gmra.mxu1 %vm2162_vm8, %v4217_v17  ;;  %v4209_v10 = vadd.f32 1.0, %v6222_v41  ;;  %v4195_v32 = vmul.f32 0.7978846, %v4186_v12 }
0x1793   :  { %5915 = vmatprep.mubr.msk.f32.mxu1 %vm6285_vm0, %v6284_v1 }
0x1794   :  { %v4218_v28 = vmul.f32 %v4209_v10, %v4146_v48  ;;  %6229 = vtanh.f32 %v4195_v32 }
0x1795   :  { %v6224_v35 = vpop.eup %6223 }
0x1796   :  { %5916 = vmatmul.mubr.msk.f32.gmra.mxu1 %vm2162_vm8, %v4218_v28  ;;  %v4210_v7 = vadd.f32 1.0, %v6224_v35  ;;  %v4874_v35 = vld [vmem:[%s8717_s16 + $0x1] ss:$0 sm:$0xff] }
0x1797   :  { %5918 = vmatprep.mubr.msk.f32.mxu1 %vm6285_vm0, %v6284_v1 }
0x1798   :  { %v4219_v19 = vmul.f32 %v4210_v7, %v4147_v2 }
0x1799   :  { %v6226_v30 = vpop.eup %6225 }
0x179a   :  { %5919 = vmatmul.mubr.msk.f32.gmra.mxu1 %vm2162_vm8, %v4219_v19  ;;  %v4211_v16 = vadd.f32 1.0, %v6226_v30 }
0x179b   :  { %5921 = vmatprep.mubr.msk.f32.mxu1 %vm6285_vm0, %v6284_v1 }
0x179c   :  { %v4220_v21 = vmul.f32 %v4211_v16, %v4148_v44 }
0x179d   :  { %v6228_v29 = vpop.eup %6227 }
0x179e   :  { %5922 = vmatmul.mubr.msk.f32.gmra.mxu1 %vm2162_vm8, %v4220_v21  ;;  %v4212_v55 = vadd.f32 1.0, %v6228_v29 }
0x179f   :  { %5924 = vmatprep.mubr.msk.f32.mxu1 %vm6285_vm0, %v6284_v1 }
0x17a0   :  { %v4221_v8 = vmul.f32 %v4212_v55, %v4149_v38 }
0x17a1   :  { %v6230_v45 = vpop.eup %6229 }
0x17a2   :  { %5925 = vmatmul.mubr.msk.f32.gmra.mxu1 %vm2162_vm8, %v4221_v8  ;;  %v4213_v37 = vadd.f32 1.0, %v6230_v45 }
0x17a3   :  { %5927 = vmatprep.mubr.msk.f32.mxu1 %vm6285_vm0, %v6284_v1 }
0x17a4   :  { %v4222_v18 = vmul.f32 %v4213_v37, %v4150_v61 }
0x17a6   :  { %5928 = vmatmul.mubr.msk.f32.gmra.mxu1 %vm2162_vm8, %v4222_v18 }
0x17a7   :  { %5930 = vmatprep.mubr.msk.f32.mxu1 %vm6285_vm0, %v6284_v1 }
0x17af   :  { %v4135_v62 = vpop.f32.mrf.mxu0 }
0x17b0   :  { %v4136_v51 = vadd.f32 %v8567_v42, %v4135_v62 }
0x17b1   :  { %v5889_v31 = vpop.f32.mrf.mxu0 }
0x17b2   :  { %v4160_v57 = vmul.f32 0.044715, %v4136_v51  ;;  %v4151_v50 = vmul.f32 0.5, %v4136_v51 }
0x17b3   :  { %v4140_v46 = vpop.f32.mrf.mxu0 }
0x17b4   :  { %v4169_v5 = vmul.f32 %v4160_v57, %v4136_v51  ;;  %v4141_v27 = vadd.f32 %v8567_v42, %v4140_v46 }
0x17b5   :  { %v5892_v52 = vpop.f32.mrf.mxu0 }
0x17b6   :  { %v4178_v36 = vmul.f32 %v4169_v5, %v4136_v51  ;;  %v4161_v4 = vmul.f32 0.044715, %v4141_v27  ;;  %v4152_v11 = vmul.f32 0.5, %v4141_v27 }
0x17b8   :  { %v4187_v0 = vadd.f32 %v4178_v36, %v4136_v51  ;;  %v4170_v40 = vmul.f32 %v4161_v4, %v4141_v27 }
0x17ba   :  { %v4196_v54 = vmul.f32 0.7978846, %v4187_v0  ;;  %v4179_v34 = vmul.f32 %v4170_v40, %v4141_v27 }
0x17bc   :  { %6231 = vtanh.f32 %v4196_v54  ;;  %v4188_v49 = vadd.f32 %v4179_v34, %v4141_v27 }
0x17be   :  { %v4197_v63 = vmul.f32 0.7978846, %v4188_v49 }
0x17c0   :  { %6233 = vtanh.f32 %v4197_v63 }
0x17c9   :  { %v6232_v6 = vpop.eup %6231 }
0x17ca   :  { %v4214_v53 = vadd.f32 1.0, %v6232_v6 }
0x17cc   :  { %v4223_v14 = vmul.f32 %v4214_v53, %v4151_v50 }
0x17cd   :  { %v6234_v13 = vpop.eup %6233 }
0x17ce   :  { %5931 = vmatmul.mubr.msk.f32.gmra.mxu1 %vm2162_vm8, %v4223_v14  ;;  %v4215_v42 = vadd.f32 1.0, %v6234_v13 }
0x17cf   :  { %5933 = vmatprep.mubr.msk.f32.mxu1 %vm6285_vm0, %v6284_v1 }
0x17d0   :  { %v4224_v60 = vmul.f32 %v4215_v42, %v4152_v11 }
0x17d2   :  { %5934 = vmatmul.mubr.msk.f32.gmra.mxu1 %vm2162_vm8, %v4224_v60 }
0x184e   :  { %v4335_v47 = vpop.f32.mrf.mxu1 }
0x1850   :  { %v5911_v25 = vpop.f32.mrf.mxu1 }
0x1852   :  { %v4340_v9 = vpop.f32.mrf.mxu1 }
0x1853   :  { %v4341_v37 = vadd.f32 %v4874_v35, %v4340_v9 }
0x1854   :  { %v5914_v20 = vpop.f32.mrf.mxu1 }
0x1856   :  { %v4345_v24 = vpop.f32.mrf.mxu1 }
0x1857   :  { %v4346_v57 = vadd.f32 %v4874_v35, %v4345_v24 }
0x1858   :  { %v5917_v26 = vpop.f32.mrf.mxu1 }
0x185a   :  { %v4350_v43 = vpop.f32.mrf.mxu1 }
0x185b   :  { %v4351_v16 = vadd.f32 %v4874_v35, %v4350_v43 }
0x185c   :  { %v5920_v17 = vpop.f32.mrf.mxu1 }
0x185d   :  { %v4382_v18 = vadd.f32 %v4351_v16, %v8366_v59  ;;  %v4336_v59 = vadd.f32 %v4874_v35, %v4335_v47 }
0x185e   :  { %v4355_v41 = vpop.f32.mrf.mxu1 }
0x185f   :  { %v4356_v62 = vadd.f32 %v4874_v35, %v4355_v41  ;;  %v4399_v5 = vsel %vm236_vm2, %v4382_v18, 0.0 }
0x1860   :  { %v5923_v12 = vpop.f32.mrf.mxu1 }
0x1861   :  { %v4383_v46 = vadd.f32 %v4356_v62, %v8372_v33 }
0x1862   :  { %v4360_v48 = vpop.f32.mrf.mxu1 }
0x1863   :  { %v4361_v7 = vadd.f32 %v4874_v35, %v4360_v48  ;;  %v4402_v52 = vsel %vm236_vm2, %v4383_v46, 0.0 }
0x1864   :  { %v5926_v10 = vpop.f32.mrf.mxu1 }
0x1865   :  { %v4384_v29 = vadd.f32 %v4361_v7, %v8378_v22  ;;  %v4380_v22 = vadd.f32 %v4341_v37, %v8354_v39  ;;  %v4379_v39 = vadd.f32 %v4336_v59, %v8348_v3 }
0x1866   :  { %v4365_v32 = vpop.f32.mrf.mxu1 }
0x1867   :  { %v4366_v38 = vadd.f32 %v4874_v35, %v4365_v32  ;;  %v4393_v27 = vsel %vm236_vm2, %v4380_v22, 0.0  ;;  %v4390_v33 = vsel %vm236_vm2, %v4379_v39, 0.0 }
0x1868   :  { %v5929_v28 = vpop.f32.mrf.mxu1 }
0x1869   :  { %v4385_v51 = vadd.f32 %v4366_v38, %v8383_v15  ;;  %v4381_v15 = vadd.f32 %v4346_v57, %v8360_v58 }
0x186b   :  { %v4396_v36 = vsel %vm236_vm2, %v4381_v15, 0.0 }
0x188e   :  { %v4370_v2 = vpop.f32.mrf.mxu1 }
0x188f   :  { %v4371_v19 = vadd.f32 %v4874_v35, %v4370_v2 }
0x1890   :  { %v5932_v30 = vpop.f32.mrf.mxu1 }
0x1891   :  { %v4386_v44 = vadd.f32 %v4371_v19, %v8390_v56  ;;  %v4405_v56 = vsel %vm236_vm2, %v4384_v29, 0.0 }
0x1892   :  { %v4375_v21 = vpop.f32.mrf.mxu1 }
0x1893   :  { %v4376_v55 = vadd.f32 %v4874_v35, %v4375_v21  ;;  %v4411_v8 = vsel %vm236_vm2, %v4386_v44, 0.0 }
0x1894   :  { %4412 = vadd.xlane.f32.xlu1 %v4411_v8  ;;  %v5935_v45 = vpop.f32.mrf.mxu1 }
0x1895   :  { %v4387_v61 = vadd.f32 %v4376_v55, %v8395_v23  ;;  %v4408_v23 = vsel %vm236_vm2, %v4385_v51, 0.0 }
0x1897   :  { %v4414_v31 = vsel %vm261_vm3, %v4387_v61, 0.0 }
0x1898   :  { %4406 = vadd.xlane.f32.xlu1 %v4405_v56  ;;  %4415 = vadd.xlane.f32.xlu0 %v4414_v31 }
0x189c   :  { %4400 = vadd.xlane.f32.xlu1 %v4399_v5  ;;  %4409 = vadd.xlane.f32.xlu0 %v4408_v23 }
0x18a0   :  { %4394 = vadd.xlane.f32.xlu1 %v4393_v27  ;;  %4403 = vadd.xlane.f32.xlu0 %v4402_v52 }
0x18a4   :  { %4397 = vadd.xlane.f32.xlu0 %v4396_v36 }
0x18a8   :  { %4391 = vadd.xlane.f32.xlu0 %v4390_v33 }
0x191d   :  { %v4413_v4 = vpop.xlane.xlu1 %4412 }
0x191e   :  { %v4424_v0 = vmul.f32 0.03125, %v4413_v4 }
0x1920   :  { %v8624_v40 = vsub.f32 %v4386_v44, %v4424_v0 }
0x1921   :  { %v4416_v54 = vpop.xlane.xlu0 %4415  ;;  %v4407_v58 = vpop.xlane.xlu1 %4406 }
0x1922   :  { %v4425_v34 = vmul.f32 0.03125, %v4416_v54  ;;  %v4422_v49 = vmul.f32 0.03125, %v4407_v58  ;;  %v4442_v63 = vmul.f32 %v8624_v40, %v8624_v40 }
0x1924   :  { %v8628_v6 = vsub.f32 %v4387_v61, %v4425_v34  ;;  %v8630_v3 = vsub.f32 %v4384_v29, %v4422_v49  ;;  %v4465_v50 = vsel %vm236_vm2, %v4442_v63, 0.0 }
0x1925   :  { %v4410_v53 = vpop.xlane.xlu0 %4409  ;;  %4466 = vadd.xlane.f32.xlu0 %v4465_v50  ;;  %v4401_v14 = vpop.xlane.xlu1 %4400 }
0x1926   :  { %v4423_v13 = vmul.f32 0.03125, %v4410_v53  ;;  %v4420_v11 = vmul.f32 0.03125, %v4401_v14  ;;  %v4443_v42 = vmul.f32 %v8628_v6, %v8628_v6  ;;  %v4440_v60 = vmul.f32 %v8630_v3, %v8630_v3 }
0x1928   :  { %v8637_v47 = vsub.f32 %v4385_v51, %v4423_v13  ;;  %v8639_v25 = vsub.f32 %v4382_v18, %v4420_v11  ;;  %v4468_v9 = vsel %vm261_vm3, %v4443_v42, 0.0  ;;  %v4459_v20 = vsel %vm236_vm2, %v4440_v60, 0.0  ;;  %v4884_v60 = vld [vmem:[%s8718_s17] ss:$0 sm:$0xff] }
0x1929   :  { %4469 = vadd.xlane.f32.xlu1 %v4468_v9  ;;  %v4404_v24 = vpop.xlane.xlu0 %4403  ;;  %4460 = vadd.xlane.f32.xlu0 %v4459_v20  ;;  %v4395_v26 = vpop.xlane.xlu1 %4394 }
0x192a   :  { %v4421_v43 = vmul.f32 0.03125, %v4404_v24  ;;  %v4418_v17 = vmul.f32 0.03125, %v4395_v26  ;;  %v4441_v41 = vmul.f32 %v8637_v47, %v8637_v47  ;;  %v4438_v12 = vmul.f32 %v8639_v25, %v8639_v25 }
0x192c   :  { %v8647_v48 = vsub.f32 %v4383_v46, %v4421_v43  ;;  %v8649_v10 = vsub.f32 %v4380_v22, %v4418_v17  ;;  %v4462_v32 = vsel %vm236_vm2, %v4441_v41, 0.0  ;;  %v4453_v28 = vsel %vm236_vm2, %v4438_v12, 0.0  ;;  %v4885_v41 = vld [vmem:[%s8719_s18] ss:$0 sm:$0xff] }
0x192d   :  { %4463 = vadd.xlane.f32.xlu1 %v4462_v32  ;;  %v4398_v35 = vpop.xlane.xlu0 %4397  ;;  %4454 = vadd.xlane.f32.xlu0 %v4453_v28 }
0x192e   :  { %v4419_v2 = vmul.f32 0.03125, %v4398_v35  ;;  %v4439_v7 = vmul.f32 %v8647_v48, %v8647_v48  ;;  %v4436_v19 = vmul.f32 %v8649_v10, %v8649_v10 }
0x1930   :  { %v8657_v30 = vsub.f32 %v4381_v15, %v4419_v2  ;;  %v4456_v44 = vsel %vm236_vm2, %v4439_v7, 0.0  ;;  %v4447_v16 = vsel %vm236_vm2, %v4436_v19, 0.0 }
0x1931   :  { %4457 = vadd.xlane.f32.xlu1 %v4456_v44  ;;  %v4392_v21 = vpop.xlane.xlu0 %4391  ;;  %4448 = vadd.xlane.f32.xlu0 %v4447_v16 }
0x1932   :  { %v4417_v29 = vmul.f32 0.03125, %v4392_v21  ;;  %v4437_v38 = vmul.f32 %v8657_v30, %v8657_v30 }
0x1934   :  { %v8663_v55 = vsub.f32 %v4379_v39, %v4417_v29  ;;  %v4450_v8 = vsel %vm236_vm2, %v4437_v38, 0.0 }
0x1935   :  { %4451 = vadd.xlane.f32.xlu1 %v4450_v8 }
0x1936   :  { %v4435_v45 = vmul.f32 %v8663_v55, %v8663_v55 }
0x1938   :  { %v4444_v61 = vsel %vm236_vm2, %v4435_v45, 0.0 }
0x1939   :  { %4445 = vadd.xlane.f32.xlu1 %v4444_v61 }
0x19ae   :  { %v4467_v37 = vpop.xlane.xlu0 %4466 }
0x19af   :  { %v4478_v18 = vmul.f32 0.03125, %v4467_v37 }
0x19b1   :  { %v4487_v62 = vadd.f32 1e-12, %v4478_v18 }
0x19b2   :  { %v4461_v51 = vpop.xlane.xlu0 %4460  ;;  %v4470_v56 = vpop.xlane.xlu1 %4469 }
0x19b3   :  { %v4476_v31 = vmul.f32 0.03125, %v4461_v51  ;;  %v4479_v22 = vmul.f32 0.03125, %v4470_v56  ;;  %6235 = vrsqrt.f32 %v4487_v62  ;;  %v4537_v51 = vld [vmem:[%s8705_s4] sm:$0xf] }
0x19b5   :  { %v4485_v57 = vadd.f32 1e-12, %v4476_v31  ;;  %v4488_v46 = vadd.f32 1e-12, %v4479_v22 }
0x19b6   :  { %v4455_v5 = vpop.xlane.xlu0 %4454  ;;  %v4464_v23 = vpop.xlane.xlu1 %4463 }
0x19b7   :  { %6237 = vrsqrt.f32 %v4485_v57  ;;  %v4474_v59 = vmul.f32 0.03125, %v4455_v5  ;;  %v4477_v15 = vmul.f32 0.03125, %v4464_v23 }
0x19b8   :  { %6239 = vrsqrt.f32 %v4488_v46 }
0x19b9   :  { %v4483_v27 = vadd.f32 1e-12, %v4474_v59  ;;  %v4486_v52 = vadd.f32 1e-12, %v4477_v15 }
0x19ba   :  { %v4449_v39 = vpop.xlane.xlu0 %4448  ;;  %v4458_v36 = vpop.xlane.xlu1 %4457 }
0x19bb   :  { %6241 = vrsqrt.f32 %v4483_v27  ;;  %v4472_v33 = vmul.f32 0.03125, %v4449_v39  ;;  %v4475_v4 = vmul.f32 0.03125, %v4458_v36 }
0x19bc   :  { %6243 = vrsqrt.f32 %v4486_v52 }
0x19bd   :  { %v4481_v0 = vadd.f32 1e-12, %v4472_v33  ;;  %v4484_v54 = vadd.f32 1e-12, %v4475_v4 }
0x19be   :  { %v4452_v58 = vpop.xlane.xlu1 %4451 }
0x19bf   :  { %6245 = vrsqrt.f32 %v4481_v0  ;;  %v4473_v34 = vmul.f32 0.03125, %v4452_v58 }
0x19c0   :  { %6247 = vrsqrt.f32 %v4484_v54  ;;  %v6236_v49 = vpop.eup %6235 }
0x19c1   :  { %v4482_v63 = vadd.f32 1e-12, %v4473_v34  ;;  %v4505_v13 = vmul.f32 %v6236_v49, %v8624_v40 }
0x19c2   :  { %v4446_v50 = vpop.xlane.xlu1 %4445 }
0x19c3   :  { %6249 = vrsqrt.f32 %v4482_v63  ;;  %v4471_v53 = vmul.f32 0.03125, %v4446_v50  ;;  %v4520_v26 = vmul.f32 %v4884_v60, %v4505_v13 }
0x19c4   :  { %v6238_v14 = vpop.eup %6237 }
0x19c5   :  { %v6240_v11 = vpop.eup %6239  ;;  %v4480_v42 = vadd.f32 1e-12, %v4471_v53  ;;  %v4503_v43 = vmul.f32 %v6238_v14, %v8630_v3  ;;  %v4535_v28 = vadd.f32 %v4885_v41, %v4520_v26 }
0x19c6   :  { %v4506_v9 = vmul.f32 %v6240_v11, %v8628_v6 }
0x19c7   :  { %6251 = vrsqrt.f32 %v4480_v42  ;;  %v4518_v6 = vmul.f32 %v4884_v60, %v4503_v43 }
0x19c8   :  { %v6242_v20 = vpop.eup %6241  ;;  %v4521_v24 = vmul.f32 %v4884_v60, %v4506_v9 }
0x19c9   :  { %v6244_v17 = vpop.eup %6243  ;;  %v4501_v2 = vmul.f32 %v6242_v20, %v8639_v25 }
0x19ca   :  { %v4536_v40 = vadd.f32 %v4885_v41, %v4521_v24  ;;  %v4504_v12 = vmul.f32 %v6244_v17, %v8637_v47  ;;  %v4533_v47 = vadd.f32 %v4885_v41, %v4518_v6 }
0x19cb   :  { %v4516_v21 = vmul.f32 %v4884_v60, %v4501_v2 }
0x19cc   :  { %v6246_v32 = vpop.eup %6245  ;;  %5937 = vmatpush3.msk.msra.mxu0 %vm885_vm7, %v4536_v40  ;;  %v4519_v35 = vmul.f32 %v4884_v60, %v4504_v12 }
0x19cd   :  { %v6248_v7 = vpop.eup %6247  ;;  %5938 = vmatprep.subr.mxu0 %v6284_v1  ;;  %v4499_v29 = vmul.f32 %v6246_v32, %v8649_v10 }
0x19ce   :  { %5939 = vmatpush3.msra.mxu0 %v4535_v28  ;;  %v4534_v3 = vadd.f32 %v4885_v41, %v4519_v35  ;;  %v4502_v19 = vmul.f32 %v6248_v7, %v8647_v48  ;;  %v4531_v48 = vadd.f32 %v4885_v41, %v4516_v21 }
0x19cf   :  { %5940 = vmatprep.subr.mxu0 %v6284_v1  ;;  %v4514_v61 = vmul.f32 %v4884_v60, %v4499_v29 }
0x19d0   :  { %v6250_v44 = vpop.eup %6249  ;;  %5941 = vmatpush3.msra.mxu0 %v4534_v3  ;;  %v4517_v16 = vmul.f32 %v4884_v60, %v4502_v19 }
0x19d1   :  { %5942 = vmatprep.subr.mxu0 %v6284_v1  ;;  %v4500_v25 = vmul.f32 %v6250_v44, %v8657_v30  ;;  %v4529_v30 = vadd.f32 %v4885_v41, %v4514_v61 }
0x19d2   :  { %5943 = vmatpush3.msra.mxu0 %v4533_v47  ;;  %v4532_v38 = vadd.f32 %v4885_v41, %v4517_v16 }
0x19d3   :  { %5944 = vmatprep.subr.mxu0 %v6284_v1  ;;  %v4515_v8 = vmul.f32 %v4884_v60, %v4500_v25 }
0x19d4   :  { %v6252_v45 = vpop.eup %6251  ;;  %5945 = vmatpush3.msra.mxu0 %v4532_v38 }
0x19d5   :  { %5946 = vmatprep.subr.mxu0 %v6284_v1  ;;  %v4530_v37 = vadd.f32 %v4885_v41, %v4515_v8  ;;  %v4498_v18 = vmul.f32 %v6252_v45, %v8663_v55 }
0x19d6   :  { %5947 = vmatpush3.msra.mxu0 %v4531_v48 }
0x19d7   :  { %5948 = vmatprep.subr.mxu0 %v6284_v1  ;;  %v4513_v10 = vmul.f32 %v4884_v60, %v4498_v18 }
0x19d8   :  { %5949 = vmatpush3.msra.mxu0 %v4530_v37 }
0x19d9   :  { %5950 = vmatprep.subr.mxu0 %v6284_v1  ;;  %v4528_v62 = vadd.f32 %v4885_v41, %v4513_v10 }
0x19da   :  { %5951 = vmatpush3.msra.mxu0 %v4529_v30 }
0x19db   :  { %5952 = vmatprep.subr.mxu0 %v6284_v1 }
0x19dc   :  { %5953 = vmatpush3.msra.mxu0 %v4528_v62 }
0x19dd   :  { %5955 = vmatmul.mubr.msk.f32.vlgmr.msra.gmra.mxu0 %vm731_vm5, %v4537_v51 }
0x1a9d   :  { %v4610_v55 = vpop.f32.mrf.mxu0 }
0x1a9e   :  { %4614 = vst.msk [vmem:[#allocation2] sm:$0xf] %vm261_vm3, %v4610_v55 }
0x1a9f   :  { %v5956_v56 = vpop.f32.mrf.mxu0 }
0x1aa0   :  { %6273 = shalt.err (!%p6270_p4)
}
0x1aa1   :  { %4624 = dma.vmem_to_hbm [thread:$0]  %s4622_s27, 64, %s8720_s19, [#allocation3]  }
0x1aa2   :  { %6282 = dma.done.wait [#allocation3], 64  }
0x1aa3   :  { %6283 = vsyncadd [#allocation3], 4294967232 }
0x1aa4   :  { %4628 = vsyncpa [#allocation3], 1 }

</bundles_post_ra>
